<compile_context>
chip_gen: v7x
topology: tpu7x:2x2x1
jax: 0.10.0
libtpu: 0.0.40
codegen_flags: <defaults>
</compile_context>

<pallas_src>
import functools

import jax
import jax.numpy as jnp
from jax.experimental import pallas as pl
from jax.experimental.pallas import tpu as pltpu

_VMEM_LIMIT = 32 * 1024 * 1024  # safe on v5e/v6e/v7x; raises v5e's 16 MiB default


# ----------------------------------------------------------------------------
# helpers
# ----------------------------------------------------------------------------
def _rep_spec(arr):
    """BlockSpec for a weight replicated across every grid step (DMA'd once)."""
    zeros = (0,) * arr.ndim
    return pl.BlockSpec(arr.shape, lambda *_, zeros=zeros: zeros)


def _stacked_spec(arr):
    """BlockSpec for a per-block weight stacked along a leading depth axis.

    The depth axis is squeezed away inside the kernel; the depth grid index
    (axis 1 of the (batch_tile, depth) grid) selects which block's weights
    are streamed into VMEM for this step.
    """
    tail = arr.shape[1:]
    zeros = (0,) * len(tail)
    return pl.BlockSpec((None,) + tail, lambda bt, d, zeros=zeros: (d,) + zeros)


def _layer_norm(y, gamma, beta, eps=1e-5):
    mu = jnp.mean(y, axis=-1, keepdims=True)
    yc = y - mu
    var = jnp.mean(yc * yc, axis=-1, keepdims=True)
    return yc * jax.lax.rsqrt(var + eps) * gamma + beta


# ----------------------------------------------------------------------------
# Encoder: (BG_total, N, 3) point groups -> (BG_total, encoder_dims) tokens
#   first_conv : Conv1d(3,128,1) -> BN -> ReLU -> Conv1d(128,256,1)
#   max over N, concat [global, local] -> 512 channels
#   second_conv: Conv1d(512,512,1) -> BN -> ReLU -> Conv1d(512,C,1)
#   max over N
# The Conv1d(512,512) is split into w3g (global half) + w3l (local half).
# ----------------------------------------------------------------------------
_ENC_KEYS = ('w1', 'b1', 's1', 't1', 'w2', 'b2',
             'w3g', 'w3l', 'b3', 's3', 't3', 'w4', 'b4')


def _encoder_kernel(pts_ref, w1_ref, b1_ref, s1_ref, t1_ref, w2_ref, b2_ref,
                    w3g_ref, w3l_ref, b3_ref, s3_ref, t3_ref, w4_ref, b4_ref,
                    out_ref):
    Gb, N, _ = pts_ref.shape
    c2 = w2_ref.shape[1]
    c3 = w3l_ref.shape[1]
    cenc = out_ref.shape[-1]
    T = Gb * N

    p = pts_ref[...].reshape(T, 3)                               # (T, 3) f32
    w1 = w1_ref[...]                                             # (3, 128) f32
    # K=3 layer done on the VPU (3 broadcast mul-adds) instead of a K=3 MXU
    # matmul (2% MXU utilization otherwise).
    h = (p[:, 0:1] * w1[0:1, :] + p[:, 1:2] * w1[1:2, :]
         + p[:, 2:3] * w1[2:3, :]) + b1_ref[...]                 # (T, 128)
    h = jnp.maximum(h * s1_ref[...] + t1_ref[...], 0.0)          # BN(eval)+ReLU

    h2 = jnp.dot(h.astype(jnp.bfloat16), w2_ref[...],
                 preferred_element_type=jnp.float32) + b2_ref[...]   # (T, 256)
    g = jnp.max(h2.reshape(Gb, N, c2), axis=1)                   # (Gb, 256)

    glob = jnp.dot(g.astype(jnp.bfloat16), w3g_ref[...],
                   preferred_element_type=jnp.float32)           # (Gb, 512)
    loc = jnp.dot(h2.astype(jnp.bfloat16), w3l_ref[...],
                  preferred_element_type=jnp.float32)            # (T, 512)
    f = loc.reshape(Gb, N, c3) + glob[:, None, :] + b3_ref[...]
    f = jnp.maximum(f * s3_ref[...] + t3_ref[...], 0.0)
    f = jnp.dot(f.reshape(T, c3).astype(jnp.bfloat16), w4_ref[...],
                preferred_element_type=jnp.float32) + b4_ref[...]    # (T, Cenc)
    out_ref[...] = jnp.max(f.reshape(Gb, N, cenc), axis=1)       # (Gb, Cenc)


def encoder_forward(points, enc):
    """points: (BG_total, N, 3) -> (BG_total, encoder_dims)."""
    total, N, _ = points.shape
    cenc = enc['w4'].shape[1]

    # Group-tile: as large as possible (<=128) so the per-step pipeline
    # overhead is amortized and stores are dense; pad group count if needed.
    # (On v6e with a raised vmem_limit this could go to 256.)
    G_blk = total
    for cand in (128, 64, 32, 16, 8):
        if total >= cand:
            G_blk = cand
            break
    padded = -(-total // G_blk) * G_blk
    if padded != total:
        points = jnp.concatenate(
            [points, jnp.zeros((padded - total, N, 3), points.dtype)], axis=0)

    weights = [enc[k] for k in _ENC_KEYS]
    out = pl.pallas_call(
        _encoder_kernel,
        out_shape=jax.ShapeDtypeStruct((padded, cenc), jnp.float32),
        grid=(padded // G_blk,),
        in_specs=[pl.BlockSpec((G_blk, N, 3), lambda g: (g, 0, 0))]
                 + [_rep_spec(w) for w in weights],
        out_specs=pl.BlockSpec((G_blk, cenc), lambda g: (g, 0)),
        compiler_params=pltpu.CompilerParams(
            dimension_semantics=("parallel",),
            vmem_limit_bytes=_VMEM_LIMIT),
    )(points, *weights)
    return out[:total]


# ----------------------------------------------------------------------------
# Fused transformer stack: grid = (batch_tiles, depth).
# Activations live in the OUTPUT block (constant block index along the depth
# axis -> depth-resident accumulator, no extra scratch), per-block weights are
# streamed via the depth index_map.
# Block: x + Attn(LN(x)); x + MLP(LN(x));  optional final LayerNorm at the end.
# ----------------------------------------------------------------------------
_BLOCK_KEYS = ('ln1_g', 'ln1_b', 'w_qkv', 'w_proj', 'b_proj',
               'ln2_g', 'ln2_b', 'w_fc1', 'b_fc1', 'w_fc2', 'b_fc2')


def _stack_kernel(x_ref, ln1g_ref, ln1b_ref, wqkv_ref, wproj_ref, bproj_ref,
                  ln2g_ref, ln2b_ref, wfc1_ref, bfc1_ref, wfc2_ref, bfc2_ref,
                  ng_ref, nb_ref, out_ref, *, num_heads, apply_final_ln):
    d = pl.program_id(1)

    @pl.when(d == 0)
    def _():
        out_ref[...] = x_ref[...]

    x3 = out_ref[...]                                   # (Bt, G, C) f32 (resident)
    Bt, G, C = x3.shape
    T = Bt * G
    hd = C // num_heads
    scale = float(hd) ** -0.5

    x2 = x3.reshape(T, C)                               # flat token matrix

    # --- attention: x + proj(MHA(LN(x))) ---
    xn = _layer_norm(x2, ln1g_ref[...], ln1b_ref[...])
    qkv = jnp.dot(xn.astype(jnp.bfloat16), wqkv_ref[...],
                  preferred_element_type=jnp.float32)   # (T, 3C), single GEMM
    qkv3 = qkv.reshape(Bt, G, 3 * C)

    heads = []
    for h in range(num_heads):
        lo = h * hd
        qh = qkv3[:, :, lo:lo + hd].astype(jnp.bfloat16)
        kh = qkv3[:, :, C + lo:C + lo + hd].astype(jnp.bfloat16)
        vh = qkv3[:, :, 2 * C + lo:2 * C + lo + hd].astype(jnp.bfloat16)
        att = jnp.einsum('bqd,bkd->bqk', qh, kh,
                         preferred_element_type=jnp.float32) * scale
        att = att - jnp.max(att, axis=-1, keepdims=True)
        p = jnp.exp(att)
        p = p * (1.0 / jnp.sum(p, axis=-1, keepdims=True))   # exact softmax
        oh = jnp.einsum('bqk,bkd->bqd', p.astype(jnp.bfloat16), vh,
                        preferred_element_type=jnp.float32)   # (Bt, G, hd)
        heads.append(oh.reshape(T, hd))
    # concat heads -> ONE K=C projection GEMM (instead of num_heads K=hd GEMMs)
    attn_cat = jnp.concatenate(heads, axis=-1)          # (T, C)
    attn_out = jnp.dot(attn_cat.astype(jnp.bfloat16), wproj_ref[...],
                       preferred_element_type=jnp.float32) + bproj_ref[...]
    x2 = x2 + attn_out

    # --- MLP: x + fc2(gelu(fc1(LN(x)))) ---
    xn2 = _layer_norm(x2, ln2g_ref[...], ln2b_ref[...])
    hid = jnp.dot(xn2.astype(jnp.bfloat16), wfc1_ref[...],
                  preferred_element_type=jnp.float32) + bfc1_ref[...]
    hid = jax.nn.gelu(hid, approximate=False)           # exact erf (nn.GELU)
    mlp = jnp.dot(hid.astype(jnp.bfloat16), wfc2_ref[...],
                  preferred_element_type=jnp.float32) + bfc2_ref[...]
    x2 = x2 + mlp

    out_ref[...] = x2.reshape(Bt, G, C)

    if apply_final_ln:
        @pl.when(d == pl.num_programs(1) - 1)
        def _():
            out_ref[...] = _layer_norm(
                x2, ng_ref[...], nb_ref[...]).reshape(Bt, G, C)


def transformer_stack(x, blocks, num_heads, norm=None):
    """Run a list of transformer blocks (and optionally the final LayerNorm)
    as a single pallas_call with output-resident activations."""
    Bx, G, C = x.shape
    if not blocks:
        if norm is None:
            return x
        return _layer_norm(x, norm[0], norm[1])

    stacked = {k: jnp.stack([blk[k] for blk in blocks], axis=0)
               for k in _BLOCK_KEYS}
    weights = [stacked[k] for k in _BLOCK_KEYS]
    apply_ln = norm is not None
    if apply_ln:
        ng, nb = norm
    else:
        ng = jnp.ones((1, C), jnp.float32)
        nb = jnp.zeros((1, C), jnp.float32)

    # Parallel batch-tile axis: bounds the (T,3C)/(T,4C) intermediates and lets
    # v7x's two TensorCores split the stack; ~1024 tokens per tile.
    bt_max = max(1, 1024 // max(G, 1))
    Bt = min(Bx, bt_max)
    while Bx % Bt:
        Bt -= 1

    kernel = functools.partial(_stack_kernel, num_heads=num_heads,
                               apply_final_ln=apply_ln)
    return pl.pallas_call(
        kernel,
        out_shape=jax.ShapeDtypeStruct((Bx, G, C), jnp.float32),
        grid=(Bx // Bt, len(blocks)),
        in_specs=[pl.BlockSpec((Bt, G, C), lambda bt, d: (bt, 0, 0))]
                 + [_stacked_spec(w) for w in weights]
                 + [_rep_spec(ng), _rep_spec(nb)],
        out_specs=pl.BlockSpec((Bt, G, C), lambda bt, d: (bt, 0, 0)),
        compiler_params=pltpu.CompilerParams(
            dimension_semantics=("parallel", "arbitrary"),
            vmem_limit_bytes=_VMEM_LIMIT),
    )(x, *weights, ng, nb)


# ----------------------------------------------------------------------------
# Parameter initialization (deterministic, mirrors _init_weights).
# All weight matrices are stored pre-transposed as (in_features, out_features);
# matmul weights are stored in bf16 (f32 accumulation in the kernels),
# biases / LayerNorm / folded-BN parameters stay f32.
# ----------------------------------------------------------------------------
def init_params(key, trans_dim, num_heads, depth, encoder_dims, mlp_ratio=4.0):
    hidden = int(trans_dim * mlp_ratio)
    keys = iter(jax.random.split(key, 16 + 8 * depth))

    def tn(shape, std=0.02, dtype=jnp.float32):
        # trunc_normal_(std=0.02) truncates at +/- 2 std
        return (std * jax.random.truncated_normal(next(keys), -2.0, 2.0,
                                                  shape)).astype(dtype)

    def zeros(shape):
        return jnp.zeros(shape, jnp.float32)

    def ones(shape):
        return jnp.ones(shape, jnp.float32)

    # BatchNorm (eval) folded into affine: defaults gamma=1, beta=0,
    # running_mean=0, running_var=1  ->  scale = 1/sqrt(1+eps), shift = 0.
    # TODO(synk): fold real running stats / BN affine here when loading a trained checkpoint.
    def bn_scale(c):
        return jnp.full((1, c), (1.0 + 1e-5) ** -0.5, jnp.float32)

    bf16 = jnp.bfloat16
    enc = dict(
        w1=tn((3, 128)), b1=zeros((1, 128)),                     # VPU layer: f32
        s1=bn_scale(128), t1=zeros((1, 128)),
        w2=tn((128, 256), dtype=bf16), b2=zeros((1, 256)),
        w3g=tn((256, 512), dtype=bf16), w3l=tn((256, 512), dtype=bf16),
        b3=zeros((1, 512)),
        s3=bn_scale(512), t3=zeros((1, 512)),
        w4=tn((512, encoder_dims), dtype=bf16), b4=zeros((1, encoder_dims)),
    )
    blocks = []
    for _ in range(depth):
        blocks.append(dict(
            ln1_g=ones((1, trans_dim)), ln1_b=zeros((1, trans_dim)),
            w_qkv=tn((trans_dim, 3 * trans_dim), dtype=bf16),    # qkv_bias=False
            w_proj=tn((trans_dim, trans_dim), dtype=bf16),
            b_proj=zeros((1, trans_dim)),
            ln2_g=ones((1, trans_dim)), ln2_b=zeros((1, trans_dim)),
            w_fc1=tn((trans_dim, hidden), dtype=bf16), b_fc1=zeros((1, hidden)),
            w_fc2=tn((hidden, trans_dim), dtype=bf16), b_fc2=zeros((1, trans_dim)),
        ))
    return dict(encoder=enc, blocks=blocks,
                norm_g=ones((1, trans_dim)), norm_b=zeros((1, trans_dim)),
                mask_token=tn((1, 1, trans_dim)), num_heads=num_heads)


# ----------------------------------------------------------------------------
# MaskTransformer forward (eval mode)
# ----------------------------------------------------------------------------
def mask_transformer_forward(params, pc_center, pc_neighborhood,
                             target_center, target_neighborhood, pos):
    B, G, N, _ = pc_neighborhood.shape
    C = params['mask_token'].shape[-1]

    # eval-mode mask: first half visible (0), second half masked (1)
    # TODO(synk): training-mode _mask_center_rand (host-side numpy shuffle) not ported.
    vis = jnp.zeros((B, G // 2), dtype=bool)
    msk = jnp.ones((B, G // 2), dtype=bool)
    bool_masked_pos = jnp.concatenate([vis, msk], axis=1)        # (B, G) bool

    # both point clouds go through the shared encoder in ONE pallas_call
    all_groups = jnp.concatenate(
        [pc_neighborhood.reshape(B * G, N, 3),
         target_neighborhood.reshape(B * G, N, 3)], axis=0)      # (2BG, N, 3)
    tokens = encoder_forward(all_groups, params['encoder'])      # (2BG, C)
    pc_tokens = tokens[:B * G].reshape(B, G, C)
    tgt_tokens = tokens[B * G:].reshape(B, G, C)

    m = bool_masked_pos.astype(jnp.float32)[..., None]           # (B, G, 1)
    mask_token = jnp.broadcast_to(params['mask_token'].astype(jnp.float32),
                                  (B, G, C))
    tgt_tokens = tgt_tokens * (1.0 - m) + mask_token * m

    x = jnp.concatenate([pc_tokens, tgt_tokens], axis=0) + pos   # (2B, G, C)

    merge_idx = 2
    nh = params['num_heads']
    blocks = params['blocks']
    norm = (params['norm_g'], params['norm_b'])

    if len(blocks) > merge_idx:
        # fused stack: blocks before the merge
        x = transformer_stack(x, blocks[:merge_idx], nh, norm=None)
        # merge the two streams (pc / target), as in TransformerEncoder
        half = x.shape[0] // 2
        x = (x[:half] + x[half:]) * 0.5
        # fused stack: remaining blocks + final LayerNorm
        x = transformer_stack(x, blocks[merge_idx:], nh, norm=norm)
    else:
        x = transformer_stack(x, blocks, nh, norm=norm)

    return x, bool_masked_pos


# ----------------------------------------------------------------------------
if __name__ == "__main__":
    B, G, N = 2, 8, 8
    TRANS_DIM, NUM_HEADS, DEPTH, ENCODER_DIMS = 32, 4, 4, 32

    key = jax.random.PRNGKey(0)
    kp = jax.random.split(key, 6)
    pc_center = jax.random.normal(kp[0], (B, G, 3), jnp.float32)
    pc_neighborhood = jax.random.normal(kp[1], (B, G, N, 3), jnp.float32)
    target_center = jax.random.normal(kp[2], (B, G, 3), jnp.float32)
    target_neighborhood = jax.random.normal(kp[3], (B, G, N, 3), jnp.float32)
    pos = 0.02 * jax.random.normal(kp[4], (2 * B, G, TRANS_DIM), jnp.float32)

    params = init_params(kp[5], TRANS_DIM, NUM_HEADS, DEPTH, ENCODER_DIMS)

    x, bool_masked_pos = mask_transformer_forward(
        params, pc_center, pc_neighborhood, target_center,
        target_neighborhood, pos)
    jax.block_until_ready(x)
    jax.block_until_ready(bool_masked_pos)

    assert x.shape == (B, G, TRANS_DIM)          # after merge, batch == B
    assert bool_masked_pos.shape == (B, G)
    print("KERNEL_OK")
</pallas_src>

<mosaic_0001>
module attributes {stable_mosaic.version = 11 : i64} {
  func.func @_encoder_kernel(%arg0: i32, %arg1: memref<32x8x3xf32, #tpu.memory_space<vmem>>, %arg2: memref<3x128xf32, #tpu.memory_space<vmem>>, %arg3: memref<1x128xf32, #tpu.memory_space<vmem>>, %arg4: memref<1x128xf32, #tpu.memory_space<vmem>>, %arg5: memref<1x128xf32, #tpu.memory_space<vmem>>, %arg6: memref<128x256xbf16, #tpu.memory_space<vmem>>, %arg7: memref<1x256xf32, #tpu.memory_space<vmem>>, %arg8: memref<256x512xbf16, #tpu.memory_space<vmem>>, %arg9: memref<256x512xbf16, #tpu.memory_space<vmem>>, %arg10: memref<1x512xf32, #tpu.memory_space<vmem>>, %arg11: memref<1x512xf32, #tpu.memory_space<vmem>>, %arg12: memref<1x512xf32, #tpu.memory_space<vmem>>, %arg13: memref<512x32xbf16, #tpu.memory_space<vmem>>, %arg14: memref<1x32xf32, #tpu.memory_space<vmem>>, %arg15: memref<32x32xf32, #tpu.memory_space<vmem>>) attributes {dimension_semantics = [#tpu.dimension_semantics<parallel>], iteration_bounds = array<i64: 1>, scalar_prefetch = 0 : i64, scratch_operands = 0 : i64, tpu.core_type = #tpu.core_type<tc>, window_params = [{transform_indices = @transform_0, window_bounds = array<i64: 32, 8, 3>}, {pipeline_mode = #tpu.pipeline_mode<synchronous>, transform_indices = @transform_1, window_bounds = array<i64: 3, 128>}, {pipeline_mode = #tpu.pipeline_mode<synchronous>, transform_indices = @transform_2, window_bounds = array<i64: 1, 128>}, {pipeline_mode = #tpu.pipeline_mode<synchronous>, transform_indices = @transform_3, window_bounds = array<i64: 1, 128>}, {pipeline_mode = #tpu.pipeline_mode<synchronous>, transform_indices = @transform_4, window_bounds = array<i64: 1, 128>}, {pipeline_mode = #tpu.pipeline_mode<synchronous>, transform_indices = @transform_5, window_bounds = array<i64: 128, 256>}, {pipeline_mode = #tpu.pipeline_mode<synchronous>, transform_indices = @transform_6, window_bounds = array<i64: 1, 256>}, {pipeline_mode = #tpu.pipeline_mode<synchronous>, transform_indices = @transform_7, window_bounds = array<i64: 256, 512>}, {pipeline_mode = #tpu.pipeline_mode<synchronous>, transform_indices = @transform_8, window_bounds = array<i64: 256, 512>}, {pipeline_mode = #tpu.pipeline_mode<synchronous>, transform_indices = @transform_9, window_bounds = array<i64: 1, 512>}, {pipeline_mode = #tpu.pipeline_mode<synchronous>, transform_indices = @transform_10, window_bounds = array<i64: 1, 512>}, {pipeline_mode = #tpu.pipeline_mode<synchronous>, transform_indices = @transform_11, window_bounds = array<i64: 1, 512>}, {pipeline_mode = #tpu.pipeline_mode<synchronous>, transform_indices = @transform_12, window_bounds = array<i64: 512, 32>}, {pipeline_mode = #tpu.pipeline_mode<synchronous>, transform_indices = @transform_13, window_bounds = array<i64: 1, 32>}, {transform_indices = @transform_14, window_bounds = array<i64: 32, 32>}]} {
    %c0 = arith.constant 0 : index
    %c0_0 = arith.constant 0 : index
    %c0_1 = arith.constant 0 : index
    %0 = vector.load %arg1[%c0, %c0_0, %c0_1] : memref<32x8x3xf32, #tpu.memory_space<vmem>>, vector<32x8x3xf32>
    %1 = vector.shape_cast %0 : vector<32x8x3xf32> to vector<256x3xf32>
    %c0_2 = arith.constant 0 : index
    %c0_3 = arith.constant 0 : index
    %2 = vector.load %arg2[%c0_2, %c0_3] : memref<3x128xf32, #tpu.memory_space<vmem>>, vector<3x128xf32>
    %3 = vector.extract_strided_slice %1 {offsets = [0, 0], sizes = [256, 1], strides = [1, 1]} : vector<256x3xf32> to vector<256x1xf32>
    %4 = vector.extract_strided_slice %2 {offsets = [0, 0], sizes = [1, 128], strides = [1, 1]} : vector<3x128xf32> to vector<1x128xf32>
    %5 = vector.broadcast %3 : vector<256x1xf32> to vector<256x128xf32>
    %6 = vector.broadcast %4 : vector<1x128xf32> to vector<256x128xf32>
    %7 = arith.mulf %5, %6 : vector<256x128xf32>
    %8 = vector.extract_strided_slice %1 {offsets = [0, 1], sizes = [256, 1], strides = [1, 1]} : vector<256x3xf32> to vector<256x1xf32>
    %9 = vector.extract_strided_slice %2 {offsets = [1, 0], sizes = [1, 128], strides = [1, 1]} : vector<3x128xf32> to vector<1x128xf32>
    %10 = vector.broadcast %8 : vector<256x1xf32> to vector<256x128xf32>
    %11 = vector.broadcast %9 : vector<1x128xf32> to vector<256x128xf32>
    %12 = arith.mulf %10, %11 : vector<256x128xf32>
    %13 = arith.addf %7, %12 : vector<256x128xf32>
    %14 = vector.extract_strided_slice %1 {offsets = [0, 2], sizes = [256, 1], strides = [1, 1]} : vector<256x3xf32> to vector<256x1xf32>
    %15 = vector.extract_strided_slice %2 {offsets = [2, 0], sizes = [1, 128], strides = [1, 1]} : vector<3x128xf32> to vector<1x128xf32>
    %16 = vector.broadcast %14 : vector<256x1xf32> to vector<256x128xf32>
    %17 = vector.broadcast %15 : vector<1x128xf32> to vector<256x128xf32>
    %18 = arith.mulf %16, %17 : vector<256x128xf32>
    %19 = arith.addf %13, %18 : vector<256x128xf32>
    %c0_4 = arith.constant 0 : index
    %c0_5 = arith.constant 0 : index
    %20 = vector.load %arg3[%c0_4, %c0_5] : memref<1x128xf32, #tpu.memory_space<vmem>>, vector<1x128xf32>
    %21 = vector.broadcast %20 : vector<1x128xf32> to vector<256x128xf32>
    %22 = arith.addf %19, %21 : vector<256x128xf32>
    %c0_6 = arith.constant 0 : index
    %c0_7 = arith.constant 0 : index
    %23 = vector.load %arg4[%c0_6, %c0_7] : memref<1x128xf32, #tpu.memory_space<vmem>>, vector<1x128xf32>
    %24 = vector.broadcast %23 : vector<1x128xf32> to vector<256x128xf32>
    %25 = arith.mulf %22, %24 : vector<256x128xf32>
    %c0_8 = arith.constant 0 : index
    %c0_9 = arith.constant 0 : index
    %26 = vector.load %arg5[%c0_8, %c0_9] : memref<1x128xf32, #tpu.memory_space<vmem>>, vector<1x128xf32>
    %27 = vector.broadcast %26 : vector<1x128xf32> to vector<256x128xf32>
    %28 = arith.addf %25, %27 : vector<256x128xf32>
    %cst = arith.constant 0.000000e+00 : f32
    %29 = vector.broadcast %cst : f32 to vector<256x128xf32>
    %30 = arith.maximumf %28, %29 : vector<256x128xf32>
    %31 = arith.truncf %30 : vector<256x128xf32> to vector<256x128xbf16>
    %c0_10 = arith.constant 0 : index
    %c0_11 = arith.constant 0 : index
    %32 = vector.load %arg6[%c0_10, %c0_11] : memref<128x256xbf16, #tpu.memory_space<vmem>>, vector<128x256xbf16>
    %cst_12 = arith.constant dense<0.000000e+00> : vector<256x256xf32>
    %33 = tpu.matmul %31, %32, %cst_12 {dimension_numbers = #tpu.dot_dimension_numbers<[1], [0], [0], [1], [0, 0, 1, 1], [], []>} : vector<256x128xbf16>, vector<128x256xbf16>, vector<256x256xf32> -> vector<256x256xf32>
    %c0_13 = arith.constant 0 : index
    %c0_14 = arith.constant 0 : index
    %34 = vector.load %arg7[%c0_13, %c0_14] : memref<1x256xf32, #tpu.memory_space<vmem>>, vector<1x256xf32>
    %35 = vector.broadcast %34 : vector<1x256xf32> to vector<256x256xf32>
    %36 = arith.addf %33, %35 : vector<256x256xf32>
    %37 = vector.shape_cast %36 : vector<256x256xf32> to vector<32x8x256xf32>
    %cst_15 = arith.constant dense<0xFF800000> : vector<32x256xf32>
    %38 = vector.multi_reduction <maximumf>, %37, %cst_15 [1] : vector<32x8x256xf32> to vector<32x256xf32>
    %39 = arith.truncf %38 : vector<32x256xf32> to vector<32x256xbf16>
    %c0_16 = arith.constant 0 : index
    %c0_17 = arith.constant 0 : index
    %40 = vector.load %arg8[%c0_16, %c0_17] : memref<256x512xbf16, #tpu.memory_space<vmem>>, vector<256x512xbf16>
    %cst_18 = arith.constant dense<0.000000e+00> : vector<32x512xf32>
    %41 = tpu.matmul %39, %40, %cst_18 {dimension_numbers = #tpu.dot_dimension_numbers<[1], [0], [0], [1], [0, 0, 1, 1], [], []>} : vector<32x256xbf16>, vector<256x512xbf16>, vector<32x512xf32> -> vector<32x512xf32>
    %42 = arith.truncf %36 : vector<256x256xf32> to vector<256x256xbf16>
    %c0_19 = arith.constant 0 : index
    %c0_20 = arith.constant 0 : index
    %43 = vector.load %arg9[%c0_19, %c0_20] : memref<256x512xbf16, #tpu.memory_space<vmem>>, vector<256x512xbf16>
    %cst_21 = arith.constant dense<0.000000e+00> : vector<256x512xf32>
    %44 = tpu.matmul %42, %43, %cst_21 {dimension_numbers = #tpu.dot_dimension_numbers<[1], [0], [0], [1], [0, 0, 1, 1], [], []>} : vector<256x256xbf16>, vector<256x512xbf16>, vector<256x512xf32> -> vector<256x512xf32>
    %45 = vector.shape_cast %44 : vector<256x512xf32> to vector<32x8x512xf32>
    %46 = vector.shape_cast %41 : vector<32x512xf32> to vector<32x1x512xf32>
    %47 = vector.broadcast %46 : vector<32x1x512xf32> to vector<32x8x512xf32>
    %48 = arith.addf %45, %47 : vector<32x8x512xf32>
    %c0_22 = arith.constant 0 : index
    %c0_23 = arith.constant 0 : index
    %49 = vector.load %arg10[%c0_22, %c0_23] : memref<1x512xf32, #tpu.memory_space<vmem>>, vector<1x512xf32>
    %50 = vector.shape_cast %49 : vector<1x512xf32> to vector<1x1x512xf32>
    %51 = vector.broadcast %50 : vector<1x1x512xf32> to vector<32x8x512xf32>
    %52 = arith.addf %48, %51 : vector<32x8x512xf32>
    %c0_24 = arith.constant 0 : index
    %c0_25 = arith.constant 0 : index
    %53 = vector.load %arg11[%c0_24, %c0_25] : memref<1x512xf32, #tpu.memory_space<vmem>>, vector<1x512xf32>
    %54 = vector.shape_cast %53 : vector<1x512xf32> to vector<1x1x512xf32>
    %55 = vector.broadcast %54 : vector<1x1x512xf32> to vector<32x8x512xf32>
    %56 = arith.mulf %52, %55 : vector<32x8x512xf32>
    %c0_26 = arith.constant 0 : index
    %c0_27 = arith.constant 0 : index
    %57 = vector.load %arg12[%c0_26, %c0_27] : memref<1x512xf32, #tpu.memory_space<vmem>>, vector<1x512xf32>
    %58 = vector.shape_cast %57 : vector<1x512xf32> to vector<1x1x512xf32>
    %59 = vector.broadcast %58 : vector<1x1x512xf32> to vector<32x8x512xf32>
    %60 = arith.addf %56, %59 : vector<32x8x512xf32>
    %cst_28 = arith.constant 0.000000e+00 : f32
    %61 = vector.broadcast %cst_28 : f32 to vector<32x8x512xf32>
    %62 = arith.maximumf %60, %61 : vector<32x8x512xf32>
    %63 = vector.shape_cast %62 : vector<32x8x512xf32> to vector<256x512xf32>
    %64 = arith.truncf %63 : vector<256x512xf32> to vector<256x512xbf16>
    %c0_29 = arith.constant 0 : index
    %c0_30 = arith.constant 0 : index
    %65 = vector.load %arg13[%c0_29, %c0_30] : memref<512x32xbf16, #tpu.memory_space<vmem>>, vector<512x32xbf16>
    %cst_31 = arith.constant dense<0.000000e+00> : vector<256x32xf32>
    %66 = tpu.matmul %64, %65, %cst_31 {dimension_numbers = #tpu.dot_dimension_numbers<[1], [0], [0], [1], [0, 0, 1, 1], [], []>} : vector<256x512xbf16>, vector<512x32xbf16>, vector<256x32xf32> -> vector<256x32xf32>
    %c0_32 = arith.constant 0 : index
    %c0_33 = arith.constant 0 : index
    %67 = vector.load %arg14[%c0_32, %c0_33] : memref<1x32xf32, #tpu.memory_space<vmem>>, vector<1x32xf32>
    %68 = vector.broadcast %67 : vector<1x32xf32> to vector<256x32xf32>
    %69 = arith.addf %66, %68 : vector<256x32xf32>
    %70 = vector.shape_cast %69 : vector<256x32xf32> to vector<32x8x32xf32>
    %cst_34 = arith.constant dense<0xFF800000> : vector<32x32xf32>
    %71 = vector.multi_reduction <maximumf>, %70, %cst_34 [1] : vector<32x8x32xf32> to vector<32x32xf32>
    %c0_35 = arith.constant 0 : index
    %c0_36 = arith.constant 0 : index
    %72 = vector.load %arg15[%c0_35, %c0_36] : memref<32x32xf32, #tpu.memory_space<vmem>>, vector<32x32xf32>
    tpu.vector_store %arg15[%c0_35, %c0_36], %71 {strides = array<i32>} : memref<32x32xf32, #tpu.memory_space<vmem>>, vector<32x32xf32>,
    return
  }
  func.func @transform_0(%arg0: i32) -> (i32, i32, i32) {
    %c0_i32 = arith.constant 0 : i32
    %c0_i32_0 = arith.constant 0 : i32
    %c0_i32_1 = arith.constant 0 : i32
    return %arg0, %c0_i32, %c0_i32_0 : i32, i32, i32
  }
  func.func @transform_1(%arg0: i32) -> (i32, i32) {
    %c0_i32 = arith.constant 0 : i32
    %c0_i32_0 = arith.constant 0 : i32
    %c0_i32_1 = arith.constant 0 : i32
    return %c0_i32, %c0_i32_0 : i32, i32
  }
  func.func @transform_2(%arg0: i32) -> (i32, i32) {
    %c0_i32 = arith.constant 0 : i32
    %c0_i32_0 = arith.constant 0 : i32
    %c0_i32_1 = arith.constant 0 : i32
    return %c0_i32, %c0_i32_0 : i32, i32
  }
  func.func @transform_3(%arg0: i32) -> (i32, i32) {
    %c0_i32 = arith.constant 0 : i32
    %c0_i32_0 = arith.constant 0 : i32
    %c0_i32_1 = arith.constant 0 : i32
    return %c0_i32, %c0_i32_0 : i32, i32
  }
  func.func @transform_4(%arg0: i32) -> (i32, i32) {
    %c0_i32 = arith.constant 0 : i32
    %c0_i32_0 = arith.constant 0 : i32
    %c0_i32_1 = arith.constant 0 : i32
    return %c0_i32, %c0_i32_0 : i32, i32
  }
  func.func @transform_5(%arg0: i32) -> (i32, i32) {
    %c0_i32 = arith.constant 0 : i32
    %c0_i32_0 = arith.constant 0 : i32
    %c0_i32_1 = arith.constant 0 : i32
    return %c0_i32, %c0_i32_0 : i32, i32
  }
  func.func @transform_6(%arg0: i32) -> (i32, i32) {
    %c0_i32 = arith.constant 0 : i32
    %c0_i32_0 = arith.constant 0 : i32
    %c0_i32_1 = arith.constant 0 : i32
    return %c0_i32, %c0_i32_0 : i32, i32
  }
  func.func @transform_7(%arg0: i32) -> (i32, i32) {
    %c0_i32 = arith.constant 0 : i32
    %c0_i32_0 = arith.constant 0 : i32
    %c0_i32_1 = arith.constant 0 : i32
    return %c0_i32, %c0_i32_0 : i32, i32
  }
  func.func @transform_8(%arg0: i32) -> (i32, i32) {
    %c0_i32 = arith.constant 0 : i32
    %c0_i32_0 = arith.constant 0 : i32
    %c0_i32_1 = arith.constant 0 : i32
    return %c0_i32, %c0_i32_0 : i32, i32
  }
  func.func @transform_9(%arg0: i32) -> (i32, i32) {
    %c0_i32 = arith.constant 0 : i32
    %c0_i32_0 = arith.constant 0 : i32
    %c0_i32_1 = arith.constant 0 : i32
    return %c0_i32, %c0_i32_0 : i32, i32
  }
  func.func @transform_10(%arg0: i32) -> (i32, i32) {
    %c0_i32 = arith.constant 0 : i32
    %c0_i32_0 = arith.constant 0 : i32
    %c0_i32_1 = arith.constant 0 : i32
    return %c0_i32, %c0_i32_0 : i32, i32
  }
  func.func @transform_11(%arg0: i32) -> (i32, i32) {
    %c0_i32 = arith.constant 0 : i32
    %c0_i32_0 = arith.constant 0 : i32
    %c0_i32_1 = arith.constant 0 : i32
    return %c0_i32, %c0_i32_0 : i32, i32
  }
  func.func @transform_12(%arg0: i32) -> (i32, i32) {
    %c0_i32 = arith.constant 0 : i32
    %c0_i32_0 = arith.constant 0 : i32
    %c0_i32_1 = arith.constant 0 : i32
    return %c0_i32, %c0_i32_0 : i32, i32
  }
  func.func @transform_13(%arg0: i32) -> (i32, i32) {
    %c0_i32 = arith.constant 0 : i32
    %c0_i32_0 = arith.constant 0 : i32
    %c0_i32_1 = arith.constant 0 : i32
    return %c0_i32, %c0_i32_0 : i32, i32
  }
  func.func @transform_14(%arg0: i32) -> (i32, i32) {
    %c0_i32 = arith.constant 0 : i32
    %c0_i32_0 = arith.constant 0 : i32
    return %arg0, %c0_i32 : i32, i32
  }
}

</mosaic_0001>

<bundles_post_ra>
// kernel: tpu_custom_call.1
= control target key start
LH: loop header
LB: loop body
LE: loop exit
PB: predicated region body
PF: predicated region fallthrough
CT: control target
= control target key end

     0   :  { %19 = vsyncpa [#allocation3], 0  ;;  %s9307_s0 = inlined_call_operand.vmem [shape: f32[32,8,3], index: 0, kind: input, shape index: {}]   ;;  %s9308_s1 = inlined_call_operand.vmem [shape: f32[3,128], index: 1, kind: input, shape index: {}]   ;;  %s9309_s2 = inlined_call_operand.vmem [shape: f32[1,128], index: 2, kind: input, shape index: {}]   ;;  %s9310_s3 = inlined_call_operand.vmem [shape: f32[1,128], index: 3, kind: input, shape index: {}]   ;;  %s9311_s4 = inlined_call_operand.vmem [shape: f32[1,128], index: 4, kind: input, shape index: {}]   ;;  %s9312_s5 = inlined_call_operand.hbm [shape: bf16[128,256], index: 5, kind: input, shape index: {}]   ;;  %s9313_s6 = inlined_call_operand.vmem [shape: f32[1,256], index: 6, kind: input, shape index: {}]   ;;  %s9314_s7 = inlined_call_operand.vmem [shape: bf16[256,512], index: 7, kind: input, shape index: {}]   ;;  %s9315_s8 = inlined_call_operand.hbm [shape: bf16[256,512], index: 8, kind: input, shape index: {}]   ;;  %s9316_s9 = inlined_call_operand.vmem [shape: f32[1,512], index: 9, kind: input, shape index: {}]   ;;  %s9317_s10 = inlined_call_operand.vmem [shape: f32[1,512], index: 10, kind: input, shape index: {}]   ;;  %s9318_s11 = inlined_call_operand.vmem [shape: f32[1,512], index: 11, kind: input, shape index: {}]   ;;  %s9319_s12 = inlined_call_operand.vmem [shape: bf16[512,32], index: 12, kind: input, shape index: {}]   ;;  %s9320_s13 = inlined_call_operand.vmem [shape: f32[1,32], index: 13, kind: input, shape index: {}]   ;;  %s9321_s14 = inlined_call_operand.hbm [shape: f32[32,32], index: 14, kind: output, shape index: {}]  }
   0x1   :  { %20 = vsyncpa [#allocation6], 0 }
   0x2   :  { %21 = vsyncpa [#allocation4], 0  ;;  %s6505_s29 = smov [#allocation2]   ;;  %s6433_s17 = scalar_lea.hbm %s9312_s5, 2048 }
   0x3   :  { %s37_s30 = sshll.u32 %s6505_s29, 4  ;;  %p6434_p0 = scmp.ne.s32.totalorder %s9312_s5, %s6433_s17  ;;  %s38_s30 = int_to_ptr.vmem [resolvable:$true] %s37_s30 }
   0x4   :  { %p6437_p1 = scmp.lt.u32.totalorder %s6433_s17, %s9312_s5 }
   0x6   :  { %p6439_p2 = pnand %p6437_p1, %p6434_p0 }
   0x8   :  { %6442 = shalt.err (!%p6439_p2)
}
   0x9   :  { %s6443_s22 = scalar_lea.vmem %s38_s30, 2048  ;;  %p6448_p4 = scmp.lt.s32.totalorder %s38_s30, %s38_s30 }
   0xa   :  { %p6444_p3 = scmp.ne.s32.totalorder %s38_s30, %s6443_s22  ;;  %p6449_p5 = scmp.lt.s32.totalorder %s6443_s22, %s6443_s22 }
   0xc   :  { %p6450_p6 = por %p6449_p5, %p6448_p4 }
   0xe   :  { %p6451_p7 = pnand %p6450_p6, %p6444_p3 }
  0x10   :  { %6454 = shalt.err (!%p6451_p7)
}
  0x11   :  { %s6506_s23 = smov 128   ;;  %s6507_s24 = smov 8  }
  0x12   :  { %43 = dma.hbm_to_vmem [thread:$0]  %s9312_s5, 2048, %s38_s30, [#allocation3], %s6506_s23, %s6506_s23, %s6507_s24  }
  0x13   :  { %s6508_s27 = smov [#allocation5]   ;;  %s6455_s16 = scalar_lea.hbm %s9315_s8, 8192 }
  0x14   :  { %s53_s28 = sshll.u32 %s6508_s27, 4  ;;  %p6456_p8 = scmp.ne.s32.totalorder %s9315_s8, %s6455_s16  ;;  %s54_s28 = int_to_ptr.vmem [resolvable:$true] %s53_s28 }
  0x15   :  { %p6459_p9 = scmp.lt.u32.totalorder %s6455_s16, %s9315_s8 }
  0x17   :  { %p6461_p10 = pnand %p6459_p9, %p6456_p8 }
  0x19   :  { %6464 = shalt.err (!%p6461_p10)
}
  0x1a   :  { %s6465_s21 = scalar_lea.vmem %s54_s28, 8192  ;;  %p6470_p12 = scmp.lt.s32.totalorder %s54_s28, %s54_s28 }
  0x1b   :  { %p6466_p11 = scmp.ne.s32.totalorder %s54_s28, %s6465_s21  ;;  %p6471_p13 = scmp.lt.s32.totalorder %s6465_s21, %s6465_s21 }
  0x1d   :  { %p6472_p0 = por %p6471_p13, %p6470_p12 }
  0x1f   :  { %p6473_p1 = pnand %p6472_p0, %p6466_p11 }
  0x21   :  { %6476 = shalt.err (!%p6473_p1)
}
  0x22   :  { %s6509_s5 = smov 256   ;;  %s6510_s30 = smov 16  }
  0x23   :  { %59 = dma.hbm_to_vmem [thread:$0]  %s9315_s8, 8192, %s54_s28, [#allocation6], %s6509_s5, %s6509_s5, %s6510_s30  }
  0x24   :  { %6499 = dma.done.wait [#allocation3], 2048  }
  0x25   :  { %6500 = vsyncadd [#allocation3], 4294965248 }
  0x26   :  { %6501 = dma.done.wait [#allocation6], 8192  }
  0x27   :  { %6502 = vsyncadd [#allocation6], 4294959104  ;;  %v6511_v0 = vmov 2   ;;  %v6512_v1 = vmov 1   ;;  %v6513_v2 = vmov 0   ;;  %v77_v3 = vld [vmem:[%s9307_s0] sm:$0xff]  ;;  %v270_v47 = vlaneseq }
  0x28   :  { %6129 = vset.pattern.permute.xlu0 %v6511_v0  ;;  %6128 = vset.pattern.permute.xlu1 %v6512_v1  ;;  %v79_v4 = vld [vmem:[%s9307_s0 + $0x10] sm:$0xff]  ;;  %v78_v5 = vld [vmem:[%s9307_s0 + $0x8] sm:$0xff]  ;;  %v81_v6 = vld [vmem:[%s9307_s0 + $0x20] sm:$0xff]  ;;  %vm1804_vm0 = vcmask 1041409   ;;  %vm1806_vm1 = vcmask 1042434   ;;  %vm1808_vm2 = vcmask 1043459  }
  0x29   :  { %1003 = vmatprep.mubr.bf16.mxu0 %v6513_v2  ;;  %503 = vperm.xlu0 %6129, %v77_v3   ;;  %v6182_v7 = vld [vmem:[#allocation2 + $0x4] ss:$8 sps:$4 sm:$0xff]   ;;  %v6184_v8 = vld [vmem:[#allocation2] ss:$8 sps:$4 sm:$0xff]   ;;  %v6185_v9 = vld [vmem:[#allocation2 + $0x14] ss:$8 sps:$4 sm:$0xff]  }
  0x2a   :  { %307 = vperm.xlu1 %6128, %v77_v3   ;;  %971 = vmatprep.subr.bf16.mxu0 %v6182_v7  ;;  %v6187_v10 = vld [vmem:[#allocation2 + $0x10] ss:$8 sps:$4 sm:$0xff]   ;;  %v6188_v11 = vld [vmem:[#allocation2 + $0x24] ss:$8 sps:$4 sm:$0xff]   ;;  %v6190_v12 = vld [vmem:[#allocation2 + $0x20] ss:$8 sps:$4 sm:$0xff]  }
  0x2b   :  { %972 = vmatpush1.bf16.msra.mxu0 %v6184_v8  ;;  %v6191_v13 = vld [vmem:[#allocation2 + $0x34] ss:$8 sps:$4 sm:$0xff]   ;;  %v6193_v15 = vld [vmem:[#allocation2 + $0x30] ss:$8 sps:$4 sm:$0xff]   ;;  %v6194_v16 = vld [vmem:[#allocation2 + $0x44] ss:$8 sps:$4 sm:$0xff]  }
  0x2c   :  { %973 = vmatprep.subr.bf16.mxu0 %v6185_v9  ;;  %v80_v14 = vld [vmem:[%s9307_s0 + $0x18] sm:$0xff]  ;;  %v82_v17 = vld [vmem:[%s9307_s0 + $0x28] sm:$0xff]  ;;  %v83_v30 = vld [vmem:[%s9307_s0 + $0x30] sm:$0xff]  ;;  %v6778_v50 = vshrl.u32 %v270_v47, 7  ;;  %vm1810_vm3 = vcmask 1044484   ;;  %vm1812_vm4 = vcmask 1045509  }
  0x2d   :  { %511 = vperm.xlu0 %6129, %v79_v4   ;;  %v6196_v18 = vld [vmem:[#allocation2 + $0x40] ss:$8 sps:$4 sm:$0xff]   ;;  %v6197_v19 = vld [vmem:[#allocation2 + $0x54] ss:$8 sps:$4 sm:$0xff]   ;;  %v6199_v21 = vld [vmem:[#allocation2 + $0x50] ss:$8 sps:$4 sm:$0xff]  }
  0x2e   :  { %311 = vperm.xlu1 %6128, %v78_v5   ;;  %v84_v20 = vld [vmem:[%s9307_s0 + $0x38] sm:$0xff]  ;;  %v6200_v22 = vld [vmem:[#allocation2 + $0x64] ss:$8 sps:$4 sm:$0xff]   ;;  %v6202_v24 = vld [vmem:[#allocation2 + $0x60] ss:$8 sps:$4 sm:$0xff]   ;;  %9374 = vst [vmem:[#allocation11_spill] sm:$0xff] %v6778_v50 }
  0x2f   :  { %974 = vmatpush1.bf16.msra.mxu0 %v6187_v10  ;;  %v86_v23 = vld [vmem:[%s9307_s0 + $0x48] sm:$0xff]  ;;  %v6203_v25 = vld [vmem:[#allocation2 + $0x74] ss:$8 sps:$4 sm:$0xff]   ;;  %v6205_v27 = vld [vmem:[#allocation2 + $0x70] ss:$8 sps:$4 sm:$0xff]   ;;  %v6787_v54 = vsub.s32 1, %v6778_v50 }
  0x30   :  { %975 = vmatprep.subr.bf16.mxu0 %v6188_v11  ;;  %v6654_v26 = vld [vmem:[%s9307_s0 + $0x58] sm:$0xff]  ;;  %v6659_v28 = vld [vmem:[%s9307_s0 + $0x68] sm:$0xff]  ;;  %v85_v31 = vld [vmem:[%s9307_s0 + $0x40] sm:$0xff]  ;;  %v6790_v55 = vsub.s32 0, %v6778_v50  ;;  %v6797_v57 = vsub.s32 2, %v6778_v50  ;;  %vm1814_vm5 = vcmask 1046534  }
  0x31   :  { %519 = vperm.xlu0 %6129, %v81_v6   ;;  %v6666_v29 = vld [vmem:[%s9307_s0 + $0x78] sm:$0xff]  ;;  %v87_v32 = vld [vmem:[%s9307_s0 + $0x50] sm:$0xff]  ;;  %v89_v33 = vld [vmem:[%s9307_s0 + $0x60] sm:$0xff]  ;;  %9375 = vst [vmem:[#allocation12_spill] sm:$0xff] %v6787_v54  ;;  %vm1816_vm6 = vcmask 1047559   ;;  %vm5386_vm7 = vcmask 261120  }
  0x32   :  { %6130 = vset.pattern.permute.xlu1 %v6511_v0  ;;  %v91_v34 = vld [vmem:[%s9307_s0 + $0x70] sm:$0xff]  ;;  %v6693_v35 = vld [vmem:[%s9307_s0 + $0x80] sm:$0xff]  ;;  %v6713_v38 = vld [vmem:[%s9307_s0 + $0x88] sm:$0xff]  ;;  %9376 = vst [vmem:[#allocation13_spill] sm:$0xff] %v6790_v55 }
  0x33   :  { %507 = vperm.xlu1 %6130, %v78_v5   ;;  %976 = vmatpush1.bf16.msra.mxu0 %v6190_v12  ;;  %v6698_v36 = vld [vmem:[%s9307_s0 + $0x90] sm:$0xff]  ;;  %v6707_v37 = vld [vmem:[%s9307_s0 + $0xa0] sm:$0xff]  ;;  %v6721_v39 = vld [vmem:[%s9307_s0 + $0x98] sm:$0xff]  ;;  %9377 = vst [vmem:[#allocation14_spill] sm:$0xff] %v6797_v57 }
  0x34   :  { %977 = vmatprep.subr.bf16.mxu0 %v6191_v13  ;;  %v6727_v40 = vld [vmem:[%s9307_s0 + $0xa8] sm:$0xff]  ;;  %v6734_v41 = vld [vmem:[%s9307_s0 + $0xb8] sm:$0xff]  ;;  %v6756_v44 = vld [vmem:[%s9307_s0 + $0xb0] sm:$0xff] }
  0x35   :  { %6136 = vset.pattern.permute.xlu0 %v6513_v2  ;;  %v6741_v42 = vld [vmem:[%s9307_s0 + $0xc8] sm:$0xff]  ;;  %v6748_v43 = vld [vmem:[%s9307_s0 + $0xd8] sm:$0xff]  ;;  %v6764_v45 = vld [vmem:[%s9307_s0 + $0xc0] sm:$0xff] }
  0x36   :  { %112 = vperm.xlu0 %6136, %v77_v3   ;;  %v6771_v46 = vld [vmem:[%s9307_s0 + $0xd0] sm:$0xff]  ;;  %v6784_v53 = vld [vmem:[%s9307_s0 + $0xe0] sm:$0xff]  ;;  %v6819_v7 = vld [vmem:[%s9307_s0 + $0xe8] sm:$0xff] }
  0x37   :  { %6131 = vset.pattern.permute.xlu1 %v6513_v2  ;;  %978 = vmatpush1.bf16.msra.mxu0 %v6193_v15  ;;  %v109_v56 = vld [vmem:[%s9308_s1] sm:$0x7]  ;;  %v6858_v47 = vld [vmem:[%s9307_s0 + $0xf8] sm:$0xff] }
  0x38   :  { %122 = vperm.xlu1 %6131, %v79_v4   ;;  %979 = vmatprep.subr.bf16.mxu0 %v6194_v16  ;;  %v6802_v60 = vrot.slane %v109_v56, %v6787_v54  ;;  %v6806_v61 = vrot.slane %v109_v56, %v6790_v55  ;;  %v6810_v62 = vrot.slane %v109_v56, %v6797_v57  ;;  %v6826_v9 = vld [vmem:[%s9309_s2] ss:$0 sm:$0xff] }
  0x3a   :  { %117 = vperm.xlu0 %6136, %v78_v5  }
  0x3b   :  { %980 = vmatpush1.bf16.msra.mxu0 %v6196_v18 }
  0x3c   :  { %6132 = vset.pattern.permute.xlu1 %v6512_v1  ;;  %981 = vmatprep.subr.bf16.mxu0 %v6197_v19 }
  0x3d   :  { %315 = vperm.xlu1 %6132, %v79_v4  }
  0x3e   :  { %127 = vperm.xlu0 %6136, %v80_v14  }
  0x3f   :  { %982 = vmatpush1.bf16.msra.mxu0 %v6199_v21 }
  0x40   :  { %983 = vmatprep.subr.bf16.mxu0 %v6200_v22 }
  0x41   :  { %319 = vperm.xlu1 %6132, %v80_v14  }
  0x42   :  { %137 = vperm.xlu0 %6136, %v82_v17  }
  0x43   :  { %984 = vmatpush1.bf16.msra.mxu0 %v6202_v24 }
  0x44   :  { %985 = vmatprep.subr.bf16.mxu0 %v6203_v25 }
  0x45   :  { %6133 = vset.pattern.permute.xlu1 %v6511_v0 }
  0x46   :  { %515 = vperm.xlu1 %6133, %v80_v14   ;;  %147 = vperm.xlu0 %6136, %v84_v20  }
  0x47   :  { %986 = vmatpush1.bf16.msra.mxu0 %v6205_v27  ;;  %v6846_v27 = vld [vmem:[%s9311_s4] ss:$0 sm:$0xff] }
  0x4a   :  { %6134 = vset.pattern.permute.xlu1 %v6513_v2  ;;  %157 = vperm.xlu0 %6136, %v86_v23  }
  0x4b   :  { %132 = vperm.xlu1 %6134, %v81_v6  }
  0x4e   :  { %167 = vperm.xlu0 %6136, %v6654_v26  }
  0x4f   :  { %6135 = vset.pattern.permute.xlu1 %v6512_v1 }
  0x50   :  { %323 = vperm.xlu1 %6135, %v81_v6  }
  0x52   :  { %177 = vperm.xlu0 %6136, %v6659_v28  }
  0x54   :  { %327 = vperm.xlu1 %6135, %v82_v17  }
  0x56   :  { %187 = vperm.xlu0 %6136, %v6666_v29  }
  0x58   :  { %6137 = vset.pattern.permute.xlu1 %v6511_v0 }
  0x59   :  { %523 = vperm.xlu1 %6137, %v82_v17   ;;  %v6836_v17 = vld [vmem:[%s9310_s3] ss:$0 sm:$0xff] }
  0x5a   :  { %6151 = vset.pattern.permute.xlu0 %v6511_v0 }
  0x5b   :  { %527 = vperm.xlu0 %6151, %v83_v30  }
  0x5d   :  { %6138 = vset.pattern.permute.xlu1 %v6513_v2 }
  0x5e   :  { %142 = vperm.xlu1 %6138, %v83_v30  }
  0x5f   :  { %535 = vperm.xlu0 %6151, %v85_v31  }
  0x62   :  { %6139 = vset.pattern.permute.xlu1 %v6512_v1 }
  0x63   :  { %331 = vperm.xlu1 %6139, %v83_v30   ;;  %543 = vperm.xlu0 %6151, %v87_v32  }
  0x67   :  { %335 = vperm.xlu1 %6139, %v84_v20   ;;  %551 = vperm.xlu0 %6151, %v89_v33  }
  0x6b   :  { %6140 = vset.pattern.permute.xlu1 %v6511_v0  ;;  %559 = vperm.xlu0 %6151, %v91_v34  }
  0x6c   :  { %531 = vperm.xlu1 %6140, %v84_v20  }
  0x6f   :  { %567 = vperm.xlu0 %6151, %v6693_v35  }
  0x70   :  { %6141 = vset.pattern.permute.xlu1 %v6513_v2 }
  0x71   :  { %152 = vperm.xlu1 %6141, %v85_v31  }
  0x73   :  { %575 = vperm.xlu0 %6151, %v6698_v36  }
  0x75   :  { %6142 = vset.pattern.permute.xlu1 %v6512_v1 }
  0x76   :  { %339 = vperm.xlu1 %6142, %v85_v31  }
  0x77   :  { %583 = vperm.xlu0 %6151, %v6707_v37  }
  0x7a   :  { %343 = vperm.xlu1 %6142, %v86_v23  }
  0x7b   :  { %6162 = vset.pattern.permute.xlu0 %v6513_v2 }
  0x7c   :  { %197 = vperm.xlu0 %6162, %v6713_v38  }
  0x7e   :  { %6143 = vset.pattern.permute.xlu1 %v6511_v0 }
  0x7f   :  { %539 = vperm.xlu1 %6143, %v86_v23  }
  0x80   :  { %207 = vperm.xlu0 %6162, %v6721_v39  }
  0x83   :  { %6144 = vset.pattern.permute.xlu1 %v6513_v2 }
  0x84   :  { %162 = vperm.xlu1 %6144, %v87_v32   ;;  %217 = vperm.xlu0 %6162, %v6727_v40  }
  0x88   :  { %6145 = vset.pattern.permute.xlu1 %v6512_v1  ;;  %227 = vperm.xlu0 %6162, %v6734_v41  }
  0x89   :  { %347 = vperm.xlu1 %6145, %v87_v32  }
  0x8c   :  { %237 = vperm.xlu0 %6162, %v6741_v42  }
  0x8d   :  { %351 = vperm.xlu1 %6145, %v6654_v26  }
  0x90   :  { %247 = vperm.xlu0 %6162, %v6748_v43  }
  0x91   :  { %6146 = vset.pattern.permute.xlu1 %v6511_v0 }
  0x92   :  { %547 = vperm.xlu1 %6146, %v6654_v26  }
  0x94   :  { %6171 = vset.pattern.permute.xlu0 %v6511_v0 }
  0x95   :  { %591 = vperm.xlu0 %6171, %v6756_v44  }
  0x96   :  { %6147 = vset.pattern.permute.xlu1 %v6513_v2 }
  0x97   :  { %172 = vperm.xlu1 %6147, %v89_v33  }
  0x99   :  { %599 = vperm.xlu0 %6171, %v6764_v45  }
  0x9b   :  { %6148 = vset.pattern.permute.xlu1 %v6512_v1 }
  0x9c   :  { %355 = vperm.xlu1 %6148, %v89_v33  }
  0x9d   :  { %607 = vperm.xlu0 %6171, %v6771_v46  }
  0xa0   :  { %359 = vperm.xlu1 %6148, %v6659_v28  }
  0xa1   :  { %615 = vperm.xlu0 %6171, %v6784_v53  }
  0xa4   :  { %6149 = vset.pattern.permute.xlu1 %v6511_v0 }
  0xa5   :  { %555 = vperm.xlu1 %6149, %v6659_v28   ;;  %6176 = vset.pattern.permute.xlu0 %v6513_v2 }
  0xa6   :  { %257 = vperm.xlu0 %6176, %v6819_v7  }
  0xa8   :  { %v504_v49 = vpop.permute.xlu0 %503 }
  0xa9   :  { %6150 = vset.pattern.permute.xlu1 %v6513_v2  ;;  %v308_v48 = vpop.permute.xlu1 %307  ;;  %v634_v4 = vmul.f32 %v6810_v62, %v504_v49 }
  0xaa   :  { %182 = vperm.xlu1 %6150, %v91_v34   ;;  %v438_v3 = vmul.f32 %v6802_v60, %v308_v48  ;;  %267 = vperm.xlu0 %6176, %v6858_v47  }
  0xac   :  { %v512_v52 = vpop.permute.xlu0 %511 }
  0xad   :  { %v312_v51 = vpop.permute.xlu1 %311  ;;  %v636_v14 = vmul.f32 %v6810_v62, %v512_v52 }
  0xae   :  { %6152 = vset.pattern.permute.xlu1 %v6512_v1  ;;  %v439_v11 = vmul.f32 %v6802_v60, %v312_v51  ;;  %6180 = vset.pattern.permute.xlu0 %v6511_v0 }
  0xaf   :  { %363 = vperm.xlu1 %6152, %v91_v34  }
  0xb0   :  { %v6799_v58 = vpop.permute.xlu0 %519 }
  0xb2   :  { %v508_v59 = vpop.permute.xlu1 %507 }
  0xb3   :  { %367 = vperm.xlu1 %6152, %v6666_v29   ;;  %v635_v15 = vmul.f32 %v6810_v62, %v508_v59 }
  0xb5   :  { %v113_v63 = vpop.permute.xlu0 %112 }
  0xb6   :  { %v274_v5 = vmul.f32 %v6806_v61, %v113_v63 }
  0xb7   :  { %6153 = vset.pattern.permute.xlu1 %v6511_v0  ;;  %v123_v6 = vpop.permute.xlu1 %122 }
  0xb8   :  { %563 = vperm.xlu1 %6153, %v6666_v29   ;;  %v470_v8 = vadd.f32 %v438_v3, %v274_v5  ;;  %v276_v19 = vmul.f32 %v6806_v61, %v123_v6  ;;  %v6871_v5 = vld [vmem:[%s9307_s0 + $0xf0] sm:$0xff] }
  0xb9   :  { %v118_v10 = vpop.permute.xlu0 %117  ;;  %623 = vperm.xlu0 %6180, %v6871_v5  }
  0xba   :  { %v666_v12 = vadd.f32 %v634_v4, %v470_v8  ;;  %v275_v13 = vmul.f32 %v6806_v61, %v118_v10 }
  0xbc   :  { %6154 = vset.pattern.permute.xlu1 %v6513_v2  ;;  %v316_v16 = vpop.permute.xlu1 %315  ;;  %v705_v18 = vadd.f32 %v6826_v9, %v666_v12  ;;  %v471_v20 = vadd.f32 %v439_v11, %v275_v13 }
  0xbd   :  { %v440_v21 = vmul.f32 %v6802_v60, %v316_v16  ;;  %192 = vperm.xlu1 %6154, %v6693_v35   ;;  %v128_v22 = vpop.permute.xlu0 %127  ;;  %v638_v16 = vmul.f32 %v6810_v62, %v6799_v58 }
  0xbe   :  { %v667_v23 = vadd.f32 %v635_v15, %v471_v20  ;;  %v744_v25 = vmul.f32 %v6836_v17, %v705_v18  ;;  %v277_v30 = vmul.f32 %v6806_v61, %v128_v22 }
  0xbf   :  { %v472_v24 = vadd.f32 %v440_v21, %v276_v19 }
  0xc0   :  { %v320_v26 = vpop.permute.xlu1 %319  ;;  %v706_v28 = vadd.f32 %v6826_v9, %v667_v23  ;;  %v783_v34 = vadd.f32 %v6846_v27, %v744_v25 }
  0xc1   :  { %v668_v29 = vadd.f32 %v636_v14, %v472_v24  ;;  %6155 = vset.pattern.permute.xlu1 %v6512_v1  ;;  %v441_v31 = vmul.f32 %v6802_v60, %v320_v26  ;;  %v138_v32 = vpop.permute.xlu0 %137 }
  0xc2   :  { %371 = vperm.xlu1 %6155, %v6693_v35   ;;  %v745_v33 = vmul.f32 %v6836_v17, %v706_v28  ;;  %v815_v59 = vmax.f32 %v783_v34, 0.0  ;;  %v279_v58 = vmul.f32 %v6806_v61, %v138_v32 }
  0xc3   :  { %v707_v48 = vadd.f32 %v6826_v9, %v668_v29  ;;  %v473_v52 = vadd.f32 %v441_v31, %v277_v30 }
  0xc4   :  { %v784_v51 = vadd.f32 %v6846_v27, %v745_v33 }
  0xc5   :  { %v516_v49 = vpop.permute.xlu1 %515  ;;  %v6865_v56 = vpop.permute.xlu0 %147  ;;  %v746_v4 = vmul.f32 %v6836_v17, %v707_v48 }
  0xc6   :  { %v637_v35 = vmul.f32 %v6810_v62, %v516_v49  ;;  %375 = vperm.xlu1 %6155, %v6713_v38   ;;  %v816_v63 = vmax.f32 %v784_v51, 0.0 }
  0xc7   :  { %v785_v13 = vadd.f32 %v6846_v27, %v746_v4 }
  0xc8   :  { %v669_v3 = vadd.f32 %v637_v35, %v473_v52  ;;  %v847_v6 = vpack.c.bf16 %v816_v63, %v815_v59 }
  0xc9   :  { %v6877_v11 = vpop.permute.xlu0 %157  ;;  %v817_v20 = vmax.f32 %v785_v13, 0.0 }
  0xca   :  { %v708_v8 = vadd.f32 %v6826_v9, %v669_v3  ;;  %6156 = vset.pattern.permute.xlu1 %v6511_v0  ;;  %v133_v10 = vpop.permute.xlu1 %132  ;;  %1004 = vmatmul.mubr.bf16.vlgmr.msra.gmra.mrb[0].mxu0 %v847_v6 }
  0xcb   :  { %571 = vperm.xlu1 %6156, %v6713_v38   ;;  %1013 = vmatprep.mubr.bf16.mxu0 %v6513_v2  ;;  %v278_v19 = vmul.f32 %v6806_v61, %v133_v10 }
  0xcc   :  { %v747_v12 = vmul.f32 %v6836_v17, %v708_v8 }
  0xcd   :  { %v6884_v15 = vpop.permute.xlu0 %167 }
  0xce   :  { %v786_v14 = vadd.f32 %v6846_v27, %v747_v12 }
  0xcf   :  { %6157 = vset.pattern.permute.xlu1 %v6513_v2  ;;  %v324_v18 = vpop.permute.xlu1 %323 }
  0xd0   :  { %v442_v38 = vmul.f32 %v6802_v60, %v324_v18  ;;  %202 = vperm.xlu1 %6157, %v6698_v36   ;;  %v818_v21 = vmax.f32 %v786_v14, 0.0 }
  0xd1   :  { %v6892_v25 = vpop.permute.xlu0 %177 }
  0xd2   :  { %v474_v22 = vadd.f32 %v442_v38, %v278_v19  ;;  %v848_v23 = vpack.c.bf16 %v818_v21, %v817_v20 }
  0xd3   :  { %v328_v24 = vpop.permute.xlu1 %327 }
  0xd4   :  { %v670_v26 = vadd.f32 %v638_v16, %v474_v22  ;;  %6158 = vset.pattern.permute.xlu1 %v6512_v1  ;;  %1014 = vmatmul.mubr.bf16.gmra.mrb[4].mxu0 %v848_v23  ;;  %v443_v28 = vmul.f32 %v6802_v60, %v328_v24  ;;  %v281_v16 = vmul.f32 %v6806_v61, %v6865_v56 }
  0xd5   :  { %379 = vperm.xlu1 %6158, %v6698_v36   ;;  %1023 = vmatprep.mubr.bf16.mxu0 %v6513_v2  ;;  %v6902_v34 = vpop.permute.xlu0 %187 }
  0xd6   :  { %v709_v29 = vadd.f32 %v6826_v9, %v670_v26  ;;  %v475_v31 = vadd.f32 %v443_v28, %v279_v58 }
  0xd8   :  { %v524_v30 = vpop.permute.xlu1 %523  ;;  %v748_v49 = vmul.f32 %v6836_v17, %v709_v29 }
  0xd9   :  { %v639_v33 = vmul.f32 %v6810_v62, %v524_v30  ;;  %383 = vperm.xlu1 %6158, %v6721_v39  }
  0xda   :  { %v528_v52 = vpop.permute.xlu0 %527  ;;  %v787_v35 = vadd.f32 %v6846_v27, %v748_v49 }
  0xdb   :  { %v671_v48 = vadd.f32 %v639_v33, %v475_v31  ;;  %v640_v3 = vmul.f32 %v6810_v62, %v528_v52  ;;  %v283_v52 = vmul.f32 %v6806_v61, %v6877_v11 }
  0xdc   :  { %v819_v8 = vmax.f32 %v787_v35, 0.0 }
  0xdd   :  { %v710_v32 = vadd.f32 %v6826_v9, %v671_v48  ;;  %6159 = vset.pattern.permute.xlu1 %v6511_v0  ;;  %v143_v36 = vpop.permute.xlu1 %142 }
  0xde   :  { %579 = vperm.xlu1 %6159, %v6721_v39   ;;  %v280_v4 = vmul.f32 %v6806_v61, %v143_v36  ;;  %v536_v26 = vpop.permute.xlu0 %535 }
  0xdf   :  { %v749_v51 = vmul.f32 %v6836_v17, %v710_v32  ;;  %v642_v30 = vmul.f32 %v6810_v62, %v536_v26 }
  0xe1   :  { %v788_v59 = vadd.f32 %v6846_v27, %v749_v51 }
  0xe2   :  { %6160 = vset.pattern.permute.xlu1 %v6513_v2  ;;  %v332_v63 = vpop.permute.xlu1 %331 }
  0xe3   :  { %v444_v6 = vmul.f32 %v6802_v60, %v332_v63  ;;  %212 = vperm.xlu1 %6160, %v6707_v37   ;;  %v820_v39 = vmax.f32 %v788_v59, 0.0 }
  0xe5   :  { %v476_v10 = vadd.f32 %v444_v6, %v280_v4  ;;  %v849_v12 = vpack.c.bf16 %v820_v39, %v819_v8 }
  0xe6   :  { %v336_v13 = vpop.permute.xlu1 %335 }
  0xe7   :  { %v672_v14 = vadd.f32 %v640_v3, %v476_v10  ;;  %6161 = vset.pattern.permute.xlu1 %v6512_v1  ;;  %1024 = vmatmul.mubr.bf16.gmra.mrb[8].mxu0 %v849_v12  ;;  %v445_v18 = vmul.f32 %v6802_v60, %v336_v13  ;;  %v544_v10 = vpop.permute.xlu0 %543 }
  0xe8   :  { %387 = vperm.xlu1 %6161, %v6707_v37   ;;  %1033 = vmatprep.mubr.bf16.mxu0 %v6513_v2 }
  0xe9   :  { %v711_v19 = vadd.f32 %v6826_v9, %v672_v14  ;;  %v477_v20 = vadd.f32 %v445_v18, %v281_v16  ;;  %v644_v16 = vmul.f32 %v6810_v62, %v544_v10  ;;  %v6208_v10 = vld [vmem:[#allocation5 + $0x4] ss:$16 sps:$4 sm:$0xff]  }
  0xea   :  { %2717 = vmatprep.subr.bf16.mxu0 %v6208_v10 }
  0xeb   :  { %v532_v38 = vpop.permute.xlu1 %531  ;;  %v750_v22 = vmul.f32 %v6836_v17, %v711_v19 }
  0xec   :  { %v641_v21 = vmul.f32 %v6810_v62, %v532_v38  ;;  %391 = vperm.xlu1 %6161, %v6727_v40  }
  0xed   :  { %v789_v58 = vadd.f32 %v6846_v27, %v750_v22 }
  0xee   :  { %v673_v23 = vadd.f32 %v641_v21, %v477_v20 }
  0xef   :  { %v821_v48 = vmax.f32 %v789_v58, 0.0 }
  0xf0   :  { %v712_v24 = vadd.f32 %v6826_v9, %v673_v23  ;;  %6163 = vset.pattern.permute.xlu1 %v6511_v0  ;;  %v153_v56 = vpop.permute.xlu1 %152 }
  0xf1   :  { %587 = vperm.xlu1 %6163, %v6727_v40   ;;  %v282_v31 = vmul.f32 %v6806_v61, %v153_v56 }
  0xf2   :  { %v751_v37 = vmul.f32 %v6836_v17, %v712_v24  ;;  %v285_v24 = vmul.f32 %v6806_v61, %v6884_v15 }
  0xf4   :  { %v790_v28 = vadd.f32 %v6846_v27, %v751_v37 }
  0xf5   :  { %6164 = vset.pattern.permute.xlu1 %v6513_v2  ;;  %v340_v29 = vpop.permute.xlu1 %339 }
  0xf6   :  { %v446_v33 = vmul.f32 %v6802_v60, %v340_v29  ;;  %222 = vperm.xlu1 %6164, %v6756_v44   ;;  %v822_v40 = vmax.f32 %v790_v28, 0.0 }
  0xf8   :  { %v478_v49 = vadd.f32 %v446_v33, %v282_v31  ;;  %v850_v32 = vpack.c.bf16 %v822_v40, %v821_v48  ;;  %v552_v33 = vpop.permute.xlu0 %551 }
  0xf9   :  { %v344_v36 = vpop.permute.xlu1 %343 }
  0xfa   :  { %v674_v51 = vadd.f32 %v642_v30, %v478_v49  ;;  %6165 = vset.pattern.permute.xlu1 %v6512_v1  ;;  %1034 = vmatmul.mubr.bf16.gmra.mrb[12].mxu0 %v850_v32  ;;  %v447_v35 = vmul.f32 %v6802_v60, %v344_v36  ;;  %v646_v32 = vmul.f32 %v6810_v62, %v552_v33 }
  0xfb   :  { %395 = vperm.xlu1 %6165, %v6756_v44   ;;  %1043 = vmatprep.mubr.bf16.mxu0 %v6513_v2 }
  0xfc   :  { %v713_v59 = vadd.f32 %v6826_v9, %v674_v51  ;;  %v479_v3 = vadd.f32 %v447_v35, %v283_v52 }
  0xfe   :  { %v540_v63 = vpop.permute.xlu1 %539  ;;  %v752_v6 = vmul.f32 %v6836_v17, %v713_v59 }
  0xff   :  { %v643_v4 = vmul.f32 %v6810_v62, %v540_v63  ;;  %399 = vperm.xlu1 %6165, %v6734_v41  }
 0x100   :  { %v791_v12 = vadd.f32 %v6846_v27, %v752_v6 }
 0x101   :  { %v675_v8 = vadd.f32 %v643_v4, %v479_v3  ;;  %v287_v4 = vmul.f32 %v6806_v61, %v6892_v25 }
 0x102   :  { %v823_v38 = vmax.f32 %v791_v12, 0.0  ;;  %v6206_v12 = vld [vmem:[#allocation5] ss:$16 sps:$4 sm:$0xff]  }
 0x103   :  { %v714_v39 = vadd.f32 %v6826_v9, %v675_v8  ;;  %6166 = vset.pattern.permute.xlu1 %v6511_v0  ;;  %v163_v11 = vpop.permute.xlu1 %162  ;;  %2718 = vmatpush1.bf16.msra.mxu0 %v6206_v12 }
 0x104   :  { %595 = vperm.xlu1 %6166, %v6734_v41   ;;  %v284_v18 = vmul.f32 %v6806_v61, %v163_v11 }
 0x105   :  { %v753_v44 = vmul.f32 %v6836_v17, %v714_v39 }
 0x107   :  { %v792_v13 = vadd.f32 %v6846_v27, %v753_v44 }
 0x108   :  { %6167 = vset.pattern.permute.xlu1 %v6513_v2  ;;  %v348_v14 = vpop.permute.xlu1 %347 }
 0x109   :  { %v448_v19 = vmul.f32 %v6802_v60, %v348_v14  ;;  %232 = vperm.xlu1 %6167, %v6764_v45   ;;  %v824_v41 = vmax.f32 %v792_v13, 0.0 }
 0x10b   :  { %v480_v20 = vadd.f32 %v448_v19, %v284_v18  ;;  %v851_v21 = vpack.c.bf16 %v824_v41, %v823_v38  ;;  %v560_v18 = vpop.permute.xlu0 %559 }
 0x10c   :  { %v352_v22 = vpop.permute.xlu1 %351 }
 0x10d   :  { %v676_v23 = vadd.f32 %v644_v16, %v480_v20  ;;  %6168 = vset.pattern.permute.xlu1 %v6512_v1  ;;  %1044 = vmatmul.mubr.bf16.gmra.mrb[16].mxu0 %v851_v21  ;;  %v449_v56 = vmul.f32 %v6802_v60, %v352_v22  ;;  %v648_v20 = vmul.f32 %v6810_v62, %v560_v18  ;;  %v6211_v21 = vld [vmem:[#allocation5 + $0x24] ss:$16 sps:$4 sm:$0xff]  }
 0x10e   :  { %403 = vperm.xlu1 %6168, %v6764_v45   ;;  %1053 = vmatprep.mubr.bf16.mxu0 %v6513_v2 }
 0x10f   :  { %v715_v37 = vadd.f32 %v6826_v9, %v676_v23  ;;  %v481_v58 = vadd.f32 %v449_v56, %v285_v24  ;;  %v6209_v56 = vld [vmem:[#allocation5 + $0x20] ss:$16 sps:$4 sm:$0xff]   ;;  %2719 = vmatprep.subr.bf16.mxu0 %v6211_v21  ;;  %v6229_v21 = vld [vmem:[#allocation5 + $0xe4] ss:$16 sps:$4 sm:$0xff]  }
 0x110   :  { %2720 = vmatpush1.bf16.msra.mxu0 %v6209_v56  ;;  %v6232_v56 = vld [vmem:[#allocation5 + $0x104] ss:$16 sps:$4 sm:$0xff]  }
 0x111   :  { %v548_v26 = vpop.permute.xlu1 %547  ;;  %v754_v29 = vmul.f32 %v6836_v17, %v715_v37 }
 0x112   :  { %v645_v28 = vmul.f32 %v6810_v62, %v548_v26  ;;  %407 = vperm.xlu1 %6168, %v6741_v42  }
 0x113   :  { %v793_v48 = vadd.f32 %v6846_v27, %v754_v29  ;;  %v6214_v29 = vld [vmem:[#allocation5 + $0x44] ss:$16 sps:$4 sm:$0xff]  }
 0x114   :  { %v677_v30 = vadd.f32 %v645_v28, %v481_v58  ;;  %v568_v28 = vpop.permute.xlu0 %567  ;;  %2721 = vmatprep.subr.bf16.mxu0 %v6214_v29  ;;  %v6235_v29 = vld [vmem:[#allocation5 + $0x124] ss:$16 sps:$4 sm:$0xff]  }
 0x115   :  { %v825_v52 = vmax.f32 %v793_v48, 0.0  ;;  %v6217_v48 = vld [vmem:[#allocation5 + $0x64] ss:$16 sps:$4 sm:$0xff]  }
 0x116   :  { %v716_v31 = vadd.f32 %v6826_v9, %v677_v30  ;;  %6169 = vset.pattern.permute.xlu1 %v6511_v0  ;;  %v173_v15 = vpop.permute.xlu1 %172 }
 0x117   :  { %603 = vperm.xlu1 %6169, %v6741_v42   ;;  %v286_v36 = vmul.f32 %v6806_v61, %v173_v15  ;;  %v289_v15 = vmul.f32 %v6806_v61, %v6902_v34 }
 0x118   :  { %v755_v45 = vmul.f32 %v6836_v17, %v716_v31  ;;  %v6212_v31 = vld [vmem:[#allocation5 + $0x40] ss:$16 sps:$4 sm:$0xff]  }
 0x119   :  { %2722 = vmatpush1.bf16.msra.mxu0 %v6212_v31 }
 0x11a   :  { %v794_v40 = vadd.f32 %v6846_v27, %v755_v45  ;;  %2723 = vmatprep.subr.bf16.mxu0 %v6217_v48 }
 0x11b   :  { %6170 = vset.pattern.permute.xlu1 %v6513_v2  ;;  %v356_v49 = vpop.permute.xlu1 %355 }
 0x11c   :  { %v450_v51 = vmul.f32 %v6802_v60, %v356_v49  ;;  %242 = vperm.xlu1 %6170, %v6771_v46   ;;  %v826_v42 = vmax.f32 %v794_v40, 0.0  ;;  %v6215_v49 = vld [vmem:[#allocation5 + $0x60] ss:$16 sps:$4 sm:$0xff]  }
 0x11d   :  { %2724 = vmatpush1.bf16.msra.mxu0 %v6215_v49 }
 0x11e   :  { %v482_v35 = vadd.f32 %v450_v51, %v286_v36  ;;  %v852_v59 = vpack.c.bf16 %v826_v42, %v825_v52  ;;  %v7009_v51 = vpop.permute.xlu0 %575  ;;  %v6220_v52 = vld [vmem:[#allocation5 + $0x84] ss:$16 sps:$4 sm:$0xff]   ;;  %v6218_v42 = vld [vmem:[#allocation5 + $0x80] ss:$16 sps:$4 sm:$0xff]  }
 0x11f   :  { %v360_v63 = vpop.permute.xlu1 %359  ;;  %2725 = vmatprep.subr.bf16.mxu0 %v6220_v52 }
 0x120   :  { %v678_v3 = vadd.f32 %v646_v32, %v482_v35  ;;  %6172 = vset.pattern.permute.xlu1 %v6512_v1  ;;  %1054 = vmatmul.mubr.bf16.gmra.mrb[20].mxu0 %v852_v59  ;;  %v451_v6 = vmul.f32 %v6802_v60, %v360_v63 }
 0x121   :  { %411 = vperm.xlu1 %6172, %v6771_v46   ;;  %1063 = vmatprep.mubr.bf16.mxu0 %v6513_v2 }
 0x122   :  { %v717_v8 = vadd.f32 %v6826_v9, %v678_v3  ;;  %v483_v11 = vadd.f32 %v451_v6, %v287_v4  ;;  %v7016_v3 = vpop.permute.xlu0 %583  ;;  %2726 = vmatpush1.bf16.msra.mxu0 %v6218_v42 }
 0x124   :  { %v556_v39 = vpop.permute.xlu1 %555  ;;  %v756_v13 = vmul.f32 %v6836_v17, %v717_v8  ;;  %v6223_v8 = vld [vmem:[#allocation5 + $0xa4] ss:$16 sps:$4 sm:$0xff]  }
 0x125   :  { %v647_v44 = vmul.f32 %v6810_v62, %v556_v39  ;;  %415 = vperm.xlu1 %6172, %v6748_v43   ;;  %v650_v39 = vmul.f32 %v6810_v62, %v568_v28  ;;  %2727 = vmatprep.subr.bf16.mxu0 %v6223_v8  ;;  %v6244_v8 = vld [vmem:[#allocation5 + $0x184] ss:$16 sps:$4 sm:$0xff]  }
 0x126   :  { %v795_v19 = vadd.f32 %v6846_v27, %v756_v13 }
 0x127   :  { %v679_v14 = vadd.f32 %v647_v44, %v483_v11  ;;  %v6221_v44 = vld [vmem:[#allocation5 + $0xa0] ss:$16 sps:$4 sm:$0xff]  }
 0x128   :  { %2728 = vmatpush1.bf16.msra.mxu0 %v6221_v44 }
 0x129   :  { %v718_v25 = vadd.f32 %v6826_v9, %v679_v14  ;;  %6173 = vset.pattern.permute.xlu1 %v6511_v0  ;;  %v183_v46 = vpop.permute.xlu1 %182 }
 0x12a   :  { %611 = vperm.xlu1 %6173, %v6748_v43   ;;  %v288_v22 = vmul.f32 %v6806_v61, %v183_v46  ;;  %v827_v43 = vmax.f32 %v795_v19, 0.0  ;;  %v6224_v19 = vld [vmem:[#allocation5 + $0xc0] ss:$16 sps:$4 sm:$0xff]  }
 0x12b   :  { %v757_v16 = vmul.f32 %v6836_v17, %v718_v25  ;;  %v198_v25 = vpop.permute.xlu0 %197 }
 0x12d   :  { %v796_v38 = vadd.f32 %v6846_v27, %v757_v16  ;;  %v6226_v16 = vld [vmem:[#allocation5 + $0xc4] ss:$16 sps:$4 sm:$0xff]  }
 0x12e   :  { %6174 = vset.pattern.permute.xlu1 %v6513_v2  ;;  %v364_v41 = vpop.permute.xlu1 %363  ;;  %2729 = vmatprep.subr.bf16.mxu0 %v6226_v16  ;;  %v6245_v16 = vld [vmem:[#allocation5 + $0x1a0] ss:$16 sps:$4 sm:$0xff]  }
 0x12f   :  { %v452_v23 = vmul.f32 %v6802_v60, %v364_v41  ;;  %252 = vperm.xlu1 %6174, %v6784_v53   ;;  %v828_v24 = vmax.f32 %v796_v38, 0.0  ;;  %v291_v41 = vmul.f32 %v6806_v61, %v198_v25  ;;  %2730 = vmatpush1.bf16.msra.mxu0 %v6224_v19 }
 0x130   :  { %2731 = vmatprep.subr.bf16.mxu0 %v6229_v21  ;;  %v6248_v21 = vld [vmem:[#allocation5 + $0x1c0] ss:$16 sps:$4 sm:$0xff]  }
 0x131   :  { %v484_v37 = vadd.f32 %v452_v23, %v288_v22  ;;  %v853_v26 = vpack.c.bf16 %v828_v24, %v827_v43  ;;  %v6227_v23 = vld [vmem:[#allocation5 + $0xe0] ss:$16 sps:$4 sm:$0xff]  }
 0x132   :  { %v368_v58 = vpop.permute.xlu1 %367 }
 0x133   :  { %v680_v30 = vadd.f32 %v648_v20, %v484_v37  ;;  %6175 = vset.pattern.permute.xlu1 %v6512_v1  ;;  %1064 = vmatmul.mubr.bf16.gmra.mrb[24].mxu0 %v853_v26  ;;  %v453_v45 = vmul.f32 %v6802_v60, %v368_v58 }
 0x134   :  { %419 = vperm.xlu1 %6175, %v6784_v53   ;;  %1073 = vmatprep.mubr.bf16.mxu0 %v6513_v2 }
 0x135   :  { %v719_v33 = vadd.f32 %v6826_v9, %v680_v30  ;;  %v485_v32 = vadd.f32 %v453_v45, %v289_v15  ;;  %2732 = vmatpush1.bf16.msra.mxu0 %v6227_v23  ;;  %v6233_v15 = vld [vmem:[#allocation5 + $0x120] ss:$16 sps:$4 sm:$0xff]  }
 0x136   :  { %2733 = vmatprep.subr.bf16.mxu0 %v6232_v56 }
 0x137   :  { %v564_v40 = vpop.permute.xlu1 %563  ;;  %v758_v34 = vmul.f32 %v6836_v17, %v719_v33  ;;  %v652_v33 = vmul.f32 %v6810_v62, %v7009_v51 }
 0x138   :  { %v649_v36 = vmul.f32 %v6810_v62, %v564_v40  ;;  %423 = vperm.xlu1 %6175, %v6819_v7   ;;  %v6238_v40 = vld [vmem:[#allocation5 + $0x144] ss:$16 sps:$4 sm:$0xff]  }
 0x139   :  { %v797_v4 = vadd.f32 %v6846_v27, %v758_v34 }
 0x13a   :  { %v681_v53 = vadd.f32 %v649_v36, %v485_v32  ;;  %v6236_v36 = vld [vmem:[#allocation5 + $0x140] ss:$16 sps:$4 sm:$0xff]  }
 0x13b   :  { %v829_v12 = vmax.f32 %v797_v4, 0.0  ;;  %v6239_v4 = vld [vmem:[#allocation5 + $0x160] ss:$16 sps:$4 sm:$0xff]  }
 0x13c   :  { %v720_v35 = vadd.f32 %v6826_v9, %v681_v53  ;;  %6177 = vset.pattern.permute.xlu1 %v6511_v0  ;;  %v193_v59 = vpop.permute.xlu1 %192  ;;  %v208_v53 = vpop.permute.xlu0 %207 }
 0x13d   :  { %619 = vperm.xlu1 %6177, %v6819_v7   ;;  %v290_v10 = vmul.f32 %v6806_v61, %v193_v59  ;;  %v293_v51 = vmul.f32 %v6806_v61, %v208_v53 }
 0x13e   :  { %v759_v63 = vmul.f32 %v6836_v17, %v720_v35  ;;  %v6241_v35 = vld [vmem:[#allocation5 + $0x164] ss:$16 sps:$4 sm:$0xff]  }
 0x140   :  { %v798_v6 = vadd.f32 %v6846_v27, %v759_v63 }
 0x141   :  { %6178 = vset.pattern.permute.xlu1 %v6513_v2  ;;  %v372_v11 = vpop.permute.xlu1 %371 }
 0x142   :  { %v454_v7 = vmul.f32 %v6802_v60, %v372_v11  ;;  %262 = vperm.xlu1 %6178, %v6871_v5   ;;  %v830_v13 = vmax.f32 %v798_v6, 0.0 }
 0x144   :  { %v486_v14 = vadd.f32 %v454_v7, %v290_v10  ;;  %v854_v46 = vpack.c.bf16 %v830_v13, %v829_v12  ;;  %v6242_v10 = vld [vmem:[#allocation5 + $0x180] ss:$16 sps:$4 sm:$0xff]   ;;  %v218_v7 = vpop.permute.xlu0 %217  ;;  %v6247_v12 = vld [vmem:[#allocation5 + $0x1a4] ss:$16 sps:$4 sm:$0xff]  }
 0x145   :  { %v376_v18 = vpop.permute.xlu1 %375 }
 0x146   :  { %v682_v38 = vadd.f32 %v650_v39, %v486_v14  ;;  %6179 = vset.pattern.permute.xlu1 %v6512_v1  ;;  %1074 = vmatmul.mubr.bf16.gmra.mrb[28].mxu0 %v854_v46  ;;  %v455_v20 = vmul.f32 %v6802_v60, %v376_v18  ;;  %v6250_v18 = vld [vmem:[#allocation5 + $0x1c4] ss:$16 sps:$4 sm:$0xff]  }
 0x147   :  { %427 = vperm.xlu1 %6179, %v6871_v5   ;;  %1083 = vmatprep.mubr.bf16.mxu0 %v6513_v2  ;;  %v6230_v5 = vld [vmem:[#allocation5 + $0x100] ss:$16 sps:$4 sm:$0xff]  }
 0x148   :  { %v721_v22 = vadd.f32 %v6826_v9, %v682_v38  ;;  %v487_v24 = vadd.f32 %v455_v20, %v291_v41  ;;  %2734 = vmatpush1.bf16.msra.mxu0 %v6230_v5  ;;  %v228_v41 = vpop.permute.xlu0 %227 }
 0x149   :  { %2735 = vmatprep.subr.bf16.mxu0 %v6235_v29 }
 0x14a   :  { %v572_v43 = vpop.permute.xlu1 %571  ;;  %v760_v26 = vmul.f32 %v6836_v17, %v721_v22  ;;  %v654_v22 = vmul.f32 %v6810_v62, %v7016_v3  ;;  %v295_v3 = vmul.f32 %v6806_v61, %v218_v7  ;;  %v297_v7 = vmul.f32 %v6806_v61, %v228_v41 }
 0x14b   :  { %v651_v1 = vmul.f32 %v6810_v62, %v572_v43  ;;  %431 = vperm.xlu1 %6179, %v6858_v47  }
 0x14c   :  { %v799_v31 = vadd.f32 %v6846_v27, %v760_v26  ;;  %2736 = vmatpush1.bf16.msra.mxu0 %v6233_v15  ;;  %v7058_v29 = vpop.permute.xlu0 %237 }
 0x14d   :  { %v683_v37 = vadd.f32 %v651_v1, %v487_v24  ;;  %2737 = vmatprep.subr.bf16.mxu0 %v6238_v40 }
 0x14e   :  { %v831_v32 = vmax.f32 %v799_v31, 0.0 }
 0x14f   :  { %v722_v58 = vadd.f32 %v6826_v9, %v683_v37  ;;  %6181 = vset.pattern.permute.xlu1 %v6511_v0  ;;  %v203_v28 = vpop.permute.xlu1 %202  ;;  %v6253_v37 = vld [vmem:[#allocation5 + $0x1e4] ss:$16 sps:$4 sm:$0xff]  }
 0x150   :  { %627 = vperm.xlu1 %6181, %v6858_v47   ;;  %v292_v0 = vmul.f32 %v6806_v61, %v203_v28  ;;  %2738 = vmatpush1.bf16.msra.mxu0 %v6236_v36  ;;  %v7065_v40 = vpop.permute.xlu0 %247 }
 0x151   :  { %v761_v30 = vmul.f32 %v6836_v17, %v722_v58  ;;  %2739 = vmatprep.subr.bf16.mxu0 %v6241_v35  ;;  %v6251_v58 = vld [vmem:[#allocation5 + $0x1e0] ss:$16 sps:$4 sm:$0xff]  }
 0x153   :  { %v800_v45 = vadd.f32 %v6846_v27, %v761_v30 }
 0x154   :  { %v380_v48 = vpop.permute.xlu1 %379  ;;  %2740 = vmatpush1.bf16.msra.mxu0 %v6239_v4 }
 0x155   :  { %v456_v49 = vmul.f32 %v6802_v60, %v380_v48  ;;  %v832_v47 = vmax.f32 %v800_v45, 0.0  ;;  %2741 = vmatprep.subr.bf16.mxu0 %v6244_v8 }
 0x157   :  { %v488_v34 = vadd.f32 %v456_v49, %v292_v0  ;;  %v855_v52 = vpack.c.bf16 %v832_v47, %v831_v32 }
 0x158   :  { %v384_v42 = vpop.permute.xlu1 %383  ;;  %2742 = vmatpush1.bf16.msra.mxu0 %v6242_v10 }
 0x159   :  { %v684_v59 = vadd.f32 %v652_v33, %v488_v34  ;;  %1084 = vmatmul.mubr.bf16.gmra.mrb[32].mxu0 %v855_v52  ;;  %v457_v63 = vmul.f32 %v6802_v60, %v384_v42  ;;  %2743 = vmatprep.subr.bf16.mxu0 %v6247_v12  ;;  %v592_v34 = vpop.permute.xlu0 %591 }
 0x15a   :  { %1093 = vmatprep.mubr.bf16.mxu0 %v6513_v2  ;;  %v656_v35 = vmul.f32 %v6810_v62, %v592_v34  ;;  %v6272_v34 = vld [vmem:[%s9314_s7 + $0xc4] ss:$16 sps:$4 sm:$0xff]  }
 0x15b   :  { %v723_v6 = vadd.f32 %v6826_v9, %v684_v59  ;;  %v489_v11 = vadd.f32 %v457_v63, %v293_v51 }
 0x15c   :  { %2744 = vmatpush1.bf16.msra.mxu0 %v6245_v16 }
 0x15d   :  { %v580_v39 = vpop.permute.xlu1 %579  ;;  %v762_v14 = vmul.f32 %v6836_v17, %v723_v6  ;;  %2745 = vmatprep.subr.bf16.mxu0 %v6250_v18  ;;  %v6254_v6 = vld [vmem:[%s9314_s7 + $0x4] ss:$16 sps:$4 sm:$0xff]  }
 0x15e   :  { %v653_v44 = vmul.f32 %v6810_v62, %v580_v39  ;;  %2195 = vmatprep.subr.bf16.mxu1 %v6254_v6 }
 0x15f   :  { %v801_v38 = vadd.f32 %v6846_v27, %v762_v14  ;;  %v6259_v14 = vld [vmem:[%s9314_s7 + $0x20] ss:$16 sps:$4 sm:$0xff]  }
 0x160   :  { %v685_v13 = vadd.f32 %v653_v44, %v489_v11  ;;  %2746 = vmatpush1.bf16.msra.mxu0 %v6248_v21  ;;  %v6256_v11 = vld [vmem:[%s9314_s7] ss:$16 sps:$4 sm:$0xff]   ;;  %v6263_v21 = vld [vmem:[%s9314_s7 + $0x64] ss:$16 sps:$4 sm:$0xff]  }
 0x161   :  { %v833_v1 = vmax.f32 %v801_v38, 0.0  ;;  %2747 = vmatprep.subr.bf16.mxu0 %v6253_v37  ;;  %2196 = vmatpush1.bf16.msra.mxu1 %v6256_v11  ;;  %v6262_v38 = vld [vmem:[%s9314_s7 + $0x40] ss:$16 sps:$4 sm:$0xff]  }
 0x162   :  { %v724_v25 = vadd.f32 %v6826_v9, %v685_v13  ;;  %v213_v46 = vpop.permute.xlu1 %212  ;;  %v6257_v13 = vld [vmem:[%s9314_s7 + $0x24] ss:$16 sps:$4 sm:$0xff]  }
 0x163   :  { %v294_v43 = vmul.f32 %v6806_v61, %v213_v46  ;;  %2197 = vmatprep.subr.bf16.mxu1 %v6257_v13  ;;  %v6281_v13 = vld [vmem:[%s9314_s7 + $0x124] ss:$16 sps:$4 sm:$0xff]  }
 0x164   :  { %v763_v19 = vmul.f32 %v6836_v17, %v724_v25  ;;  %2748 = vmatpush1.bf16.msra.mxu0 %v6251_v58 }
 0x165   :  { %2198 = vmatpush1.bf16.msra.mxu1 %v6259_v14 }
 0x166   :  { %v802_v20 = vadd.f32 %v6846_v27, %v763_v19  ;;  %v6260_v19 = vld [vmem:[%s9314_s7 + $0x44] ss:$16 sps:$4 sm:$0xff]  }
 0x167   :  { %v388_v23 = vpop.permute.xlu1 %387  ;;  %2199 = vmatprep.subr.bf16.mxu1 %v6260_v19 }
 0x168   :  { %v458_v24 = vmul.f32 %v6802_v60, %v388_v23  ;;  %v834_v56 = vmax.f32 %v802_v20, 0.0 }
 0x169   :  { %2200 = vmatpush1.bf16.msra.mxu1 %v6262_v38  ;;  %v6283_v38 = vld [vmem:[%s9314_s7 + $0x120] ss:$16 sps:$4 sm:$0xff]  }
 0x16a   :  { %v490_v26 = vadd.f32 %v458_v24, %v294_v43  ;;  %v856_v5 = vpack.c.bf16 %v834_v56, %v833_v1  ;;  %v6266_v24 = vld [vmem:[%s9314_s7 + $0x84] ss:$16 sps:$4 sm:$0xff]   ;;  %2201 = vmatprep.subr.bf16.mxu1 %v6263_v21  ;;  %v600_v56 = vpop.permute.xlu0 %599 }
 0x16b   :  { %v392_v28 = vpop.permute.xlu1 %391 }
 0x16c   :  { %v686_v30 = vadd.f32 %v654_v22, %v490_v26  ;;  %1094 = vmatmul.mubr.bf16.gmra.mrb[36].mxu0 %v856_v5  ;;  %v459_v31 = vmul.f32 %v6802_v60, %v392_v28  ;;  %v6265_v22 = vld [vmem:[%s9314_s7 + $0x60] ss:$16 sps:$4 sm:$0xff]   ;;  %v658_v28 = vmul.f32 %v6810_v62, %v600_v56 }
 0x16d   :  { %1103 = vmatprep.mubr.bf16.mxu0 %v6513_v2  ;;  %2202 = vmatpush1.bf16.msra.mxu1 %v6265_v22  ;;  %v6268_v26 = vld [vmem:[%s9314_s7 + $0x80] ss:$16 sps:$4 sm:$0xff]  }
 0x16e   :  { %v725_v15 = vadd.f32 %v6826_v9, %v686_v30  ;;  %v491_v33 = vadd.f32 %v459_v31, %v295_v3  ;;  %2203 = vmatprep.subr.bf16.mxu1 %v6266_v24 }
 0x170   :  { %v588_v45 = vpop.permute.xlu1 %587  ;;  %v764_v49 = vmul.f32 %v6836_v17, %v725_v15 }
 0x171   :  { %v655_v48 = vmul.f32 %v6810_v62, %v588_v45  ;;  %2204 = vmatpush1.bf16.msra.mxu1 %v6268_v26 }
 0x172   :  { %v803_v53 = vadd.f32 %v6846_v27, %v764_v49  ;;  %v6271_v49 = vld [vmem:[%s9314_s7 + $0xa0] ss:$16 sps:$4 sm:$0xff]  }
 0x173   :  { %v687_v0 = vadd.f32 %v655_v48, %v491_v33  ;;  %v6269_v48 = vld [vmem:[%s9314_s7 + $0xa4] ss:$16 sps:$4 sm:$0xff]  }
 0x174   :  { %v835_v63 = vmax.f32 %v803_v53, 0.0  ;;  %2205 = vmatprep.subr.bf16.mxu1 %v6269_v48  ;;  %v6274_v53 = vld [vmem:[%s9314_s7 + $0xc0] ss:$16 sps:$4 sm:$0xff]  }
 0x175   :  { %v726_v32 = vadd.f32 %v6826_v9, %v687_v0  ;;  %v223_v47 = vpop.permute.xlu1 %222  ;;  %2206 = vmatpush1.bf16.msra.mxu1 %v6271_v49 }
 0x176   :  { %v296_v59 = vmul.f32 %v6806_v61, %v223_v47  ;;  %v299_v47 = vmul.f32 %v6806_v61, %v7058_v29  ;;  %2207 = vmatprep.subr.bf16.mxu1 %v6272_v34  ;;  %v6286_v34 = vld [vmem:[%s9314_s7 + $0x140] ss:$16 sps:$4 sm:$0xff]  }
 0x177   :  { %v765_v36 = vmul.f32 %v6836_v17, %v726_v32 }
 0x179   :  { %v804_v52 = vadd.f32 %v6846_v27, %v765_v36  ;;  %2208 = vmatpush1.bf16.msra.mxu1 %v6274_v53  ;;  %v301_v53 = vmul.f32 %v6806_v61, %v7065_v40 }
 0x17a   :  { %v396_v42 = vpop.permute.xlu1 %395 }
 0x17b   :  { %v460_v51 = vmul.f32 %v6802_v60, %v396_v42  ;;  %v836_v4 = vmax.f32 %v804_v52, 0.0 }
 0x17d   :  { %v492_v8 = vadd.f32 %v460_v51, %v296_v59  ;;  %v857_v39 = vpack.c.bf16 %v836_v4, %v835_v63  ;;  %v879_v59 = vld [vmem:[%s9313_s6] sm:$0x3]  ;;  %v6275_v51 = vld [vmem:[%s9314_s7 + $0xe4] ss:$16 sps:$4 sm:$0xff]  }
 0x17e   :  { %v400_v44 = vpop.permute.xlu1 %399  ;;  %v6277_v4 = vld [vmem:[%s9314_s7 + $0xe0] ss:$16 sps:$4 sm:$0xff]   ;;  %2209 = vmatprep.subr.bf16.mxu1 %v6275_v51 }
 0x17f   :  { %v688_v10 = vadd.f32 %v656_v35, %v492_v8  ;;  %1104 = vmatmul.mubr.bf16.gmra.mrb[40].mxu0 %v857_v39  ;;  %v461_v12 = vmul.f32 %v6802_v60, %v400_v44  ;;  %v6278_v8 = vld [vmem:[%s9314_s7 + $0x104] ss:$16 sps:$4 sm:$0xff]   ;;  %v7151_v44 = vrot.slane %v879_v59, %v6790_v55  ;;  %2210 = vmatpush1.bf16.msra.mxu1 %v6277_v4  ;;  %v7194_v51 = vld [vmem:[%s9309_s2] ss:$0 sm:$0xff] }
 0x180   :  { %1113 = vmatprep.mubr.bf16.mxu0 %v6513_v2  ;;  %2211 = vmatprep.subr.bf16.mxu1 %v6278_v8 }
 0x181   :  { %v727_v25 = vadd.f32 %v6826_v9, %v688_v10  ;;  %v493_v16 = vadd.f32 %v461_v12, %v297_v7  ;;  %v608_v10 = vpop.permute.xlu0 %607  ;;  %v6280_v7 = vld [vmem:[%s9314_s7 + $0x100] ss:$16 sps:$4 sm:$0xff]   ;;  %v7157_v12 = vrot.slane %v879_v59, %v6787_v54 }
 0x182   :  { %v660_v22 = vmul.f32 %v6810_v62, %v608_v10 }
 0x183   :  { %v596_v46 = vpop.permute.xlu1 %595  ;;  %v766_v41 = vmul.f32 %v6836_v17, %v727_v25  ;;  %2212 = vmatpush1.bf16.msra.mxu1 %v6280_v7  ;;  %v6287_v7 = vld [vmem:[%s9314_s7 + $0x164] ss:$16 sps:$4 sm:$0xff]  }
 0x184   :  { %v657_v18 = vmul.f32 %v6810_v62, %v596_v46  ;;  %2213 = vmatprep.subr.bf16.mxu1 %v6281_v13 }
 0x185   :  { %v805_v37 = vadd.f32 %v6846_v27, %v766_v41  ;;  %v616_v19 = vpop.permute.xlu0 %615 }
 0x186   :  { %v689_v20 = vadd.f32 %v657_v18, %v493_v16 }
 0x187   :  { %v837_v31 = vmax.f32 %v805_v37, 0.0  ;;  %2214 = vmatpush1.bf16.msra.mxu1 %v6283_v38 }
 0x188   :  { %v728_v23 = vadd.f32 %v6826_v9, %v689_v20  ;;  %v233_v43 = vpop.permute.xlu1 %232 }
 0x189   :  { %v298_v30 = vmul.f32 %v6806_v61, %v233_v43 }
 0x18a   :  { %v767_v1 = vmul.f32 %v6836_v17, %v728_v23 }
 0x18c   :  { %v806_v5 = vadd.f32 %v6846_v27, %v767_v1 }
 0x18d   :  { %v404_v58 = vpop.permute.xlu1 %403 }
 0x18e   :  { %v462_v3 = vmul.f32 %v6802_v60, %v404_v58  ;;  %v838_v15 = vmax.f32 %v806_v5, 0.0 }
 0x190   :  { %v494_v45 = vadd.f32 %v462_v3, %v298_v30  ;;  %v858_v33 = vpack.c.bf16 %v838_v15, %v837_v31 }
 0x191   :  { %v408_v0 = vpop.permute.xlu1 %407 }
 0x192   :  { %v690_v32 = vadd.f32 %v658_v28, %v494_v45  ;;  %1114 = vmatmul.mubr.bf16.gmra.mrb[44].mxu0 %v858_v33  ;;  %v463_v36 = vmul.f32 %v6802_v60, %v408_v0  ;;  %v258_v33 = vpop.permute.xlu0 %257  ;;  %v6284_v0 = vld [vmem:[%s9314_s7 + $0x144] ss:$16 sps:$4 sm:$0xff]  }
 0x193   :  { %1123 = vmatprep.mubr.bf16.mxu0 %v6513_v2  ;;  %2215 = vmatprep.subr.bf16.mxu1 %v6284_v0 }
 0x194   :  { %v729_v52 = vadd.f32 %v6826_v9, %v690_v32  ;;  %v495_v35 = vadd.f32 %v463_v36, %v299_v47  ;;  %2216 = vmatpush1.bf16.msra.mxu1 %v6286_v34 }
 0x195   :  { %2217 = vmatprep.subr.bf16.mxu1 %v6287_v7 }
 0x196   :  { %v604_v42 = vpop.permute.xlu1 %603  ;;  %v768_v6 = vmul.f32 %v6836_v17, %v729_v52 }
 0x197   :  { %v659_v29 = vmul.f32 %v6810_v62, %v604_v42 }
 0x198   :  { %v807_v25 = vadd.f32 %v6846_v27, %v768_v6  ;;  %v7198_v6 = vmul.f32 %v6806_v61, %v258_v33 }
 0x199   :  { %v691_v63 = vadd.f32 %v659_v29, %v495_v35  ;;  %v7189_v35 = vmul.f32 %v6810_v62, %v616_v19  ;;  %v6289_v19 = vld [vmem:[%s9314_s7 + $0x160] ss:$16 sps:$4 sm:$0xff]  }
 0x19a   :  { %v839_v26 = vmax.f32 %v807_v25, 0.0  ;;  %2218 = vmatpush1.bf16.msra.mxu1 %v6289_v19 }
 0x19b   :  { %v730_v39 = vadd.f32 %v6826_v9, %v691_v63  ;;  %v243_v11 = vpop.permute.xlu1 %242 }
 0x19c   :  { %v300_v41 = vmul.f32 %v6806_v61, %v243_v11 }
 0x19d   :  { %v769_v9 = vmul.f32 %v6836_v17, %v730_v39  ;;  %v1005_v14 = vpop.f32.mrb[0].mxu0 }
 0x19e   :  { %v1006_v46 = vadd.f32 %v1005_v14, %v7151_v44  ;;  %v1007_v16 = vpop.f32.mrb[1].mxu0  ;;  %v7210_v14 = vld [vmem:[%s9310_s3] ss:$0 sm:$0xff] }
 0x19f   :  { %v808_v18 = vadd.f32 %v6846_v27, %v769_v9  ;;  %v1008_v20 = vadd.f32 %v1007_v16, %v7157_v12  ;;  %v1009_v21 = vpop.f32.mrb[2].mxu0 }
 0x1a0   :  { %v412_v17 = vpop.permute.xlu1 %411  ;;  %v1164_v23 = vrot.slane %v1006_v46, 4  ;;  %v1010_v43 = vadd.f32 %v1009_v21, %v7151_v44  ;;  %v1011_v24 = vpop.f32.mrb[3].mxu0 }
 0x1a1   :  { %v464_v27 = vmul.f32 %v6802_v60, %v412_v17  ;;  %v840_v1 = vmax.f32 %v808_v18, 0.0  ;;  %v1170_v56 = vrot.slane %v1008_v20, 4  ;;  %v1012_v37 = vadd.f32 %v1011_v24, %v7157_v12 }
 0x1a2   :  { %v1165_v5 = vmax.f32 %v1006_v46, %v1164_v23  ;;  %v1176_v58 = vrot.slane %v1010_v43, 4  ;;  %v7175_v28 = vpack.c.bf16 %v1010_v43, %v1006_v46 }
 0x1a3   :  { %v496_v30 = vadd.f32 %v464_v27, %v300_v41  ;;  %v1171_v3 = vmax.f32 %v1008_v20, %v1170_v56  ;;  %v1182_v31 = vrot.slane %v1012_v37, 4  ;;  %v859_v45 = vpack.c.bf16 %v840_v1, %v839_v26  ;;  %v6292_v1 = vld [vmem:[%s9314_s7 + $0x180] ss:$16 sps:$4 sm:$0xff]  }
 0x1a4   :  { %v416_v15 = vpop.permute.xlu1 %415  ;;  %v7177_v48 = vpack.c.bf16 %v1012_v37, %v1008_v20  ;;  %v1166_v49 = vrot.slane %v1165_v5, 2  ;;  %v1177_v32 = vmax.f32 %v1010_v43, %v1176_v58  ;;  %v6293_v58 = vld [vmem:[%s9314_s7 + $0x1a4] ss:$16 sps:$4 sm:$0xff]  }
 0x1a5   :  { %v692_v47 = vadd.f32 %v660_v22, %v496_v30  ;;  %v465_v36 = vmul.f32 %v6802_v60, %v416_v15  ;;  %v1172_v52 = vrot.slane %v1171_v3, 2  ;;  %v1183_v42 = vmax.f32 %v1012_v37, %v1182_v31  ;;  %1124 = vmatmul.mubr.bf16.gmra.mrb[48].mxu0 %v859_v45  ;;  %v6290_v22 = vld [vmem:[%s9314_s7 + $0x184] ss:$16 sps:$4 sm:$0xff]  }
 0x1a6   :  { %v1167_v29 = vmax.f32 %v1165_v5, %v1166_v49  ;;  %v1178_v59 = vrot.slane %v1177_v32, 2  ;;  %1133 = vmatprep.mubr.bf16.mxu0 %v6513_v2  ;;  %2219 = vmatprep.subr.bf16.mxu1 %v6290_v22 }
 0x1a7   :  { %v731_v63 = vadd.f32 %v7194_v51, %v692_v47  ;;  %v1015_v4 = vpop.f32.mrb[4].mxu0  ;;  %v1173_v40 = vmax.f32 %v1171_v3, %v1172_v52  ;;  %v1184_v8 = vrot.slane %v1183_v42, 2  ;;  %v497_v39 = vadd.f32 %v465_v36, %v301_v53  ;;  %2220 = vmatpush1.bf16.msra.mxu1 %v6292_v1  ;;  %v6295_v52 = vld [vmem:[%s9314_s7 + $0x1a0] ss:$16 sps:$4 sm:$0xff]  }
 0x1a8   :  { %v7202_v11 = vadd.f32 %v1015_v4, %v7151_v44  ;;  %v1017_v10 = vpop.f32.mrb[5].mxu0  ;;  %v1168_v13 = vrot.slane %v1167_v29, 1  ;;  %v1179_v9 = vmax.f32 %v1177_v32, %v1178_v59  ;;  %2221 = vmatprep.subr.bf16.mxu1 %v6293_v58  ;;  %v6296_v4 = vld [vmem:[%s9314_s7 + $0x1c4] ss:$16 sps:$4 sm:$0xff]  }
 0x1a9   :  { %v770_v25 = vmul.f32 %v7210_v14, %v731_v63  ;;  %v7214_v46 = vadd.f32 %v1017_v10, %v7157_v12  ;;  %v1019_v16 = vpop.f32.mrb[6].mxu0  ;;  %v612_v18 = vpop.permute.xlu1 %611  ;;  %v1174_v38 = vrot.slane %v1173_v40, 1  ;;  %v1185_v41 = vmax.f32 %v1183_v42, %v1184_v8 }
 0x1aa   :  { %v1188_v20 = vrot.slane %v7202_v11, 4  ;;  %v7221_v21 = vadd.f32 %v1019_v16, %v7151_v44  ;;  %v1021_v17 = vpop.f32.mrb[7].mxu0  ;;  %v1169_v23 = vmax.f32 %v1167_v29, %v1168_v13  ;;  %v1180_v43 = vrot.slane %v1179_v9, 1 }
 0x1ab   :  { %v1194_v27 = vrot.slane %v7214_v46, 4  ;;  %v661_v24 = vmul.f32 %v6810_v62, %v612_v18  ;;  %v1175_v56 = vmax.f32 %v1173_v40, %v1174_v38  ;;  %v1186_v37 = vrot.slane %v1185_v41, 1  ;;  %2222 = vmatpush1.bf16.msra.mxu1 %v6295_v52  ;;  %v6301_v52 = vld [vmem:[%s9314_s7 + $0x1e0] ss:$16 sps:$4 sm:$0xff]  }
 0x1ac   :  { %v1189_v26 = vmax.f32 %v7202_v11, %v1188_v20  ;;  %v1200_v5 = vrot.slane %v7221_v21, 4  ;;  %v1548_v30 = vpack.c.bf16 %v1169_v23, %v1169_v23  ;;  %v1181_v3 = vmax.f32 %v1179_v9, %v1180_v43  ;;  %v7252_v20 = vld [vmem:[%s9311_s4] ss:$0 sm:$0xff]  ;;  %2223 = vmatprep.subr.bf16.mxu1 %v6296_v4  ;;  %v7279_v4 = vpop.permute.xlu0 %267 }
 0x1ad   :  { %v1195_v31 = vmax.f32 %v7214_v46, %v1194_v27  ;;  %v693_v15 = vadd.f32 %v661_v24, %v497_v39  ;;  %v1549_v45 = vpack.c.bf16 %v1175_v56, %v1175_v56  ;;  %v1187_v33 = vmax.f32 %v1185_v41, %v1186_v37 }
 0x1ae   :  { %v1190_v0 = vrot.slane %v1189_v26, 2  ;;  %v1201_v49 = vmax.f32 %v7221_v21, %v1200_v5  ;;  %v253_v32 = vpop.permute.xlu1 %252  ;;  %v1740_v47 = vunpack.c.l.b16 %v1548_v30  ;;  %v1550_v36 = vpack.c.bf16 %v1181_v3, %v1181_v3 }
 0x1af   :  { %v1196_v34 = vrot.slane %v1195_v31, 2  ;;  %v732_v53 = vadd.f32 %v7194_v51, %v693_v15  ;;  %v1741_v42 = vunpack.c.l.b16 %v1549_v45  ;;  %v1551_v29 = vpack.c.bf16 %v1187_v33, %v1187_v33 }
 0x1b0   :  { %v1191_v59 = vmax.f32 %v1189_v26, %v1190_v0  ;;  %v1202_v63 = vrot.slane %v1201_v49, 2  ;;  %v1742_v40 = vunpack.c.l.b16 %v1550_v36  ;;  %v1022_v10 = vadd.f32 %v1021_v17, %v7157_v12  ;;  %v6298_v26 = vld [vmem:[%s9314_s7 + $0x1c0] ss:$16 sps:$4 sm:$0xff]  }
 0x1b1   :  { %v1197_v8 = vmax.f32 %v1195_v31, %v1196_v34  ;;  %v771_v39 = vmul.f32 %v7210_v14, %v732_v53  ;;  %v1743_v7 = vunpack.c.l.b16 %v1551_v29  ;;  %v302_v16 = vmul.f32 %v6806_v61, %v253_v32  ;;  %2224 = vmatpush1.bf16.msra.mxu1 %v6298_v26 }
 0x1b2   :  { %v1192_v13 = vrot.slane %v1191_v59, 1  ;;  %v1203_v9 = vmax.f32 %v1201_v49, %v1202_v63  ;;  %v1805_v18 = vsel %vm1804_vm0, %v1742_v40, %v1740_v47  ;;  %v1206_v38 = vrot.slane %v1022_v10, 4 }
 0x1b3   :  { %v1198_v19 = vrot.slane %v1197_v8, 1  ;;  %v420_v41 = vpop.permute.xlu1 %419  ;;  %v809_v22 = vadd.f32 %v7252_v20, %v770_v25  ;;  %v1818_v17 = vsel %vm1804_vm0, %v1743_v7, %v1741_v42  ;;  %v810_v56 = vadd.f32 %v7252_v20, %v771_v39 }
 0x1b4   :  { %v1193_v23 = vmax.f32 %v1191_v59, %v1192_v13  ;;  %v1204_v43 = vrot.slane %v1203_v9, 1  ;;  %v466_v27 = vmul.f32 %v6802_v60, %v420_v41  ;;  %v1207_v1 = vmax.f32 %v1022_v10, %v1206_v38 }
 0x1b5   :  { %v1199_v24 = vmax.f32 %v1197_v8, %v1198_v19  ;;  %v841_v37 = vmax.f32 %v809_v22, 0.0  ;;  %v7262_v30 = vpack.c.bf16 %v1022_v10, %v7214_v46  ;;  %v842_v45 = vmax.f32 %v810_v56, 0.0  ;;  %v6299_v46 = vld [vmem:[%s9314_s7 + $0x1e4] ss:$16 sps:$4 sm:$0xff]  }
 0x1b6   :  { %v1552_v5 = vpack.c.bf16 %v1193_v23, %v1193_v23  ;;  %v1205_v58 = vmax.f32 %v1203_v9, %v1204_v43  ;;  %v498_v25 = vadd.f32 %v466_v27, %v302_v16  ;;  %v1208_v31 = vrot.slane %v1207_v1, 2  ;;  %2225 = vmatprep.subr.bf16.mxu1 %v6299_v46 }
 0x1b7   :  { %v1553_v3 = vpack.c.bf16 %v1199_v24, %v1199_v24  ;;  %v424_v15 = vpop.permute.xlu1 %423  ;;  %v7266_v33 = vpack.c.bf16 %v7221_v21, %v7202_v11  ;;  %v860_v53 = vpack.c.bf16 %v842_v45, %v841_v37  ;;  %2226 = vmatpush1.bf16.msra.mxu1 %v6301_v52 }
 0x1b8   :  { %v1744_v0 = vunpack.c.l.b16 %v1552_v5  ;;  %v1554_v49 = vpack.c.bf16 %v1205_v58, %v1205_v58  ;;  %v694_v32 = vadd.f32 %v7189_v35, %v498_v25  ;;  %v467_v47 = vmul.f32 %v6802_v60, %v424_v15  ;;  %v624_v15 = vpop.permute.xlu0 %623 }
 0x1b9   :  { %v1745_v36 = vunpack.c.l.b16 %v1553_v3  ;;  %v1209_v34 = vmax.f32 %v1207_v1, %v1208_v31  ;;  %1134 = vmatmul.mubr.bf16.gmra.mrb[52].mxu0 %v860_v53 }
 0x1ba   :  { %v1807_v11 = vsel %vm1806_vm1, %v1744_v0, %v1805_v18  ;;  %v1746_v21 = vunpack.c.l.b16 %v1554_v49  ;;  %v733_v42 = vadd.f32 %v7194_v51, %v694_v32  ;;  %v1025_v35 = vpop.f32.mrb[8].mxu0  ;;  %v499_v8 = vadd.f32 %v467_v47, %v7198_v6  ;;  %1143 = vmatprep.mubr.bf16.mxu0 %v6513_v2 }
 0x1bb   :  { %v1210_v29 = vrot.slane %v1209_v34, 1  ;;  %v1026_v59 = vadd.f32 %v1025_v35, %v7151_v44  ;;  %v1027_v63 = vpop.f32.mrb[9].mxu0  ;;  %v1819_v40 = vsel %vm1806_vm1, %v1745_v36, %v1818_v17 }
 0x1bc   :  { %v1028_v39 = vadd.f32 %v1027_v63, %v7157_v12  ;;  %v1029_v10 = vpop.f32.mrb[10].mxu0  ;;  %v620_v7 = vpop.permute.xlu1 %619  ;;  %v7286_v13 = vsel %vm1808_vm2, %v1746_v21, %v1807_v11  ;;  %v772_v6 = vmul.f32 %v7210_v14, %v733_v42  ;;  %v664_v11 = vmul.f32 %v6810_v62, %v624_v15 }
 0x1bd   :  { %v1211_v9 = vmax.f32 %v1209_v34, %v1210_v29  ;;  %v1212_v16 = vrot.slane %v1026_v59, 4  ;;  %v1030_v18 = vadd.f32 %v1029_v10, %v7151_v44  ;;  %v663_v19 = vmul.f32 %v6810_v62, %v620_v7  ;;  %v1031_v38 = vpop.f32.mrb[11].mxu0 }
 0x1be   :  { %v1218_v41 = vrot.slane %v1028_v39, 4  ;;  %v1032_v22 = vadd.f32 %v1031_v38, %v7157_v12  ;;  %v811_v45 = vadd.f32 %v7252_v20, %v772_v6 }
 0x1bf   :  { %v1555_v17 = vpack.c.bf16 %v1211_v9, %v1211_v9  ;;  %v1213_v23 = vmax.f32 %v1026_v59, %v1212_v16  ;;  %v1224_v43 = vrot.slane %v1030_v18, 4  ;;  %v695_v27 = vadd.f32 %v663_v19, %v499_v8 }
 0x1c0   :  { %v1219_v24 = vmax.f32 %v1028_v39, %v1218_v41  ;;  %v1230_v1 = vrot.slane %v1032_v22, 4  ;;  %v7292_v56 = vpack.c.bf16 %v1032_v22, %v1028_v39  ;;  %v7296_v0 = vpack.c.bf16 %v1030_v18, %v1026_v59 }
 0x1c1   :  { %v1747_v37 = vunpack.c.l.b16 %v1555_v17  ;;  %v1214_v26 = vrot.slane %v1213_v23, 2  ;;  %v1225_v5 = vmax.f32 %v1030_v18, %v1224_v43  ;;  %v734_v58 = vadd.f32 %v7194_v51, %v695_v27  ;;  %v263_v25 = vpop.permute.xlu1 %262 }
 0x1c2   :  { %v1220_v3 = vrot.slane %v1219_v24, 2  ;;  %v1231_v31 = vmax.f32 %v1032_v22, %v1230_v1  ;;  %v304_v29 = vmul.f32 %v6806_v61, %v263_v25  ;;  %v843_v63 = vmax.f32 %v811_v45, 0.0 }
 0x1c3   :  { %v1215_v49 = vmax.f32 %v1213_v23, %v1214_v26  ;;  %v1226_v32 = vrot.slane %v1225_v5, 2  ;;  %v773_v47 = vmul.f32 %v7210_v14, %v734_v58  ;;  %v1820_v46 = vsel %vm1808_vm2, %v1747_v37, %v1819_v40 }
 0x1c4   :  { %v1221_v36 = vmax.f32 %v1219_v24, %v1220_v3  ;;  %v1232_v34 = vrot.slane %v1231_v31, 2  ;;  %v305_v26 = vmul.f32 %v6806_v61, %v7279_v4 }
 0x1c5   :  { %v1216_v53 = vrot.slane %v1215_v49, 1  ;;  %v1227_v52 = vmax.f32 %v1225_v5, %v1226_v32  ;;  %v812_v21 = vadd.f32 %v7252_v20, %v773_v47 }
 0x1c6   :  { %v1222_v42 = vrot.slane %v1221_v36, 1  ;;  %v1233_v35 = vmax.f32 %v1231_v31, %v1232_v34  ;;  %v428_v59 = vpop.permute.xlu1 %427 }
 0x1c7   :  { %v1217_v8 = vmax.f32 %v1215_v49, %v1216_v53  ;;  %v1228_v39 = vrot.slane %v1227_v52, 1  ;;  %v468_v10 = vmul.f32 %v6802_v60, %v428_v59  ;;  %v844_v7 = vmax.f32 %v812_v21, 0.0 }
 0x1c8   :  { %v1223_v40 = vmax.f32 %v1221_v36, %v1222_v42  ;;  %v1234_v9 = vrot.slane %v1233_v35, 1 }
 0x1c9   :  { %v1556_v16 = vpack.c.bf16 %v1217_v8, %v1217_v8  ;;  %v1229_v18 = vmax.f32 %v1227_v52, %v1228_v39  ;;  %v500_v19 = vadd.f32 %v468_v10, %v304_v29  ;;  %v861_v38 = vpack.c.bf16 %v844_v7, %v843_v63 }
 0x1ca   :  { %v1557_v41 = vpack.c.bf16 %v1223_v40, %v1223_v40  ;;  %v1235_v22 = vmax.f32 %v1233_v35, %v1234_v9  ;;  %v432_v6 = vpop.permute.xlu1 %431 }
 0x1cb   :  { %v1748_v17 = vunpack.c.l.b16 %v1556_v16  ;;  %v1558_v23 = vpack.c.bf16 %v1229_v18, %v1229_v18  ;;  %v696_v43 = vadd.f32 %v664_v11, %v500_v19  ;;  %v469_v27 = vmul.f32 %v6802_v60, %v432_v6  ;;  %1144 = vmatmul.mubr.bf16.gmra.mrb[56].mxu0 %v861_v38 }
 0x1cc   :  { %v1749_v24 = vunpack.c.l.b16 %v1557_v41  ;;  %v1559_v1 = vpack.c.bf16 %v1235_v22, %v1235_v22  ;;  %1153 = vmatprep.mubr.bf16.mxu0 %v6513_v2 }
 0x1cd   :  { %v1750_v37 = vunpack.c.l.b16 %v1558_v23  ;;  %v735_v5 = vadd.f32 %v7194_v51, %v696_v43  ;;  %v1035_v58 = vpop.f32.mrb[12].mxu0  ;;  %v1811_v25 = vsel %vm1810_vm3, %v1748_v17, %v7286_v13  ;;  %v501_v45 = vadd.f32 %v469_v27, %v305_v26 }
 0x1ce   :  { %v1751_v3 = vunpack.c.l.b16 %v1559_v1  ;;  %v1036_v31 = vadd.f32 %v1035_v58, %v7151_v44  ;;  %v1037_v60 = vpop.f32.mrb[13].mxu0  ;;  %v1821_v15 = vsel %vm1810_vm3, %v1749_v24, %v1820_v46 }
 0x1cf   :  { %v1038_v2 = vadd.f32 %v1037_v60, %v7157_v12  ;;  %v1039_v49 = vpop.f32.mrb[14].mxu0  ;;  %v628_v32 = vpop.permute.xlu1 %627  ;;  %v1813_v47 = vsel %vm1812_vm4, %v1750_v37, %v1811_v25  ;;  %v774_v53 = vmul.f32 %v7210_v14, %v735_v5 }
 0x1d0   :  { %v1236_v61 = vrot.slane %v1036_v31, 4  ;;  %v1040_v4 = vadd.f32 %v1039_v49, %v7151_v44  ;;  %v665_v36 = vmul.f32 %v6810_v62, %v628_v32  ;;  %v1041_v34 = vpop.f32.mrb[15].mxu0  ;;  %v1822_v13 = vsel %vm1812_vm4, %v1751_v3, %v1821_v15 }
 0x1d1   :  { %v1242_v52 = vrot.slane %v1038_v2, 4  ;;  %v1042_v46 = vadd.f32 %v1041_v34, %v7157_v12  ;;  %v813_v18 = vadd.f32 %v7252_v20, %v774_v53 }
 0x1d2   :  { %v1237_v11 = vmax.f32 %v1036_v31, %v1236_v61  ;;  %v1248_v21 = vrot.slane %v1040_v4, 4  ;;  %v697_v42 = vadd.f32 %v665_v36, %v501_v45  ;;  %v7320_v35 = vpack.c.bf16 %v1040_v4, %v1036_v31 }
 0x1d3   :  { %v1243_v29 = vmax.f32 %v1038_v2, %v1242_v52  ;;  %v1254_v59 = vrot.slane %v1042_v46, 4  ;;  %v7322_v63 = vpack.c.bf16 %v1042_v46, %v1038_v2  ;;  %v845_v24 = vmax.f32 %v813_v18, 0.0 }
 0x1d4   :  { %v1238_v8 = vrot.slane %v1237_v11, 2  ;;  %v1249_v39 = vmax.f32 %v1040_v4, %v1248_v21  ;;  %v736_v62 = vadd.f32 %v7194_v51, %v697_v42 }
 0x1d5   :  { %v1244_v10 = vrot.slane %v1243_v29, 2  ;;  %v1255_v7 = vmax.f32 %v1042_v46, %v1254_v59 }
 0x1d6   :  { %v1239_v40 = vmax.f32 %v1237_v11, %v1238_v8  ;;  %v1250_v9 = vrot.slane %v1249_v39, 2  ;;  %v775_v16 = vmul.f32 %v7210_v14, %v736_v62 }
 0x1d7   :  { %v1245_v19 = vmax.f32 %v1243_v29, %v1244_v10  ;;  %v1256_v38 = vrot.slane %v1255_v7, 2 }
 0x1d8   :  { %v1240_v41 = vrot.slane %v1239_v40, 1  ;;  %v1251_v22 = vmax.f32 %v1249_v39, %v1250_v9  ;;  %v814_v6 = vadd.f32 %v7252_v20, %v775_v16 }
 0x1d9   :  { %v1246_v17 = vrot.slane %v1245_v19, 1  ;;  %v1257_v23 = vmax.f32 %v1255_v7, %v1256_v38 }
 0x1da   :  { %v1241_v43 = vmax.f32 %v1239_v40, %v1240_v41  ;;  %v1252_v27 = vrot.slane %v1251_v22, 1  ;;  %v846_v51 = vmax.f32 %v814_v6, 0.0 }
 0x1db   :  { %v1247_v1 = vmax.f32 %v1245_v19, %v1246_v17  ;;  %v1258_v37 = vrot.slane %v1257_v23, 1 }
 0x1dc   :  { %v1560_v26 = vpack.c.bf16 %v1241_v43, %v1241_v43  ;;  %v1253_v5 = vmax.f32 %v1251_v22, %v1252_v27  ;;  %v862_v58 = vpack.c.bf16 %v846_v51, %v845_v24 }
 0x1dd   :  { %v1561_v14 = vpack.c.bf16 %v1247_v1, %v1247_v1  ;;  %v1259_v25 = vmax.f32 %v1257_v23, %v1258_v37 }
 0x1de   :  { %v1752_v3 = vunpack.c.l.b16 %v1560_v26  ;;  %v1562_v31 = vpack.c.bf16 %v1253_v5, %v1253_v5  ;;  %1154 = vmatmul.mubr.bf16.gmra.mrb[60].mxu0 %v862_v58 }
 0x1df   :  { %2749 = vmatprep.mubr.bf16.mxu0 %v7177_v48  ;;  %v1563_v20 = vpack.c.bf16 %v1259_v25, %v1259_v25  ;;  %v1753_v60 = vunpack.c.l.b16 %v1561_v14 }
 0x1e0   :  { %v1045_v15 = vpop.f32.mrb[16].mxu0  ;;  %v1754_v45 = vunpack.c.l.b16 %v1562_v31  ;;  %v1815_v2 = vsel %vm1814_vm5, %v1752_v3, %v1813_v47 }
 0x1e1   :  { %v1046_v49 = vadd.f32 %v1045_v15, %v7151_v44  ;;  %v1047_v32 = vpop.f32.mrb[17].mxu0  ;;  %v1755_v61 = vunpack.c.l.b16 %v1563_v20  ;;  %v1823_v4 = vsel %vm1814_vm5, %v1753_v60, %v1822_v13 }
 0x1e2   :  { %v1048_v36 = vadd.f32 %v1047_v32, %v7157_v12  ;;  %v1049_v34 = vpop.f32.mrb[18].mxu0  ;;  %v7334_v53 = vsel %vm1816_vm6, %v1754_v45, %v1815_v2 }
 0x1e3   :  { %v1260_v52 = vrot.slane %v1046_v49, 4  ;;  %v1050_v46 = vadd.f32 %v1049_v34, %v7151_v44  ;;  %v1051_v11 = vpop.f32.mrb[19].mxu0  ;;  %v7338_v21 = vsel %vm1816_vm6, %v1755_v61, %v1823_v4 }
 0x1e4   :  { %v1266_v47 = vrot.slane %v1048_v36, 4  ;;  %v1052_v42 = vadd.f32 %v1051_v11, %v7157_v12 }
 0x1e5   :  { %v1261_v29 = vmax.f32 %v1046_v49, %v1260_v52  ;;  %v1272_v59 = vrot.slane %v1050_v46, 4  ;;  %v7341_v8 = vpack.c.bf16 %v1050_v46, %v1046_v49 }
 0x1e6   :  { %v1267_v13 = vmax.f32 %v1048_v36, %v1266_v47  ;;  %v1278_v39 = vrot.slane %v1052_v42, 4  ;;  %2750 = vmatmul.mubr.bf16.vlgmr.msra.gmra.mrb[64].mxu0 %v7175_v28  ;;  %v7344_v62 = vpack.c.bf16 %v1052_v42, %v1048_v36 }
 0x1e7   :  { %v1262_v10 = vrot.slane %v1261_v29, 2  ;;  %v1273_v7 = vmax.f32 %v1050_v46, %v1272_v59  ;;  %2759 = vmatprep.mubr.bf16.mxu0 %v7262_v30 }
 0x1e8   :  { %v1268_v40 = vrot.slane %v1267_v13, 2  ;;  %v1279_v9 = vmax.f32 %v1052_v42, %v1278_v39 }
 0x1e9   :  { %v1263_v16 = vmax.f32 %v1261_v29, %v1262_v10  ;;  %v1274_v18 = vrot.slane %v1273_v7, 2 }
 0x1ea   :  { %v1269_v19 = vmax.f32 %v1267_v13, %v1268_v40  ;;  %v1280_v38 = vrot.slane %v1279_v9, 2 }
 0x1eb   :  { %v1264_v41 = vrot.slane %v1263_v16, 1  ;;  %v1275_v22 = vmax.f32 %v1273_v7, %v1274_v18 }
 0x1ec   :  { %v1270_v6 = vrot.slane %v1269_v19, 1  ;;  %v1281_v17 = vmax.f32 %v1279_v9, %v1280_v38 }
 0x1ed   :  { %v1265_v23 = vmax.f32 %v1263_v16, %v1264_v41  ;;  %v1276_v43 = vrot.slane %v1275_v22, 1 }
 0x1ee   :  { %v1271_v27 = vmax.f32 %v1269_v19, %v1270_v6  ;;  %v1282_v24 = vrot.slane %v1281_v17, 1  ;;  %2760 = vmatmul.mubr.bf16.gmra.mrb[68].mxu0 %v7266_v33 }
 0x1ef   :  { %v1564_v51 = vpack.c.bf16 %v1265_v23, %v1265_v23  ;;  %v1277_v1 = vmax.f32 %v1275_v22, %v1276_v43  ;;  %2769 = vmatprep.mubr.bf16.mxu0 %v7292_v56 }
 0x1f0   :  { %v1565_v37 = vpack.c.bf16 %v1271_v27, %v1271_v27  ;;  %v1283_v26 = vmax.f32 %v1281_v17, %v1282_v24 }
 0x1f1   :  { %v1566_v5 = vpack.c.bf16 %v1277_v1, %v1277_v1  ;;  %v1756_v14 = vunpack.c.l.b16 %v1564_v51 }
 0x1f2   :  { %v1567_v58 = vpack.c.bf16 %v1283_v26, %v1283_v26  ;;  %v1757_v31 = vunpack.c.l.b16 %v1565_v37 }
 0x1f3   :  { %v1758_v25 = vunpack.c.l.b16 %v1566_v5  ;;  %v1055_v3 = vpop.f32.mrb[20].mxu0 }
 0x1f4   :  { %v1759_v20 = vunpack.c.l.b16 %v1567_v58  ;;  %v1056_v60 = vadd.f32 %v1055_v3, %v7151_v44  ;;  %v1057_v15 = vpop.f32.mrb[21].mxu0 }
 0x1f5   :  { %v1825_v45 = vsel %vm1804_vm0, %v1758_v25, %v1756_v14  ;;  %v1058_v2 = vadd.f32 %v1057_v15, %v7157_v12  ;;  %v1059_v49 = vpop.f32.mrb[22].mxu0 }
 0x1f6   :  { %v1832_v32 = vsel %vm1804_vm0, %v1759_v20, %v1757_v31  ;;  %v1284_v61 = vrot.slane %v1056_v60, 4  ;;  %v1060_v4 = vadd.f32 %v1059_v49, %v7151_v44  ;;  %v1061_v36 = vpop.f32.mrb[23].mxu0  ;;  %2770 = vmatmul.mubr.bf16.gmra.mrb[72].mxu0 %v7296_v0 }
 0x1f7   :  { %v1290_v34 = vrot.slane %v1058_v2, 4  ;;  %v1062_v52 = vadd.f32 %v1061_v36, %v7157_v12  ;;  %2779 = vmatprep.mubr.bf16.mxu0 %v7322_v63 }
 0x1f8   :  { %v1285_v46 = vmax.f32 %v1056_v60, %v1284_v61  ;;  %v1296_v11 = vrot.slane %v1060_v4, 4  ;;  %v7357_v47 = vpack.c.bf16 %v1060_v4, %v1056_v60 }
 0x1f9   :  { %v1291_v42 = vmax.f32 %v1058_v2, %v1290_v34  ;;  %v1302_v29 = vrot.slane %v1062_v52, 4  ;;  %v7359_v59 = vpack.c.bf16 %v1062_v52, %v1058_v2 }
 0x1fa   :  { %v1286_v13 = vrot.slane %v1285_v46, 2  ;;  %v1297_v39 = vmax.f32 %v1060_v4, %v1296_v11 }
 0x1fb   :  { %v1292_v10 = vrot.slane %v1291_v42, 2  ;;  %v1303_v7 = vmax.f32 %v1062_v52, %v1302_v29 }
 0x1fc   :  { %v1287_v40 = vmax.f32 %v1285_v46, %v1286_v13  ;;  %v1298_v9 = vrot.slane %v1297_v39, 2 }
 0x1fd   :  { %v1293_v16 = vmax.f32 %v1291_v42, %v1292_v10  ;;  %v1304_v18 = vrot.slane %v1303_v7, 2 }
 0x1fe   :  { %v1288_v19 = vrot.slane %v1287_v40, 1  ;;  %v1299_v38 = vmax.f32 %v1297_v39, %v1298_v9  ;;  %2780 = vmatmul.mubr.bf16.gmra.mrb[76].mxu0 %v7320_v35 }
 0x1ff   :  { %v1294_v41 = vrot.slane %v1293_v16, 1  ;;  %v1305_v22 = vmax.f32 %v1303_v7, %v1304_v18  ;;  %2789 = vmatprep.mubr.bf16.mxu0 %v7344_v62 }
 0x200   :  { %v1289_v6 = vmax.f32 %v1287_v40, %v1288_v19  ;;  %v1300_v17 = vrot.slane %v1299_v38, 1 }
 0x201   :  { %v1295_v23 = vmax.f32 %v1293_v16, %v1294_v41  ;;  %v1306_v43 = vrot.slane %v1305_v22, 1 }
 0x202   :  { %v1568_v27 = vpack.c.bf16 %v1289_v6, %v1289_v6  ;;  %v1301_v24 = vmax.f32 %v1299_v38, %v1300_v17 }
 0x203   :  { %v1569_v51 = vpack.c.bf16 %v1295_v23, %v1295_v23  ;;  %v1307_v1 = vmax.f32 %v1305_v22, %v1306_v43 }
 0x204   :  { %v1760_v37 = vunpack.c.l.b16 %v1568_v27  ;;  %v1570_v26 = vpack.c.bf16 %v1301_v24, %v1301_v24 }
 0x205   :  { %v1761_v5 = vunpack.c.l.b16 %v1569_v51  ;;  %v1571_v58 = vpack.c.bf16 %v1307_v1, %v1307_v1 }
 0x206   :  { %v1826_v14 = vsel %vm1806_vm1, %v1760_v37, %v1825_v45  ;;  %v1762_v25 = vunpack.c.l.b16 %v1570_v26  ;;  %v1065_v3 = vpop.f32.mrb[24].mxu0  ;;  %2790 = vmatmul.mubr.bf16.gmra.mrb[80].mxu0 %v7341_v8 }
 0x207   :  { %v1763_v31 = vunpack.c.l.b16 %v1571_v58  ;;  %v1066_v20 = vadd.f32 %v1065_v3, %v7151_v44  ;;  %v1067_v60 = vpop.f32.mrb[25].mxu0  ;;  %2799 = vmatprep.mubr.bf16.mxu0 %v7359_v59  ;;  %v1833_v15 = vsel %vm1806_vm1, %v1761_v5, %v1832_v32 }
 0x208   :  { %v1068_v2 = vadd.f32 %v1067_v60, %v7157_v12  ;;  %v1069_v49 = vpop.f32.mrb[26].mxu0  ;;  %v1827_v61 = vsel %vm1808_vm2, %v1762_v25, %v1826_v14 }
 0x209   :  { %v1308_v4 = vrot.slane %v1066_v20, 4  ;;  %v1070_v45 = vadd.f32 %v1069_v49, %v7151_v44  ;;  %v1071_v36 = vpop.f32.mrb[27].mxu0  ;;  %v1834_v34 = vsel %vm1808_vm2, %v1763_v31, %v1833_v15 }
 0x20a   :  { %v1314_v52 = vrot.slane %v1068_v2, 4  ;;  %v1072_v46 = vadd.f32 %v1071_v36, %v7157_v12 }
 0x20b   :  { %v1309_v11 = vmax.f32 %v1066_v20, %v1308_v4  ;;  %v1320_v42 = vrot.slane %v1070_v45, 4  ;;  %v7373_v29 = vpack.c.bf16 %v1070_v45, %v1066_v20 }
 0x20c   :  { %v1315_v13 = vmax.f32 %v1068_v2, %v1314_v52  ;;  %v1326_v32 = vrot.slane %v1072_v46, 4  ;;  %v7375_v39 = vpack.c.bf16 %v1072_v46, %v1068_v2  ;;  %v6304_v52 = vld [vmem:[%s9314_s7 + $0xc] ss:$16 sps:$4 sm:$0xff]  }
 0x20d   :  { %v1310_v10 = vrot.slane %v1309_v11, 2  ;;  %v1321_v7 = vmax.f32 %v1070_v45, %v1320_v42  ;;  %2248 = vmatprep.subr.bf16.mxu1 %v6304_v52 }
 0x20e   :  { %v1316_v40 = vrot.slane %v1315_v13, 2  ;;  %v1327_v9 = vmax.f32 %v1072_v46, %v1326_v32  ;;  %2800 = vmatmul.mubr.bf16.gmra.mrb[84].mxu0 %v7357_v47 }
 0x20f   :  { %v1311_v16 = vmax.f32 %v1309_v11, %v1310_v10  ;;  %v1322_v18 = vrot.slane %v1321_v7, 2  ;;  %2809 = vmatprep.mubr.bf16.mxu0 %v7375_v39 }
 0x210   :  { %v1317_v19 = vmax.f32 %v1315_v13, %v1316_v40  ;;  %v1328_v38 = vrot.slane %v1327_v9, 2 }
 0x211   :  { %v1312_v41 = vrot.slane %v1311_v16, 1  ;;  %v1323_v22 = vmax.f32 %v1321_v7, %v1322_v18 }
 0x212   :  { %v1318_v6 = vrot.slane %v1317_v19, 1  ;;  %v1329_v17 = vmax.f32 %v1327_v9, %v1328_v38 }
 0x213   :  { %v1313_v23 = vmax.f32 %v1311_v16, %v1312_v41  ;;  %v1324_v43 = vrot.slane %v1323_v22, 1 }
 0x214   :  { %v1319_v27 = vmax.f32 %v1317_v19, %v1318_v6  ;;  %v1330_v24 = vrot.slane %v1329_v17, 1 }
 0x215   :  { %v1572_v51 = vpack.c.bf16 %v1313_v23, %v1313_v23  ;;  %v1325_v1 = vmax.f32 %v1323_v22, %v1324_v43 }
 0x216   :  { %v1573_v37 = vpack.c.bf16 %v1319_v27, %v1319_v27  ;;  %v1331_v26 = vmax.f32 %v1329_v17, %v1330_v24  ;;  %2810 = vmatmul.mubr.bf16.gmra.mrb[88].mxu0 %v7373_v29 }
 0x217   :  { %v1764_v5 = vunpack.c.l.b16 %v1572_v51  ;;  %v1574_v58 = vpack.c.bf16 %v1325_v1, %v1325_v1 }
 0x218   :  { %v1765_v14 = vunpack.c.l.b16 %v1573_v37  ;;  %v1575_v25 = vpack.c.bf16 %v1331_v26, %v1331_v26 }
 0x219   :  { %v1766_v3 = vunpack.c.l.b16 %v1574_v58  ;;  %v1075_v31 = vpop.f32.mrb[28].mxu0  ;;  %v1828_v20 = vsel %vm1810_vm3, %v1764_v5, %v1827_v61 }
 0x21a   :  { %v1767_v60 = vunpack.c.l.b16 %v1575_v25  ;;  %v1076_v15 = vadd.f32 %v1075_v31, %v7151_v44  ;;  %v1077_v2 = vpop.f32.mrb[29].mxu0  ;;  %v1835_v49 = vsel %vm1810_vm3, %v1765_v14, %v1834_v34 }
 0x21b   :  { %v1078_v4 = vadd.f32 %v1077_v2, %v7157_v12  ;;  %v1079_v45 = vpop.f32.mrb[30].mxu0  ;;  %v1829_v36 = vsel %vm1812_vm4, %v1766_v3, %v1828_v20 }
 0x21c   :  { %v1332_v46 = vrot.slane %v1076_v15, 4  ;;  %v1080_v11 = vadd.f32 %v1079_v45, %v7151_v44  ;;  %v1081_v42 = vpop.f32.mrb[31].mxu0  ;;  %v1836_v61 = vsel %vm1812_vm4, %v1767_v60, %v1835_v49 }
 0x21d   :  { %v1338_v13 = vrot.slane %v1078_v4, 4  ;;  %v1082_v32 = vadd.f32 %v1081_v42, %v7157_v12 }
 0x21e   :  { %v1333_v34 = vmax.f32 %v1076_v15, %v1332_v46  ;;  %v1344_v10 = vrot.slane %v1080_v11, 4  ;;  %v7391_v7 = vpack.c.bf16 %v1080_v11, %v1076_v15 }
 0x21f   :  { %v1339_v40 = vmax.f32 %v1078_v4, %v1338_v13  ;;  %v1350_v9 = vrot.slane %v1082_v32, 4  ;;  %v7393_v16 = vpack.c.bf16 %v1082_v32, %v1078_v4 }
 0x220   :  { %v1334_v18 = vrot.slane %v1333_v34, 2  ;;  %v1345_v19 = vmax.f32 %v1080_v11, %v1344_v10 }
 0x221   :  { %v1340_v38 = vrot.slane %v1339_v40, 2  ;;  %v1351_v41 = vmax.f32 %v1082_v32, %v1350_v9  ;;  %2819 = vmatprep.mubr.bf16.mxu0 %v7393_v16 }
 0x222   :  { %v1335_v22 = vmax.f32 %v1333_v34, %v1334_v18  ;;  %v1346_v6 = vrot.slane %v1345_v19, 2  ;;  %2820 = vmatmul.mubr.bf16.gmra.mrb[92].mxu0 %v7391_v7 }
 0x223   :  { %v1341_v17 = vmax.f32 %v1339_v40, %v1340_v38  ;;  %v1352_v23 = vrot.slane %v1351_v41, 2 }
 0x224   :  { %v1336_v43 = vrot.slane %v1335_v22, 1  ;;  %v1347_v27 = vmax.f32 %v1345_v19, %v1346_v6 }
 0x225   :  { %v1342_v24 = vrot.slane %v1341_v17, 1  ;;  %v1353_v51 = vmax.f32 %v1351_v41, %v1352_v23 }
 0x226   :  { %v1337_v1 = vmax.f32 %v1335_v22, %v1336_v43  ;;  %v1348_v37 = vrot.slane %v1347_v27, 1 }
 0x227   :  { %v1343_v26 = vmax.f32 %v1341_v17, %v1342_v24  ;;  %v1354_v5 = vrot.slane %v1353_v51, 1  ;;  %v6307_v17 = vld [vmem:[%s9314_s7 + $0x2c] ss:$16 sps:$4 sm:$0xff]  }
 0x228   :  { %v1576_v58 = vpack.c.bf16 %v1337_v1, %v1337_v1  ;;  %v1349_v14 = vmax.f32 %v1347_v27, %v1348_v37  ;;  %v6305_v1 = vld [vmem:[%s9314_s7 + $0x28] ss:$16 sps:$4 sm:$0xff]  }
 0x229   :  { %v1577_v25 = vpack.c.bf16 %v1343_v26, %v1343_v26  ;;  %v1355_v3 = vmax.f32 %v1353_v51, %v1354_v5  ;;  %v6310_v5 = vld [vmem:[%s9314_s7 + $0x4c] ss:$16 sps:$4 sm:$0xff]  }
 0x22a   :  { %v1768_v31 = vunpack.c.l.b16 %v1576_v58  ;;  %v1578_v20 = vpack.c.bf16 %v1349_v14, %v1349_v14 }
 0x22b   :  { %v1579_v60 = vpack.c.bf16 %v1355_v3, %v1355_v3  ;;  %v1769_v15 = vunpack.c.l.b16 %v1577_v25 }
 0x22c   :  { %v1085_v2 = vpop.f32.mrb[32].mxu0  ;;  %v1770_v49 = vunpack.c.l.b16 %v1578_v20  ;;  %v1830_v4 = vsel %vm1814_vm5, %v1768_v31, %v1829_v36 }
 0x22d   :  { %v1086_v45 = vadd.f32 %v1085_v2, %v7151_v44  ;;  %v1087_v52 = vpop.f32.mrb[33].mxu0  ;;  %v1771_v46 = vunpack.c.l.b16 %v1579_v60  ;;  %v1837_v11 = vsel %vm1814_vm5, %v1769_v15, %v1836_v61  ;;  %v6302_v61 = vld [vmem:[%s9314_s7 + $0x8] ss:$16 sps:$4 sm:$0xff]  }
 0x22e   :  { %v1088_v42 = vadd.f32 %v1087_v52, %v7157_v12  ;;  %v1089_v13 = vpop.f32.mrb[34].mxu0  ;;  %v1831_v32 = vsel %vm1816_vm6, %v1770_v49, %v1830_v4  ;;  %v6308_v60 = vld [vmem:[%s9314_s7 + $0x48] ss:$16 sps:$4 sm:$0xff]   ;;  %v6313_v49 = vld [vmem:[%s9314_s7 + $0x6c] ss:$16 sps:$4 sm:$0xff]  }
 0x22f   :  { %v1356_v34 = vrot.slane %v1086_v45, 4  ;;  %v1090_v10 = vadd.f32 %v1089_v13, %v7151_v44  ;;  %v1091_v40 = vpop.f32.mrb[35].mxu0  ;;  %v1838_v9 = vsel %vm1816_vm6, %v1771_v46, %v1837_v11  ;;  %v7405_v18 = vpack.c.b16 %v1831_v32, %v7334_v53  ;;  %v6311_v13 = vld [vmem:[%s9314_s7 + $0x68] ss:$16 sps:$4 sm:$0xff]  }
 0x230   :  { %v1362_v36 = vrot.slane %v1088_v42, 4  ;;  %v1092_v19 = vadd.f32 %v1091_v40, %v7157_v12  ;;  %v7409_v38 = vpack.c.b16 %v1838_v9, %v7338_v21 }
 0x231   :  { %v1357_v41 = vmax.f32 %v1086_v45, %v1356_v34  ;;  %v1368_v22 = vrot.slane %v1090_v10, 4  ;;  %v7414_v6 = vpack.c.bf16 %v1090_v10, %v1086_v45  ;;  %v6316_v34 = vld [vmem:[%s9314_s7 + $0x8c] ss:$16 sps:$4 sm:$0xff]  }
 0x232   :  { %v1363_v53 = vmax.f32 %v1088_v42, %v1362_v36  ;;  %v1374_v23 = vrot.slane %v1092_v19, 4  ;;  %2227 = vmatprep.mubr.bf16.mxu1 %v7409_v38  ;;  %v7420_v43 = vpack.c.bf16 %v1092_v19, %v1088_v42 }
 0x233   :  { %v1358_v21 = vrot.slane %v1357_v41, 2  ;;  %v1369_v27 = vmax.f32 %v1090_v10, %v1368_v22  ;;  %2228 = vmatmul.mubr.bf16.vlgmr.msra.gmra.mrb[0].mxu1 %v7405_v18 }
 0x234   :  { %v1364_v24 = vrot.slane %v1363_v53, 2  ;;  %v1375_v51 = vmax.f32 %v1092_v19, %v1374_v23  ;;  %2829 = vmatprep.mubr.bf16.mxu0 %v7420_v43  ;;  %2249 = vmatpush1.bf16.msra.mxu1 %v6302_v61 }
 0x235   :  { %v1359_v37 = vmax.f32 %v1357_v41, %v1358_v21  ;;  %v1370_v26 = vrot.slane %v1369_v27, 2  ;;  %2830 = vmatmul.mubr.bf16.gmra.mrb[96].mxu0 %v7414_v6  ;;  %2250 = vmatprep.subr.bf16.mxu1 %v6307_v17  ;;  %v6314_v17 = vld [vmem:[%s9314_s7 + $0x88] ss:$16 sps:$4 sm:$0xff]  }
 0x236   :  { %v1365_v58 = vmax.f32 %v1363_v53, %v1364_v24  ;;  %v1376_v14 = vrot.slane %v1375_v51, 2 }
 0x237   :  { %v1360_v25 = vrot.slane %v1359_v37, 1  ;;  %v1371_v3 = vmax.f32 %v1369_v27, %v1370_v26  ;;  %v6319_v27 = vld [vmem:[%s9314_s7 + $0xac] ss:$16 sps:$4 sm:$0xff]  }
 0x238   :  { %v1366_v31 = vrot.slane %v1365_v58, 1  ;;  %v1377_v20 = vmax.f32 %v1375_v51, %v1376_v14  ;;  %2251 = vmatpush1.bf16.msra.mxu1 %v6305_v1 }
 0x239   :  { %v1361_v15 = vmax.f32 %v1359_v37, %v1360_v25  ;;  %v1372_v2 = vrot.slane %v1371_v3, 1  ;;  %2252 = vmatprep.subr.bf16.mxu1 %v6310_v5 }
 0x23a   :  { %v1367_v4 = vmax.f32 %v1365_v58, %v1366_v31  ;;  %v1378_v45 = vrot.slane %v1377_v20, 1 }
 0x23b   :  { %v1580_v52 = vpack.c.bf16 %v1361_v15, %v1361_v15  ;;  %v1373_v46 = vmax.f32 %v1371_v3, %v1372_v2  ;;  %v6317_v3 = vld [vmem:[%s9314_s7 + $0xa8] ss:$16 sps:$4 sm:$0xff]   ;;  %v6322_v15 = vld [vmem:[%s9314_s7 + $0xcc] ss:$16 sps:$4 sm:$0xff]  }
 0x23c   :  { %v1581_v11 = vpack.c.bf16 %v1367_v4, %v1367_v4  ;;  %v1379_v42 = vmax.f32 %v1377_v20, %v1378_v45  ;;  %2253 = vmatpush1.bf16.msra.mxu1 %v6308_v60 }
 0x23d   :  { %v1582_v32 = vpack.c.bf16 %v1373_v46, %v1373_v46  ;;  %2254 = vmatprep.subr.bf16.mxu1 %v6313_v49  ;;  %v1772_v40 = vunpack.c.l.b16 %v1580_v52 }
 0x23e   :  { %v1583_v10 = vpack.c.bf16 %v1379_v42, %v1379_v42  ;;  %v1773_v19 = vunpack.c.l.b16 %v1581_v11  ;;  %v6320_v11 = vld [vmem:[%s9314_s7 + $0xc8] ss:$16 sps:$4 sm:$0xff]  }
 0x23f   :  { %v1774_v9 = vunpack.c.l.b16 %v1582_v32  ;;  %v1095_v36 = vpop.f32.mrb[36].mxu0  ;;  %v6325_v32 = vld [vmem:[%s9314_s7 + $0xec] ss:$16 sps:$4 sm:$0xff]  }
 0x240   :  { %v1775_v61 = vunpack.c.l.b16 %v1583_v10  ;;  %v1096_v41 = vadd.f32 %v1095_v36, %v7151_v44  ;;  %v1097_v22 = vpop.f32.mrb[37].mxu0  ;;  %2255 = vmatpush1.bf16.msra.mxu1 %v6311_v13 }
 0x241   :  { %v1839_v53 = vsel %vm1804_vm0, %v1774_v9, %v1772_v40  ;;  %v1098_v23 = vadd.f32 %v1097_v22, %v7157_v12  ;;  %v1099_v21 = vpop.f32.mrb[38].mxu0  ;;  %2256 = vmatprep.subr.bf16.mxu1 %v6316_v34 }
 0x242   :  { %v1846_v24 = vsel %vm1804_vm0, %v1775_v61, %v1773_v19  ;;  %v1380_v51 = vrot.slane %v1096_v41, 4  ;;  %v1100_v1 = vadd.f32 %v1099_v21, %v7151_v44  ;;  %v1101_v37 = vpop.f32.mrb[39].mxu0  ;;  %v6323_v61 = vld [vmem:[%s9314_s7 + $0xe8] ss:$16 sps:$4 sm:$0xff]  }
 0x243   :  { %v1386_v26 = vrot.slane %v1098_v23, 4  ;;  %v1102_v5 = vadd.f32 %v1101_v37, %v7157_v12 }
 0x244   :  { %v1381_v58 = vmax.f32 %v1096_v41, %v1380_v51  ;;  %v1392_v14 = vrot.slane %v1100_v1, 4  ;;  %v7455_v25 = vpack.c.bf16 %v1100_v1, %v1096_v41  ;;  %2257 = vmatpush1.bf16.msra.mxu1 %v6314_v17  ;;  %v6328_v17 = vld [vmem:[%s9314_s7 + $0x10c] ss:$16 sps:$4 sm:$0xff]  }
 0x245   :  { %v1387_v31 = vmax.f32 %v1098_v23, %v1386_v26  ;;  %v1398_v20 = vrot.slane %v1102_v5, 4  ;;  %v7460_v60 = vpack.c.bf16 %v1102_v5, %v1098_v23  ;;  %2258 = vmatprep.subr.bf16.mxu1 %v6319_v27  ;;  %v6326_v26 = vld [vmem:[%s9314_s7 + $0x108] ss:$16 sps:$4 sm:$0xff]  }
 0x246   :  { %v1382_v2 = vrot.slane %v1381_v58, 2  ;;  %v1393_v49 = vmax.f32 %v1100_v1, %v1392_v14  ;;  %v6331_v14 = vld [vmem:[%s9314_s7 + $0x12c] ss:$16 sps:$4 sm:$0xff]  }
 0x247   :  { %v1388_v4 = vrot.slane %v1387_v31, 2  ;;  %v1399_v45 = vmax.f32 %v1102_v5, %v1398_v20  ;;  %2839 = vmatprep.mubr.bf16.mxu0 %v7460_v60 }
 0x248   :  { %v1383_v52 = vmax.f32 %v1381_v58, %v1382_v2  ;;  %v1394_v46 = vrot.slane %v1393_v49, 2  ;;  %2840 = vmatmul.mubr.bf16.gmra.mrb[100].mxu0 %v7455_v25  ;;  %2259 = vmatpush1.bf16.msra.mxu1 %v6317_v3 }
 0x249   :  { %v1389_v42 = vmax.f32 %v1387_v31, %v1388_v4  ;;  %v1400_v13 = vrot.slane %v1399_v45, 2  ;;  %2260 = vmatprep.subr.bf16.mxu1 %v6322_v15 }
 0x24a   :  { %v1384_v34 = vrot.slane %v1383_v52, 1  ;;  %v1395_v10 = vmax.f32 %v1393_v49, %v1394_v46  ;;  %v6329_v46 = vld [vmem:[%s9314_s7 + $0x128] ss:$16 sps:$4 sm:$0xff]  }
 0x24b   :  { %v1390_v40 = vrot.slane %v1389_v42, 1  ;;  %v1401_v9 = vmax.f32 %v1399_v45, %v1400_v13 }
 0x24c   :  { %v1385_v36 = vmax.f32 %v1383_v52, %v1384_v34  ;;  %v1396_v19 = vrot.slane %v1395_v10, 1  ;;  %2261 = vmatpush1.bf16.msra.mxu1 %v6320_v11 }
 0x24d   :  { %v1391_v41 = vmax.f32 %v1389_v42, %v1390_v40  ;;  %v1402_v22 = vrot.slane %v1401_v9, 1  ;;  %2262 = vmatprep.subr.bf16.mxu1 %v6325_v32 }
 0x24e   :  { %v1584_v23 = vpack.c.bf16 %v1385_v36, %v1385_v36  ;;  %v1397_v21 = vmax.f32 %v1395_v10, %v1396_v19 }
 0x24f   :  { %v1585_v27 = vpack.c.bf16 %v1391_v41, %v1391_v41  ;;  %v1403_v51 = vmax.f32 %v1401_v9, %v1402_v22  ;;  %v6332_v22 = vld [vmem:[%s9314_s7 + $0x148] ss:$16 sps:$4 sm:$0xff]  }
 0x250   :  { %v1776_v1 = vunpack.c.l.b16 %v1584_v23  ;;  %v1586_v37 = vpack.c.bf16 %v1397_v21, %v1397_v21  ;;  %2263 = vmatpush1.bf16.msra.mxu1 %v6323_v61  ;;  %v6337_v21 = vld [vmem:[%s9314_s7 + $0x16c] ss:$16 sps:$4 sm:$0xff]  }
 0x251   :  { %v1777_v5 = vunpack.c.l.b16 %v1585_v27  ;;  %v1587_v58 = vpack.c.bf16 %v1403_v51, %v1403_v51  ;;  %2264 = vmatprep.subr.bf16.mxu1 %v6328_v17 }
 0x252   :  { %v1840_v3 = vsel %vm1806_vm1, %v1776_v1, %v1839_v53  ;;  %v1778_v31 = vunpack.c.l.b16 %v1586_v37  ;;  %v1105_v20 = vpop.f32.mrb[40].mxu0 }
 0x253   :  { %v1847_v15 = vsel %vm1806_vm1, %v1777_v5, %v1846_v24  ;;  %v1779_v2 = vunpack.c.l.b16 %v1587_v58  ;;  %v1106_v49 = vadd.f32 %v1105_v20, %v7151_v44  ;;  %v1107_v4 = vpop.f32.mrb[41].mxu0  ;;  %v6334_v24 = vld [vmem:[%s9314_s7 + $0x14c] ss:$16 sps:$4 sm:$0xff]   ;;  %v6335_v58 = vld [vmem:[%s9314_s7 + $0x168] ss:$16 sps:$4 sm:$0xff]  }
 0x254   :  { %v1108_v45 = vadd.f32 %v1107_v4, %v7157_v12  ;;  %v1109_v52 = vpop.f32.mrb[42].mxu0  ;;  %2265 = vmatpush1.bf16.msra.mxu1 %v6326_v26  ;;  %v1841_v11 = vsel %vm1808_vm2, %v1778_v31, %v1840_v3  ;;  %v6340_v31 = vld [vmem:[%s9314_s7 + $0x18c] ss:$16 sps:$4 sm:$0xff]  }
 0x255   :  { %v1404_v42 = vrot.slane %v1106_v49, 4  ;;  %v1110_v53 = vadd.f32 %v1109_v52, %v7151_v44  ;;  %v1111_v13 = vpop.f32.mrb[43].mxu0  ;;  %2266 = vmatprep.subr.bf16.mxu1 %v6331_v14  ;;  %v1848_v32 = vsel %vm1808_vm2, %v1779_v2, %v1847_v15  ;;  %v6338_v52 = vld [vmem:[%s9314_s7 + $0x188] ss:$16 sps:$4 sm:$0xff]  }
 0x256   :  { %v1410_v34 = vrot.slane %v1108_v45, 4  ;;  %v1112_v10 = vadd.f32 %v1111_v13, %v7157_v12 }
 0x257   :  { %v1405_v40 = vmax.f32 %v1106_v49, %v1404_v42  ;;  %v1416_v9 = vrot.slane %v1110_v53, 4  ;;  %v7499_v36 = vpack.c.bf16 %v1110_v53, %v1106_v49 }
 0x258   :  { %v1411_v19 = vmax.f32 %v1108_v45, %v1410_v34  ;;  %v1422_v61 = vrot.slane %v1112_v10, 4  ;;  %v7501_v41 = vpack.c.bf16 %v1112_v10, %v1108_v45  ;;  %2267 = vmatpush1.bf16.msra.mxu1 %v6329_v46 }
 0x259   :  { %v1406_v17 = vrot.slane %v1405_v40, 2  ;;  %v1417_v23 = vmax.f32 %v1110_v53, %v1416_v9  ;;  %2268 = vmatprep.subr.bf16.mxu1 %v6334_v24  ;;  %v6343_v53 = vld [vmem:[%s9314_s7 + $0x1ac] ss:$16 sps:$4 sm:$0xff]  }
 0x25a   :  { %v1412_v27 = vrot.slane %v1411_v19, 2  ;;  %v1423_v51 = vmax.f32 %v1112_v10, %v1422_v61  ;;  %2849 = vmatprep.mubr.bf16.mxu0 %v7501_v41 }
 0x25b   :  { %v1407_v1 = vmax.f32 %v1405_v40, %v1406_v17  ;;  %v1418_v37 = vrot.slane %v1417_v23, 2  ;;  %2850 = vmatmul.mubr.bf16.gmra.mrb[104].mxu0 %v7499_v36  ;;  %v6346_v17 = vld [vmem:[%s9314_s7 + $0x1cc] ss:$16 sps:$4 sm:$0xff]  }
 0x25c   :  { %v1413_v26 = vmax.f32 %v1411_v19, %v1412_v27  ;;  %v1424_v5 = vrot.slane %v1423_v51, 2  ;;  %2269 = vmatpush1.bf16.msra.mxu1 %v6332_v22  ;;  %v6341_v19 = vld [vmem:[%s9314_s7 + $0x1a8] ss:$16 sps:$4 sm:$0xff]  }
 0x25d   :  { %v1408_v14 = vrot.slane %v1407_v1, 1  ;;  %v1419_v3 = vmax.f32 %v1417_v23, %v1418_v37  ;;  %2270 = vmatprep.subr.bf16.mxu1 %v6337_v21 }
 0x25e   :  { %v1414_v20 = vrot.slane %v1413_v26, 1  ;;  %v1425_v15 = vmax.f32 %v1423_v51, %v1424_v5 }
 0x25f   :  { %v1409_v2 = vmax.f32 %v1407_v1, %v1408_v14  ;;  %v1420_v49 = vrot.slane %v1419_v3, 1 }
 0x260   :  { %v1415_v4 = vmax.f32 %v1413_v26, %v1414_v20  ;;  %v1426_v45 = vrot.slane %v1425_v15, 1  ;;  %2271 = vmatpush1.bf16.msra.mxu1 %v6335_v58 }
 0x261   :  { %v1588_v46 = vpack.c.bf16 %v1409_v2, %v1409_v2  ;;  %v1421_v42 = vmax.f32 %v1419_v3, %v1420_v49  ;;  %2272 = vmatprep.subr.bf16.mxu1 %v6340_v31 }
 0x262   :  { %v1589_v13 = vpack.c.bf16 %v1415_v4, %v1415_v4  ;;  %v1427_v24 = vmax.f32 %v1425_v15, %v1426_v45 }
 0x263   :  { %v1780_v34 = vunpack.c.l.b16 %v1588_v46  ;;  %v1590_v10 = vpack.c.bf16 %v1421_v42, %v1421_v42 }
 0x264   :  { %v1781_v40 = vunpack.c.l.b16 %v1589_v13  ;;  %v1591_v9 = vpack.c.bf16 %v1427_v24, %v1427_v24  ;;  %2273 = vmatpush1.bf16.msra.mxu1 %v6338_v52  ;;  %v6347_v13 = vld [vmem:[%s9314_s7 + $0x1e8] ss:$16 sps:$4 sm:$0xff]  }
 0x265   :  { %v1782_v61 = vunpack.c.l.b16 %v1590_v10  ;;  %v1115_v22 = vpop.f32.mrb[44].mxu0  ;;  %2274 = vmatprep.subr.bf16.mxu1 %v6343_v53  ;;  %v1842_v23 = vsel %vm1810_vm3, %v1780_v34, %v1841_v11  ;;  %v6344_v11 = vld [vmem:[%s9314_s7 + $0x1c8] ss:$16 sps:$4 sm:$0xff]   ;;  %v6352_v10 = vld [vmem:[#allocation5 + $0xc] ss:$16 sps:$4 sm:$0xff]  }
 0x266   :  { %v1783_v21 = vunpack.c.l.b16 %v1591_v9  ;;  %v1116_v27 = vadd.f32 %v1115_v22, %v7151_v44  ;;  %v1117_v51 = vpop.f32.mrb[45].mxu0  ;;  %v1849_v1 = vsel %vm1810_vm3, %v1781_v40, %v1848_v32  ;;  %v6349_v32 = vld [vmem:[%s9314_s7 + $0x1ec] ss:$16 sps:$4 sm:$0xff]  }
 0x267   :  { %v1118_v37 = vadd.f32 %v1117_v51, %v7157_v12  ;;  %v1119_v26 = vpop.f32.mrb[46].mxu0  ;;  %v1843_v5 = vsel %vm1812_vm4, %v1782_v61, %v1842_v23 }
 0x268   :  { %v1428_v58 = vrot.slane %v1116_v27, 4  ;;  %v1120_v14 = vadd.f32 %v1119_v26, %v7151_v44  ;;  %v1121_v3 = vpop.f32.mrb[47].mxu0  ;;  %2275 = vmatpush1.bf16.msra.mxu1 %v6341_v19  ;;  %v1850_v31 = vsel %vm1812_vm4, %v1783_v21, %v1849_v1 }
 0x269   :  { %v1434_v20 = vrot.slane %v1118_v37, 4  ;;  %v1122_v15 = vadd.f32 %v1121_v3, %v7157_v12  ;;  %2276 = vmatprep.subr.bf16.mxu1 %v6346_v17 }
 0x26a   :  { %v1429_v2 = vmax.f32 %v1116_v27, %v1428_v58  ;;  %v1440_v49 = vrot.slane %v1120_v14, 4  ;;  %v7543_v4 = vpack.c.bf16 %v1120_v14, %v1116_v27 }
 0x26b   :  { %v1435_v45 = vmax.f32 %v1118_v37, %v1434_v20  ;;  %v1446_v52 = vrot.slane %v1122_v15, 4  ;;  %v7545_v46 = vpack.c.bf16 %v1122_v15, %v1118_v37 }
 0x26c   :  { %v1430_v42 = vrot.slane %v1429_v2, 2  ;;  %v1441_v53 = vmax.f32 %v1120_v14, %v1440_v49  ;;  %2277 = vmatpush1.bf16.msra.mxu1 %v6344_v11 }
 0x26d   :  { %v1436_v24 = vrot.slane %v1435_v45, 2  ;;  %v1447_v34 = vmax.f32 %v1122_v15, %v1446_v52  ;;  %2859 = vmatprep.mubr.bf16.mxu0 %v7545_v46  ;;  %2278 = vmatprep.subr.bf16.mxu1 %v6349_v32 }
 0x26e   :  { %v1431_v40 = vmax.f32 %v1429_v2, %v1430_v42  ;;  %v1442_v9 = vrot.slane %v1441_v53, 2  ;;  %2860 = vmatmul.mubr.bf16.gmra.mrb[108].mxu0 %v7543_v4 }
 0x26f   :  { %v1437_v19 = vmax.f32 %v1435_v45, %v1436_v24  ;;  %v1448_v61 = vrot.slane %v1447_v34, 2 }
 0x270   :  { %v1432_v22 = vrot.slane %v1431_v40, 1  ;;  %v1443_v17 = vmax.f32 %v1441_v53, %v1442_v9  ;;  %2279 = vmatpush1.bf16.msra.mxu1 %v6347_v13 }
 0x271   :  { %v1438_v23 = vrot.slane %v1437_v19, 1  ;;  %v1449_v21 = vmax.f32 %v1447_v34, %v1448_v61  ;;  %2910 = vmatprep.subr.bf16.mxu1 %v6352_v10 }
 0x272   :  { %v1433_v27 = vmax.f32 %v1431_v40, %v1432_v22  ;;  %v1444_v51 = vrot.slane %v1443_v17, 1 }
 0x273   :  { %v1439_v1 = vmax.f32 %v1437_v19, %v1438_v23  ;;  %v1450_v37 = vrot.slane %v1449_v21, 1 }
 0x274   :  { %v1592_v26 = vpack.c.bf16 %v1433_v27, %v1433_v27  ;;  %v1445_v58 = vmax.f32 %v1443_v17, %v1444_v51 }
 0x275   :  { %v1593_v14 = vpack.c.bf16 %v1439_v1, %v1439_v1  ;;  %v1451_v3 = vmax.f32 %v1449_v21, %v1450_v37 }
 0x276   :  { %v1784_v11 = vunpack.c.l.b16 %v1592_v26  ;;  %v1594_v20 = vpack.c.bf16 %v1445_v58, %v1445_v58 }
 0x277   :  { %v1785_v15 = vunpack.c.l.b16 %v1593_v14  ;;  %v1595_v32 = vpack.c.bf16 %v1451_v3, %v1451_v3 }
 0x278   :  { %v1786_v2 = vunpack.c.l.b16 %v1594_v20  ;;  %v1844_v49 = vsel %vm1814_vm5, %v1784_v11, %v1843_v5  ;;  %v1125_v45 = vpop.f32.mrb[48].mxu0 }
 0x279   :  { %v1787_v52 = vunpack.c.l.b16 %v1595_v32  ;;  %v1851_v42 = vsel %vm1814_vm5, %v1785_v15, %v1850_v31  ;;  %v1126_v53 = vadd.f32 %v1125_v45, %v7151_v44  ;;  %v1127_v13 = vpop.f32.mrb[49].mxu0 }
 0x27a   :  { %v7556_v24 = vsel %vm1816_vm6, %v1786_v2, %v1844_v49  ;;  %v1128_v34 = vadd.f32 %v1127_v13, %v7157_v12  ;;  %v1129_v10 = vpop.f32.mrb[50].mxu0 }
 0x27b   :  { %v7560_v40 = vsel %vm1816_vm6, %v1787_v52, %v1851_v42  ;;  %v1452_v9 = vrot.slane %v1126_v53, 4  ;;  %v1130_v19 = vadd.f32 %v1129_v10, %v7151_v44  ;;  %v1131_v5 = vpop.f32.mrb[51].mxu0 }
 0x27c   :  { %v1458_v61 = vrot.slane %v1128_v34, 4  ;;  %v1132_v22 = vadd.f32 %v1131_v5, %v7157_v12 }
 0x27d   :  { %v1453_v31 = vmax.f32 %v1126_v53, %v1452_v9  ;;  %v1464_v17 = vrot.slane %v1130_v19, 4  ;;  %v7564_v23 = vpack.c.bf16 %v1130_v19, %v1126_v53 }
 0x27e   :  { %v1459_v21 = vmax.f32 %v1128_v34, %v1458_v61  ;;  %v1470_v27 = vrot.slane %v1132_v22, 4  ;;  %v7566_v51 = vpack.c.bf16 %v1132_v22, %v1128_v34 }
 0x27f   :  { %v1454_v1 = vrot.slane %v1453_v31, 2  ;;  %v1465_v37 = vmax.f32 %v1130_v19, %v1464_v17 }
 0x280   :  { %v1460_v26 = vrot.slane %v1459_v21, 2  ;;  %v1471_v58 = vmax.f32 %v1132_v22, %v1470_v27  ;;  %2869 = vmatprep.mubr.bf16.mxu0 %v7566_v51 }
 0x281   :  { %v1455_v14 = vmax.f32 %v1453_v31, %v1454_v1  ;;  %v1466_v3 = vrot.slane %v1465_v37, 2  ;;  %2870 = vmatmul.mubr.bf16.gmra.mrb[112].mxu0 %v7564_v23 }
 0x282   :  { %v1461_v11 = vmax.f32 %v1459_v21, %v1460_v26  ;;  %v1472_v20 = vrot.slane %v1471_v58, 2 }
 0x283   :  { %v1456_v15 = vrot.slane %v1455_v14, 1  ;;  %v1467_v32 = vmax.f32 %v1465_v37, %v1466_v3 }
 0x284   :  { %v1462_v2 = vrot.slane %v1461_v11, 1  ;;  %v1473_v49 = vmax.f32 %v1471_v58, %v1472_v20 }
 0x285   :  { %v1457_v45 = vmax.f32 %v1455_v14, %v1456_v15  ;;  %v1468_v52 = vrot.slane %v1467_v32, 1 }
 0x286   :  { %v1463_v42 = vmax.f32 %v1461_v11, %v1462_v2  ;;  %v1474_v53 = vrot.slane %v1473_v49, 1 }
 0x287   :  { %v1596_v13 = vpack.c.bf16 %v1457_v45, %v1457_v45  ;;  %v1469_v34 = vmax.f32 %v1467_v32, %v1468_v52 }
 0x288   :  { %v1597_v10 = vpack.c.bf16 %v1463_v42, %v1463_v42  ;;  %v1475_v9 = vmax.f32 %v1473_v49, %v1474_v53 }
 0x289   :  { %v1598_v19 = vpack.c.bf16 %v1469_v34, %v1469_v34  ;;  %v1788_v61 = vunpack.c.l.b16 %v1596_v13 }
 0x28a   :  { %v1599_v5 = vpack.c.bf16 %v1475_v9, %v1475_v9  ;;  %v1789_v31 = vunpack.c.l.b16 %v1597_v10 }
 0x28b   :  { %v1790_v22 = vunpack.c.l.b16 %v1598_v19 }
 0x28c   :  { %v1791_v17 = vunpack.c.l.b16 %v1599_v5  ;;  %v1135_v27 = vpop.f32.mrb[52].mxu0 }
 0x28d   :  { %v1853_v21 = vsel %vm1804_vm0, %v1790_v22, %v1788_v61  ;;  %v1136_v37 = vadd.f32 %v1135_v27, %v7151_v44  ;;  %v1137_v26 = vpop.f32.mrb[53].mxu0 }
 0x28e   :  { %v1860_v1 = vsel %vm1804_vm0, %v1791_v17, %v1789_v31  ;;  %v1138_v58 = vadd.f32 %v1137_v26, %v7157_v12  ;;  %v1139_v14 = vpop.f32.mrb[54].mxu0 }
 0x28f   :  { %v1476_v3 = vrot.slane %v1136_v37, 4  ;;  %v1140_v11 = vadd.f32 %v1139_v14, %v7151_v44  ;;  %v1141_v20 = vpop.f32.mrb[55].mxu0 }
 0x290   :  { %v1482_v15 = vrot.slane %v1138_v58, 4  ;;  %v1142_v32 = vadd.f32 %v1141_v20, %v7157_v12 }
 0x291   :  { %v1477_v2 = vmax.f32 %v1136_v37, %v1476_v3  ;;  %v1488_v49 = vrot.slane %v1140_v11, 4  ;;  %v7576_v45 = vpack.c.bf16 %v1140_v11, %v1136_v37 }
 0x292   :  { %v1483_v52 = vmax.f32 %v1138_v58, %v1482_v15  ;;  %v1494_v42 = vrot.slane %v1142_v32, 4  ;;  %v7578_v53 = vpack.c.bf16 %v1142_v32, %v1138_v58 }
 0x293   :  { %v1478_v13 = vrot.slane %v1477_v2, 2  ;;  %v1489_v34 = vmax.f32 %v1140_v11, %v1488_v49 }
 0x294   :  { %v1484_v10 = vrot.slane %v1483_v52, 2  ;;  %v1495_v9 = vmax.f32 %v1142_v32, %v1494_v42  ;;  %2879 = vmatprep.mubr.bf16.mxu0 %v7578_v53 }
 0x295   :  { %v1479_v19 = vmax.f32 %v1477_v2, %v1478_v13  ;;  %v1490_v5 = vrot.slane %v1489_v34, 2  ;;  %2880 = vmatmul.mubr.bf16.gmra.mrb[116].mxu0 %v7576_v45 }
 0x296   :  { %v1485_v61 = vmax.f32 %v1483_v52, %v1484_v10  ;;  %v1496_v22 = vrot.slane %v1495_v9, 2 }
 0x297   :  { %v1480_v31 = vrot.slane %v1479_v19, 1  ;;  %v1491_v17 = vmax.f32 %v1489_v34, %v1490_v5 }
 0x298   :  { %v1486_v27 = vrot.slane %v1485_v61, 1  ;;  %v1497_v37 = vmax.f32 %v1495_v9, %v1496_v22 }
 0x299   :  { %v1481_v26 = vmax.f32 %v1479_v19, %v1480_v31  ;;  %v1492_v14 = vrot.slane %v1491_v17, 1 }
 0x29a   :  { %v1487_v58 = vmax.f32 %v1485_v61, %v1486_v27  ;;  %v1498_v3 = vrot.slane %v1497_v37, 1 }
 0x29b   :  { %v1600_v20 = vpack.c.bf16 %v1481_v26, %v1481_v26  ;;  %v1493_v11 = vmax.f32 %v1491_v17, %v1492_v14 }
 0x29c   :  { %v1601_v15 = vpack.c.bf16 %v1487_v58, %v1487_v58  ;;  %v1499_v32 = vmax.f32 %v1497_v37, %v1498_v3 }
 0x29d   :  { %v1792_v42 = vunpack.c.l.b16 %v1600_v20  ;;  %v1602_v2 = vpack.c.bf16 %v1493_v11, %v1493_v11 }
 0x29e   :  { %v1145_v49 = vpop.f32.mrb[56].mxu0  ;;  %v1793_v52 = vunpack.c.l.b16 %v1601_v15  ;;  %v1603_v10 = vpack.c.bf16 %v1499_v32, %v1499_v32 }
 0x29f   :  { %v1146_v13 = vadd.f32 %v1145_v49, %v7151_v44  ;;  %v1147_v57 = vpop.f32.mrb[57].mxu0  ;;  %v1854_v9 = vsel %vm1806_vm1, %v1792_v42, %v1853_v21  ;;  %v1794_v19 = vunpack.c.l.b16 %v1602_v2 }
 0x2a0   :  { %v1148_v34 = vadd.f32 %v1147_v57, %v7157_v12  ;;  %v1149_v5 = vpop.f32.mrb[58].mxu0  ;;  %v1861_v17 = vsel %vm1806_vm1, %v1793_v52, %v1860_v1  ;;  %v1795_v27 = vunpack.c.l.b16 %v1603_v10 }
 0x2a1   :  { %v1500_v61 = vrot.slane %v1146_v13, 4  ;;  %v1150_v22 = vadd.f32 %v1149_v5, %v7151_v44  ;;  %v1151_v31 = vpop.f32.mrb[59].mxu0  ;;  %v1855_v57 = vsel %vm1808_vm2, %v1794_v19, %v1854_v9 }
 0x2a2   :  { %v1506_v37 = vrot.slane %v1148_v34, 4  ;;  %v1152_v26 = vadd.f32 %v1151_v31, %v7157_v12  ;;  %v1862_v15 = vsel %vm1808_vm2, %v1795_v27, %v1861_v17 }
 0x2a3   :  { %v1501_v14 = vmax.f32 %v1146_v13, %v1500_v61  ;;  %v1512_v58 = vrot.slane %v1150_v22, 4  ;;  %v7588_v3 = vpack.c.bf16 %v1150_v22, %v1146_v13 }
 0x2a4   :  { %v1507_v20 = vmax.f32 %v1148_v34, %v1506_v37  ;;  %v1518_v11 = vrot.slane %v1152_v26, 4  ;;  %v7591_v21 = vpack.c.bf16 %v1152_v26, %v1148_v34 }
 0x2a5   :  { %v1502_v32 = vrot.slane %v1501_v14, 2  ;;  %v1513_v49 = vmax.f32 %v1150_v22, %v1512_v58 }
 0x2a6   :  { %v1508_v42 = vrot.slane %v1507_v20, 2  ;;  %v1519_v1 = vmax.f32 %v1152_v26, %v1518_v11  ;;  %2889 = vmatprep.mubr.bf16.mxu0 %v7591_v21 }
 0x2a7   :  { %v1503_v2 = vmax.f32 %v1501_v14, %v1502_v32  ;;  %v1514_v52 = vrot.slane %v1513_v49, 2  ;;  %2890 = vmatmul.mubr.bf16.gmra.mrb[120].mxu0 %v7588_v3 }
 0x2a8   :  { %v1509_v13 = vmax.f32 %v1507_v20, %v1508_v42  ;;  %v1520_v10 = vrot.slane %v1519_v1, 2 }
 0x2a9   :  { %v1504_v5 = vrot.slane %v1503_v2, 1  ;;  %v1515_v9 = vmax.f32 %v1513_v49, %v1514_v52 }
 0x2aa   :  { %v1510_v19 = vrot.slane %v1509_v13, 1  ;;  %v1521_v61 = vmax.f32 %v1519_v1, %v1520_v10 }
 0x2ab   :  { %v1505_v34 = vmax.f32 %v1503_v2, %v1504_v5  ;;  %v1516_v31 = vrot.slane %v1515_v9, 1 }
 0x2ac   :  { %v1511_v37 = vmax.f32 %v1509_v13, %v1510_v19  ;;  %v1522_v17 = vrot.slane %v1521_v61, 1 }
 0x2ad   :  { %v1604_v27 = vpack.c.bf16 %v1505_v34, %v1505_v34  ;;  %v1517_v22 = vmax.f32 %v1515_v9, %v1516_v31 }
 0x2ae   :  { %v1605_v58 = vpack.c.bf16 %v1511_v37, %v1511_v37  ;;  %v1523_v26 = vmax.f32 %v1521_v61, %v1522_v17 }
 0x2af   :  { %v1796_v11 = vunpack.c.l.b16 %v1604_v27  ;;  %v1606_v55 = vpack.c.bf16 %v1517_v22, %v1517_v22 }
 0x2b0   :  { %v1797_v14 = vunpack.c.l.b16 %v1605_v58  ;;  %v1607_v32 = vpack.c.bf16 %v1523_v26, %v1523_v26 }
 0x2b1   :  { %v1798_v54 = vunpack.c.l.b16 %v1606_v55  ;;  %v1155_v50 = vpop.f32.mrb[60].mxu0  ;;  %v1856_v20 = vsel %vm1810_vm3, %v1796_v11, %v1855_v57 }
 0x2b2   :  { %v1799_v42 = vunpack.c.l.b16 %v1607_v32  ;;  %v1156_v49 = vadd.f32 %v1155_v50, %v7151_v44  ;;  %v1157_v1 = vpop.f32.mrb[61].mxu0  ;;  %v1863_v2 = vsel %vm1810_vm3, %v1797_v14, %v1862_v15 }
 0x2b3   :  { %v1158_v52 = vadd.f32 %v1157_v1, %v7157_v12  ;;  %v1159_v13 = vpop.f32.mrb[62].mxu0  ;;  %v1857_v10 = vsel %vm1812_vm4, %v1798_v54, %v1856_v20 }
 0x2b4   :  { %v1524_v5 = vrot.slane %v1156_v49, 4  ;;  %v1160_v9 = vadd.f32 %v1159_v13, %v7151_v44  ;;  %v1161_v19 = vpop.f32.mrb[63].mxu0  ;;  %v1864_v55 = vsel %vm1812_vm4, %v1799_v42, %v1863_v2 }
 0x2b5   :  { %v1530_v61 = vrot.slane %v1158_v52, 4  ;;  %v1162_v57 = vadd.f32 %v1161_v19, %v7157_v12 }
 0x2b6   :  { %v1525_v34 = vmax.f32 %v1156_v49, %v1524_v5  ;;  %v1536_v31 = vrot.slane %v1160_v9, 4  ;;  %v7604_v50 = vpack.c.bf16 %v1160_v9, %v1156_v49 }
 0x2b7   :  { %v1531_v37 = vmax.f32 %v1158_v52, %v1530_v61  ;;  %v1542_v15 = vrot.slane %v1162_v57, 4  ;;  %v7606_v17 = vpack.c.bf16 %v1162_v57, %v1158_v52 }
 0x2b8   :  { %v1526_v27 = vrot.slane %v1525_v34, 2  ;;  %v1537_v22 = vmax.f32 %v1160_v9, %v1536_v31 }
 0x2b9   :  { %v1532_v54 = vrot.slane %v1531_v37, 2  ;;  %v1543_v58 = vmax.f32 %v1162_v57, %v1542_v15  ;;  %v7608_v26 = vpop.f32.mrb[64].mxu0  ;;  %2899 = vmatprep.mubr.bf16.mxu0 %v7606_v17 }
 0x2ba   :  { %9378 = vst [vmem:[#allocation15_spill] sm:$0xff] %v7608_v26  ;;  %v1527_v44 = vmax.f32 %v1525_v34, %v1526_v27  ;;  %v1538_v11 = vrot.slane %v1537_v22, 2  ;;  %v7611_v14 = vpop.f32.mrb[65].mxu0  ;;  %2900 = vmatmul.mubr.bf16.gmra.mrb[124].mxu0 %v7604_v50 }
 0x2bb   :  { %v1533_v12 = vmax.f32 %v1531_v37, %v1532_v54  ;;  %v1544_v32 = vrot.slane %v1543_v58, 2  ;;  %v7614_v20 = vpop.f32.mrb[66].mxu0 }
 0x2bc   :  { %9379 = vst [vmem:[#allocation16_spill] sm:$0xff] %v7614_v20  ;;  %v1528_v42 = vrot.slane %v1527_v44, 1  ;;  %v1539_v49 = vmax.f32 %v1537_v22, %v1538_v11  ;;  %v7616_v1 = vpop.f32.mrb[67].mxu0 }
 0x2bd   :  { %v1534_v2 = vrot.slane %v1533_v12, 1  ;;  %v1545_v52 = vmax.f32 %v1543_v58, %v1544_v32 }
 0x2be   :  { %v1529_v13 = vmax.f32 %v1527_v44, %v1528_v42  ;;  %v1540_v5 = vrot.slane %v1539_v49, 1 }
 0x2bf   :  { %v1535_v9 = vmax.f32 %v1533_v12, %v1534_v2  ;;  %v1546_v19 = vrot.slane %v1545_v52, 1 }
 0x2c0   :  { %v1608_v61 = vpack.c.bf16 %v1529_v13, %v1529_v13  ;;  %v1541_v57 = vmax.f32 %v1539_v49, %v1540_v5 }
 0x2c1   :  { %v1609_v34 = vpack.c.bf16 %v1535_v9, %v1535_v9  ;;  %v1547_v31 = vmax.f32 %v1545_v52, %v1546_v19  ;;  %v7618_v15 = vpop.f32.mrb[68].mxu0  ;;  %v6355_v19 = vld [vmem:[#allocation5 + $0x2c] ss:$16 sps:$4 sm:$0xff]  }
 0x2c2   :  { %v1800_v37 = vunpack.c.l.b16 %v1608_v61  ;;  %v1610_v27 = vpack.c.bf16 %v1541_v57, %v1541_v57  ;;  %v7620_v54 = vpop.f32.mrb[69].mxu0  ;;  %v6353_v57 = vld [vmem:[#allocation5 + $0x28] ss:$16 sps:$4 sm:$0xff]  }
 0x2c3   :  { %v1801_v20 = vunpack.c.l.b16 %v1609_v34  ;;  %v1611_v22 = vpack.c.bf16 %v1547_v31, %v1547_v31  ;;  %v7622_v11 = vpop.f32.mrb[70].mxu0  ;;  %v6358_v34 = vld [vmem:[#allocation5 + $0x4c] ss:$16 sps:$4 sm:$0xff]  }
 0x2c4   :  { %v7624_v26 = vpop.f32.mrb[71].mxu0  ;;  %v1802_v58 = vunpack.c.l.b16 %v1610_v27  ;;  %v1858_v44 = vsel %vm1814_vm5, %v1800_v37, %v1857_v10  ;;  %v6361_v37 = vld [vmem:[#allocation5 + $0x6c] ss:$16 sps:$4 sm:$0xff]  }
 0x2c5   :  { %v1803_v12 = vunpack.c.l.b16 %v1611_v22  ;;  %v1865_v32 = vsel %vm1814_vm5, %v1801_v20, %v1864_v55  ;;  %v6350_v55 = vld [vmem:[#allocation5 + $0x8] ss:$16 sps:$4 sm:$0xff]  }
 0x2c6   :  { %v1859_v42 = vsel %vm1816_vm6, %v1802_v58, %v1858_v44  ;;  %v6359_v58 = vld [vmem:[#allocation5 + $0x68] ss:$16 sps:$4 sm:$0xff]   ;;  %v6398_v44 = vld [vmem:[%s9319_s12 + $0x40] sm:$0xff]  }
 0x2c7   :  { %v1866_v49 = vsel %vm1816_vm6, %v1803_v12, %v1865_v32  ;;  %v1869_v2 = vpack.c.b16 %v1859_v42, %v7556_v24  ;;  %v6364_v12 = vld [vmem:[#allocation5 + $0x8c] ss:$16 sps:$4 sm:$0xff]   ;;  %5877 = vmatprep.subr.bf16.mxu0 %v6398_v44  ;;  %v6362_v32 = vld [vmem:[#allocation5 + $0x88] ss:$16 sps:$4 sm:$0xff]  }
 0x2c8   :  { %v1870_v52 = vpack.c.b16 %v1866_v49, %v7560_v40  ;;  %v6367_v49 = vld [vmem:[#allocation5 + $0xac] ss:$16 sps:$4 sm:$0xff]  }
 0x2c9   :  { %v7632_v13 = vpop.f32.mrb[72].mxu0 }
 0x2ca   :  { %2237 = vmatprep.mubr.bf16.mxu1 %v1870_v52  ;;  %v7634_v5 = vpop.f32.mrb[73].mxu0 }
 0x2cb   :  { %2238 = vmatmul.mubr.bf16.gmra.mrb[4].mxu1 %v1869_v2  ;;  %v7636_v9 = vpop.f32.mrb[74].mxu0 }
 0x2cc   :  { %2280 = vmatprep.mubr.bf16.mxu1 %v7409_v38  ;;  %v7639_v10 = vpop.f32.mrb[75].mxu0  ;;  %v6356_v38 = vld [vmem:[#allocation5 + $0x48] ss:$16 sps:$4 sm:$0xff]  }
 0x2d1   :  { %v7641_v20 = vpop.f32.mrb[76].mxu0 }
 0x2d2   :  { %v7643_v61 = vpop.f32.mrb[77].mxu0 }
 0x2d3   :  { %2281 = vmatmul.mubr.bf16.vlgmr.msra.gmra.mrb[8].mxu1 %v7405_v18  ;;  %v7646_v24 = vpop.f32.mrb[78].mxu0 }
 0x2d4   :  { %2911 = vmatpush1.bf16.msra.mxu1 %v6350_v55  ;;  %2290 = vmatprep.mubr.bf16.mxu1 %v1870_v52  ;;  %v7648_v40 = vpop.f32.mrb[79].mxu0 }
 0x2d5   :  { %2912 = vmatprep.subr.bf16.mxu1 %v6355_v19  ;;  %v6365_v19 = vld [vmem:[#allocation5 + $0xa8] ss:$16 sps:$4 sm:$0xff]  }
 0x2d8   :  { %2913 = vmatpush1.bf16.msra.mxu1 %v6353_v57  ;;  %v6370_v57 = vld [vmem:[#allocation5 + $0xcc] ss:$16 sps:$4 sm:$0xff]  }
 0x2d9   :  { %v7650_v31 = vpop.f32.mrb[80].mxu0  ;;  %2914 = vmatprep.subr.bf16.mxu1 %v6358_v34  ;;  %v6368_v34 = vld [vmem:[#allocation5 + $0xc8] ss:$16 sps:$4 sm:$0xff]  }
 0x2da   :  { %9380 = vst [vmem:[#allocation17_spill] sm:$0xff] %v7650_v31  ;;  %v7652_v27 = vpop.f32.mrb[81].mxu0 }
 0x2db   :  { %2291 = vmatmul.mubr.bf16.gmra.mrb[12].mxu1 %v1869_v2  ;;  %v7654_v22 = vpop.f32.mrb[82].mxu0 }
 0x2dc   :  { %9381 = vst [vmem:[#allocation18_spill] sm:$0xff] %v7654_v22  ;;  %2915 = vmatpush1.bf16.msra.mxu1 %v6356_v38  ;;  %v7656_v18 = vpop.f32.mrb[83].mxu0  ;;  %2942 = vmatprep.mubr.bf16.mxu1 %v7177_v48  ;;  %v6399_v48 = vld [vmem:[%s9319_s12] sm:$0xff]  }
 0x2dd   :  { %9382 = vst [vmem:[#allocation19_spill] sm:$0xff] %v7656_v18  ;;  %2916 = vmatprep.subr.bf16.mxu1 %v6361_v37  ;;  %5878 = vmatpush3.bf16.msra.mxu0 %v6399_v48  ;;  %v6373_v37 = vld [vmem:[#allocation5 + $0xec] ss:$16 sps:$4 sm:$0xff]   ;;  %v6374_v48 = vld [vmem:[#allocation5 + $0x108] ss:$16 sps:$4 sm:$0xff]  }
 0x2e0   :  { %2917 = vmatpush1.bf16.msra.mxu1 %v6359_v58 }
 0x2e1   :  { %v7662_v42 = vpop.f32.mrb[84].mxu0  ;;  %2918 = vmatprep.subr.bf16.mxu1 %v6364_v12 }
 0x2e2   :  { %9383 = vst [vmem:[#allocation20_spill] sm:$0xff] %v7662_v42  ;;  %v7664_v2 = vpop.f32.mrb[85].mxu0 }
 0x2e3   :  { %9384 = vst [vmem:[#allocation21_spill] sm:$0xff] %v7664_v2  ;;  %v7666_v52 = vpop.f32.mrb[86].mxu0 }
 0x2e4   :  { %9385 = vst [vmem:[#allocation22_spill] sm:$0xff] %v7666_v52  ;;  %2919 = vmatpush1.bf16.msra.mxu1 %v6362_v32  ;;  %v7671_v55 = vpop.f32.mrb[87].mxu0  ;;  %v6371_v32 = vld [vmem:[#allocation5 + $0xe8] ss:$16 sps:$4 sm:$0xff]   ;;  %v6376_v52 = vld [vmem:[#allocation5 + $0x10c] ss:$16 sps:$4 sm:$0xff]  }
 0x2e5   :  { %9386 = vst [vmem:[#allocation23_spill] sm:$0xff] %v7671_v55  ;;  %2920 = vmatprep.subr.bf16.mxu1 %v6367_v49  ;;  %v6400_v49 = vld [vmem:[%s9319_s12 + $0x48] sm:$0xff]  }
 0x2e6   :  { %5879 = vmatprep.subr.bf16.mxu0 %v6400_v49  ;;  %v6385_v49 = vld [vmem:[#allocation5 + $0x16c] ss:$16 sps:$4 sm:$0xff]  }
 0x2e8   :  { %2921 = vmatpush1.bf16.msra.mxu1 %v6365_v19  ;;  %v6379_v19 = vld [vmem:[#allocation5 + $0x12c] ss:$16 sps:$4 sm:$0xff]  }
 0x2e9   :  { %v7673_v38 = vpop.f32.mrb[88].mxu0  ;;  %2922 = vmatprep.subr.bf16.mxu1 %v6370_v57  ;;  %v6401_v57 = vld [vmem:[%s9319_s12 + $0x8] sm:$0xff]  }
 0x2ea   :  { %9387 = vst [vmem:[#allocation24_spill] sm:$0xff] %v7673_v38  ;;  %v7675_v58 = vpop.f32.mrb[89].mxu0  ;;  %5880 = vmatpush3.bf16.msra.mxu0 %v6401_v57  ;;  %v6386_v57 = vld [vmem:[#allocation5 + $0x188] ss:$16 sps:$4 sm:$0xff]  }
 0x2eb   :  { %9388 = vst [vmem:[#allocation25_spill] sm:$0xff] %v7675_v58  ;;  %v7677_v44 = vpop.f32.mrb[90].mxu0  ;;  %v6383_v58 = vld [vmem:[#allocation5 + $0x168] ss:$16 sps:$4 sm:$0xff]  }
 0x2ec   :  { %9389 = vst [vmem:[#allocation26_spill] sm:$0xff] %v7677_v44  ;;  %2923 = vmatpush1.bf16.msra.mxu1 %v6368_v34  ;;  %v7679_v12 = vpop.f32.mrb[91].mxu0  ;;  %v6377_v34 = vld [vmem:[#allocation5 + $0x128] ss:$16 sps:$4 sm:$0xff]  }
 0x2ed   :  { %9390 = vst [vmem:[#allocation27_spill] sm:$0xff] %v7679_v12  ;;  %2924 = vmatprep.subr.bf16.mxu1 %v6373_v37  ;;  %v6382_v37 = vld [vmem:[#allocation5 + $0x14c] ss:$16 sps:$4 sm:$0xff]  }
 0x2f0   :  { %2925 = vmatpush1.bf16.msra.mxu1 %v6371_v32 }
 0x2f1   :  { %2926 = vmatprep.subr.bf16.mxu1 %v6376_v52  ;;  %v6380_v52 = vld [vmem:[#allocation5 + $0x148] ss:$16 sps:$4 sm:$0xff]  }
 0x2f4   :  { %2927 = vmatpush1.bf16.msra.mxu1 %v6374_v48  ;;  %v6388_v48 = vld [vmem:[#allocation5 + $0x18c] ss:$16 sps:$4 sm:$0xff]  }
 0x2f5   :  { %v7687_v44 = vpop.f32.mrb[92].mxu0  ;;  %2928 = vmatprep.subr.bf16.mxu1 %v6379_v19  ;;  %v6402_v19 = vld [vmem:[%s9319_s12 + $0x50] sm:$0xff]  }
 0x2f6   :  { %9391 = vst [vmem:[#allocation28_spill] sm:$0xff] %v7687_v44  ;;  %v7689_v38 = vpop.f32.mrb[93].mxu0  ;;  %5881 = vmatprep.subr.bf16.mxu0 %v6402_v19  ;;  %v6391_v44 = vld [vmem:[#allocation5 + $0x1ac] ss:$16 sps:$4 sm:$0xff]  }
 0x2f7   :  { %9392 = vst [vmem:[#allocation29_spill] sm:$0xff] %v7689_v38  ;;  %v7691_v12 = vpop.f32.mrb[94].mxu0  ;;  %v6406_v19 = vld [vmem:[%s9319_s12 + $0x58] sm:$0xff]  }
 0x2f8   :  { %9393 = vst [vmem:[#allocation30_spill] sm:$0xff] %v7691_v12  ;;  %2929 = vmatpush1.bf16.msra.mxu1 %v6377_v34  ;;  %v7693_v32 = vpop.f32.mrb[95].mxu0  ;;  %v6403_v34 = vld [vmem:[%s9319_s12 + $0x10] sm:$0xff]  }
 0x2f9   :  { %9394 = vst [vmem:[#allocation31_spill] sm:$0xff] %v7693_v32  ;;  %2930 = vmatprep.subr.bf16.mxu1 %v6382_v37  ;;  %v6389_v37 = vld [vmem:[#allocation5 + $0x1a8] ss:$16 sps:$4 sm:$0xff]   ;;  %5882 = vmatpush3.bf16.msra.mxu0 %v6403_v34  ;;  %v6397_v34 = vld [vmem:[#allocation5 + $0x1ec] ss:$16 sps:$4 sm:$0xff]  }
 0x2fa   :  { %5883 = vmatprep.subr.bf16.mxu0 %v6406_v19 }
 0x2fc   :  { %2931 = vmatpush1.bf16.msra.mxu1 %v6380_v52  ;;  %v6394_v52 = vld [vmem:[#allocation5 + $0x1cc] ss:$16 sps:$4 sm:$0xff]  }
 0x2fd   :  { %2932 = vmatprep.subr.bf16.mxu1 %v6385_v49 }
 0x300   :  { %2933 = vmatpush1.bf16.msra.mxu1 %v6383_v58  ;;  %v6395_v58 = vld [vmem:[#allocation5 + $0x1e8] ss:$16 sps:$4 sm:$0xff]  }
 0x301   :  { %2934 = vmatprep.subr.bf16.mxu1 %v6388_v48 }
 0x304   :  { %2935 = vmatpush1.bf16.msra.mxu1 %v6386_v57  ;;  %v6392_v57 = vld [vmem:[#allocation5 + $0x1c8] ss:$16 sps:$4 sm:$0xff]  }
 0x305   :  { %2936 = vmatprep.subr.bf16.mxu1 %v6391_v44 }
 0x306   :  { %v7701_v49 = vpop.f32.mrb[0].mxu1 }
 0x307   :  { %v7703_v12 = vpop.f32.mrb[1].mxu1 }
 0x308   :  { %2937 = vmatpush1.bf16.msra.mxu1 %v6389_v37  ;;  %v7709_v48 = vpop.f32.mrb[2].mxu1  ;;  %v7711_v32 = vpop.f32.mrb[96].mxu0 }
 0x309   :  { %9395 = vst [vmem:[#allocation32_spill] sm:$0xff] %v7711_v32  ;;  %v7713_v38 = vpop.f32.mrb[3].mxu1  ;;  %v7715_v44 = vpop.f32.mrb[97].mxu0  ;;  %2938 = vmatprep.subr.bf16.mxu1 %v6394_v52  ;;  %v6404_v32 = vld [vmem:[%s9319_s12 + $0xc0] sm:$0xff]  }
 0x30a   :  { %9396 = vst [vmem:[#allocation33_spill] sm:$0xff] %v7715_v44  ;;  %v7721_v55 = vpop.f32.mrb[98].mxu0  ;;  %v7731_v52 = vld [vmem:[%s9319_s12 + $0x80] sm:$0xff]  }
 0x30b   :  { %9397 = vst [vmem:[#allocation34_spill] sm:$0xff] %v7721_v55  ;;  %v7723_v37 = vpop.f32.mrb[99].mxu0  ;;  %v9443_v55 = vld [vmem:[#allocation14_spill] sm:$0xff] }
 0x30c   :  { %9398 = vst [vmem:[#allocation35_spill] sm:$0xff] %v7723_v37  ;;  %2939 = vmatpush1.bf16.msra.mxu1 %v6392_v57  ;;  %v6407_v57 = vld [vmem:[%s9319_s12 + $0x18] sm:$0xff]  }
 0x30d   :  { %2940 = vmatprep.subr.bf16.mxu1 %v6397_v34  ;;  %v7742_v34 = vld [vmem:[%s9319_s12 + $0xc8] sm:$0xff]   ;;  %5884 = vmatpush3.bf16.msra.mxu0 %v6407_v57  ;;  %v6410_v57 = vld [vmem:[%s9319_s12 + $0x60] sm:$0xff]  }
 0x30e   :  { %5885 = vmatprep.subr.bf16.mxu0 %v6410_v57 }
 0x310   :  { %2941 = vmatpush1.bf16.msra.mxu1 %v6395_v58  ;;  %v7750_v58 = vld [vmem:[%s9319_s12 + $0x88] sm:$0xff]  }
 0x311   :  { %6101 = vmatprep.subr.bf16.mxu1 %v6404_v32 }
 0x313   :  { %2943 = vmatmul.mubr.bf16.vlgmr.msra.gmra.mrb[16].mxu1 %v7175_v28 }
 0x314   :  { %2952 = vmatprep.mubr.bf16.mxu1 %v7262_v30  ;;  %6109 = vmatpush3.bf16.msra.mxu1 %v7731_v52 }
 0x315   :  { %6102 = vmatprep.subr.bf16.mxu1 %v7742_v34 }
 0x318   :  { %6110 = vmatpush3.bf16.msra.mxu1 %v7750_v58 }
 0x31b   :  { %2953 = vmatmul.mubr.bf16.gmra.mrb[20].mxu1 %v7266_v33  ;;  %v7755_v42 = vpop.f32.mrb[100].mxu0  ;;  %v6411_v33 = vld [vmem:[%s9319_s12 + $0x20] sm:$0xff]  }
 0x31c   :  { %9399 = vst [vmem:[#allocation36_spill] sm:$0xff] %v7755_v42  ;;  %2962 = vmatprep.mubr.bf16.mxu1 %v7292_v56  ;;  %v7758_v28 = vpop.f32.mrb[101].mxu0  ;;  %v7775_v56 = vld [vmem:[%s9319_s12 + $0xd0] sm:$0xff]   ;;  %5886 = vmatpush3.bf16.msra.mxu0 %v6411_v33  ;;  %v7806_v33 = vld [vmem:[%s9319_s12 + $0xd8] sm:$0xff]  }
 0x31d   :  { %9400 = vst [vmem:[#allocation37_spill] sm:$0xff] %v7758_v28  ;;  %v7760_v30 = vpop.f32.mrb[102].mxu0  ;;  %6103 = vmatprep.subr.bf16.mxu1 %v7775_v56 }
 0x31e   :  { %9401 = vst [vmem:[#allocation38_spill] sm:$0xff] %v7760_v30  ;;  %v7762_v19 = vpop.f32.mrb[103].mxu0 }
 0x31f   :  { %9402 = vst [vmem:[#allocation39_spill] sm:$0xff] %v7762_v19 }
 0x323   :  { %2963 = vmatmul.mubr.bf16.gmra.mrb[24].mxu1 %v7296_v0  ;;  %v7781_v0 = vld [vmem:[%s9319_s12 + $0x90] sm:$0xff]  }
 0x324   :  { %2972 = vmatprep.mubr.bf16.mxu1 %v7322_v63  ;;  %6111 = vmatpush3.bf16.msra.mxu1 %v7781_v0 }
 0x325   :  { %6104 = vmatprep.subr.bf16.mxu1 %v7806_v33 }
 0x32b   :  { %2973 = vmatmul.mubr.bf16.gmra.mrb[28].mxu1 %v7320_v35  ;;  %v6414_v35 = vld [vmem:[%s9319_s12 + $0x68] sm:$0xff]  }
 0x32c   :  { %2982 = vmatprep.mubr.bf16.mxu1 %v7344_v62  ;;  %v6415_v62 = vld [vmem:[%s9319_s12 + $0x28] sm:$0xff]   ;;  %5887 = vmatprep.subr.bf16.mxu0 %v6414_v35  ;;  %v6421_v35 = vld [vmem:[%s9319_s12 + $0x38] sm:$0xff]  }
 0x32d   :  { %5888 = vmatpush3.bf16.msra.mxu0 %v6415_v62 }
 0x32e   :  { %v7786_v63 = vpop.f32.mrb[104].mxu0 }
 0x32f   :  { %9403 = vst [vmem:[#allocation40_spill] sm:$0xff] %v7786_v63  ;;  %v7788_v30 = vpop.f32.mrb[105].mxu0 }
 0x330   :  { %9404 = vst [vmem:[#allocation41_spill] sm:$0xff] %v7788_v30  ;;  %v7790_v42 = vpop.f32.mrb[106].mxu0 }
 0x331   :  { %9405 = vst [vmem:[#allocation42_spill] sm:$0xff] %v7790_v42  ;;  %v7792_v57 = vpop.f32.mrb[107].mxu0 }
 0x332   :  { %9406 = vst [vmem:[#allocation43_spill] sm:$0xff] %v7792_v57  ;;  %v9441_v57 = vld [vmem:[#allocation12_spill] sm:$0xff] }
 0x333   :  { %2983 = vmatmul.mubr.bf16.gmra.mrb[32].mxu1 %v7341_v8  ;;  %v7812_v8 = vld [vmem:[%s9319_s12 + $0x98] sm:$0xff]  }
 0x334   :  { %2992 = vmatprep.mubr.bf16.mxu1 %v7359_v59  ;;  %9407 = vst [vmem:[#allocation44_spill] sm:$0xff] %v7812_v8  ;;  %6112 = vmatpush3.bf16.msra.mxu1 %v7812_v8  ;;  %v6419_v59 = vld [vmem:[%s9319_s12 + $0x30] sm:$0xff]  }
 0x33b   :  { %2993 = vmatmul.mubr.bf16.gmra.mrb[36].mxu1 %v7357_v47  ;;  %v6418_v47 = vld [vmem:[%s9319_s12 + $0x70] sm:$0xff]  }
 0x33c   :  { %3002 = vmatprep.mubr.bf16.mxu1 %v7375_v39  ;;  %5889 = vmatprep.subr.bf16.mxu0 %v6418_v47  ;;  %v6420_v39 = vld [vmem:[%s9319_s12 + $0x78] sm:$0xff]  }
 0x33d   :  { %5890 = vmatpush3.bf16.msra.mxu0 %v6419_v59  ;;  %v7842_v59 = vld [vmem:[%s9319_s12 + $0xe0] sm:$0xff]  }
 0x33e   :  { %5891 = vmatprep.subr.bf16.mxu0 %v6420_v39  ;;  %9412 = vst [vmem:[#allocation49_spill] sm:$0xff] %v7842_v59  ;;  %6105 = vmatprep.subr.bf16.mxu1 %v7842_v59 }
 0x341   :  { %v7825_v42 = vpop.f32.mrb[108].mxu0  ;;  %5892 = vmatpush3.bf16.msra.mxu0 %v6421_v35  ;;  %v7870_v35 = vld [vmem:[%s9319_s12 + $0xa8] sm:$0xff]  }
 0x342   :  { %9408 = vst [vmem:[#allocation45_spill] sm:$0xff] %v7825_v42  ;;  %v7827_v63 = vpop.f32.mrb[109].mxu0  ;;  %5989 = vmatprep.subr.bf16.mxu0 %v6404_v32  ;;  %9419 = vst [vmem:[#allocation56_spill] sm:$0xff] %v7870_v35 }
 0x343   :  { %9409 = vst [vmem:[#allocation46_spill] sm:$0xff] %v7827_v63  ;;  %3003 = vmatmul.mubr.bf16.gmra.mrb[40].mxu1 %v7373_v29  ;;  %v7833_v62 = vpop.f32.mrb[110].mxu0  ;;  %v7847_v29 = vld [vmem:[%s9319_s12 + $0xa0] sm:$0xff]  }
 0x344   :  { %9410 = vst [vmem:[#allocation47_spill] sm:$0xff] %v7833_v62  ;;  %3012 = vmatprep.mubr.bf16.mxu1 %v7393_v16  ;;  %v7836_v47 = vpop.f32.mrb[111].mxu0  ;;  %9413 = vst [vmem:[#allocation50_spill] sm:$0xff] %v7847_v29  ;;  %6113 = vmatpush3.bf16.msra.mxu1 %v7847_v29 }
 0x345   :  { %9411 = vst [vmem:[#allocation48_spill] sm:$0xff] %v7836_v47 }
 0x34b   :  { %3013 = vmatmul.mubr.bf16.gmra.mrb[44].mxu1 %v7391_v7 }
 0x34c   :  { %3022 = vmatprep.mubr.bf16.mxu1 %v7420_v43  ;;  %v7865_v43 = vld [vmem:[%s9319_s12 + $0xe8] sm:$0xff]  }
 0x34d   :  { %9418 = vst [vmem:[#allocation55_spill] sm:$0xff] %v7865_v43  ;;  %6106 = vmatprep.subr.bf16.mxu1 %v7865_v43 }
 0x34e   :  { %6114 = vmatpush3.bf16.msra.mxu1 %v7870_v35 }
 0x353   :  { %3023 = vmatmul.mubr.bf16.gmra.mrb[48].mxu1 %v7414_v6 }
 0x354   :  { %3032 = vmatprep.mubr.bf16.mxu1 %v7460_v60  ;;  %v7854_v7 = vpop.f32.mrb[112].mxu0 }
 0x355   :  { %9414 = vst [vmem:[#allocation51_spill] sm:$0xff] %v7854_v7  ;;  %v7856_v16 = vpop.f32.mrb[113].mxu0 }
 0x356   :  { %9415 = vst [vmem:[#allocation52_spill] sm:$0xff] %v7856_v16  ;;  %v7858_v32 = vpop.f32.mrb[114].mxu0 }
 0x357   :  { %9416 = vst [vmem:[#allocation53_spill] sm:$0xff] %v7858_v32  ;;  %v7860_v39 = vpop.f32.mrb[115].mxu0 }
 0x358   :  { %9417 = vst [vmem:[#allocation54_spill] sm:$0xff] %v7860_v39 }
 0x35b   :  { %3033 = vmatmul.mubr.bf16.gmra.mrb[52].mxu1 %v7455_v25 }
 0x35c   :  { %3042 = vmatprep.mubr.bf16.mxu1 %v7501_v41  ;;  %v7891_v41 = vld [vmem:[%s9319_s12 + $0xf0] sm:$0xff]  }
 0x35d   :  { %9424 = vst [vmem:[#allocation61_spill] sm:$0xff] %v7891_v41  ;;  %6107 = vmatprep.subr.bf16.mxu1 %v7891_v41 }
 0x363   :  { %3043 = vmatmul.mubr.bf16.gmra.mrb[56].mxu1 %v7499_v36  ;;  %v7896_v36 = vld [vmem:[%s9319_s12 + $0xb0] sm:$0xff]  }
 0x364   :  { %3052 = vmatprep.mubr.bf16.mxu1 %v7545_v46  ;;  %9425 = vst [vmem:[#allocation62_spill] sm:$0xff] %v7896_v36  ;;  %6115 = vmatpush3.bf16.msra.mxu1 %v7896_v36 }
 0x368   :  { %v7878_v6 = vpop.f32.mrb[116].mxu0 }
 0x369   :  { %9420 = vst [vmem:[#allocation57_spill] sm:$0xff] %v7878_v6  ;;  %v7880_v60 = vpop.f32.mrb[117].mxu0  ;;  %v7915_v6 = vld [vmem:[%s9319_s12 + $0xf8] sm:$0xff]  }
 0x36a   :  { %9421 = vst [vmem:[#allocation58_spill] sm:$0xff] %v7880_v60  ;;  %v7883_v32 = vpop.f32.mrb[118].mxu0  ;;  %9430 = vst [vmem:[#allocation67_spill] sm:$0xff] %v7915_v6  ;;  %6108 = vmatprep.subr.bf16.mxu1 %v7915_v6 }
 0x36b   :  { %3053 = vmatmul.mubr.bf16.gmra.mrb[60].mxu1 %v7543_v4  ;;  %9422 = vst [vmem:[#allocation59_spill] sm:$0xff] %v7883_v32  ;;  %v7886_v25 = vpop.f32.mrb[119].mxu0 }
 0x36c   :  { %3062 = vmatprep.mubr.bf16.mxu1 %v7566_v51  ;;  %9423 = vst [vmem:[#allocation60_spill] sm:$0xff] %v7886_v25 }
 0x373   :  { %3063 = vmatmul.mubr.bf16.gmra.mrb[64].mxu1 %v7564_v23  ;;  %v7920_v23 = vld [vmem:[%s9319_s12 + $0xb8] sm:$0xff]  }
 0x374   :  { %3072 = vmatprep.mubr.bf16.mxu1 %v7578_v53  ;;  %9431 = vst [vmem:[#allocation68_spill] sm:$0xff] %v7920_v23  ;;  %6116 = vmatpush3.bf16.msra.mxu1 %v7920_v23 }
 0x37a   :  { %v7902_v4 = vpop.f32.mrb[120].mxu0 }
 0x37b   :  { %9426 = vst [vmem:[#allocation63_spill] sm:$0xff] %v7902_v4  ;;  %3073 = vmatmul.mubr.bf16.gmra.mrb[68].mxu1 %v7576_v45  ;;  %v7905_v46 = vpop.f32.mrb[121].mxu0  ;;  %v6514_v4 = vmov 1966171168  }
 0x37c   :  { %9427 = vst [vmem:[#allocation64_spill] sm:$0xff] %v7905_v46  ;;  %3082 = vmatprep.mubr.bf16.mxu1 %v7591_v21  ;;  %v7908_v51 = vpop.f32.mrb[122].mxu0 }
 0x37d   :  { %9428 = vst [vmem:[#allocation65_spill] sm:$0xff] %v7908_v51  ;;  %v7910_v32 = vpop.f32.mrb[123].mxu0 }
 0x37e   :  { %9429 = vst [vmem:[#allocation66_spill] sm:$0xff] %v7910_v32  ;;  %v3124_v32 = vunpack.c.l.s4 %v6514_v4  ;;  %v4309_v4 = vld [vmem:[%s9317_s10] sm:$0xf] }
 0x37f   :  { %v7985_v44 = vrot.slane %v4309_v4, %v9443_v55 }
 0x380   :  { %v3125_v46 = vunpack.c.0.s8 %v3124_v32  ;;  %v4459_v32 = vld [vmem:[%s9318_s11] sm:$0xf]  ;;  %s6515_s11 = smov [#allocation7]  }
 0x381   :  { %9445 = vst [vmem:[#allocation12_spill] sm:$0xff] %v7985_v44  ;;  %v7988_v23 = vrot.slane %v4459_v32, %v9443_v55 }
 0x383   :  { %3083 = vmatmul.mubr.bf16.gmra.mrb[72].mxu1 %v7588_v3 }
 0x384   :  { %3092 = vmatprep.mubr.bf16.mxu1 %v7606_v17  ;;  %v9436_v17 = vld [vmem:[#allocation11_spill] sm:$0xff] }
 0x385   :  { %v7936_v62 = vsub.s32 %v3125_v46, %v9436_v17  ;;  %v7991_v6 = vsub.s32 3, %v9436_v17 }
 0x387   :  { %9447 = vst [vmem:[#allocation73_spill] sm:$0xff] %v7991_v6  ;;  %v8003_v44 = vrot.slane %v4459_v32, %v7991_v6 }
 0x389   :  { %9450 = vst [vmem:[#allocation76_spill] sm:$0xff] %v8003_v44 }
 0x38b   :  { %3093 = vmatmul.mubr.bf16.gmra.mrb[76].mxu1 %v7604_v50 }
 0x38d   :  { %v7927_v45 = vpop.f32.mrb[124].mxu0 }
 0x38e   :  { %9432 = vst [vmem:[#allocation69_spill] sm:$0xff] %v7927_v45  ;;  %v7929_v53 = vpop.f32.mrb[125].mxu0 }
 0x38f   :  { %9433 = vst [vmem:[#allocation70_spill] sm:$0xff] %v7929_v53  ;;  %v7931_v21 = vpop.f32.mrb[126].mxu0  ;;  %v9440_v53 = vcombine.high %v7709_v48, %v7713_v38 }
 0x390   :  { %9434 = vst [vmem:[#allocation71_spill] sm:$0xff] %v7931_v21  ;;  %v7933_v51 = vpop.f32.mrb[127].mxu0  ;;  %v4159_v21 = vld [vmem:[%s9316_s9] sm:$0xf] }
 0x391   :  { %9435 = vst [vmem:[#allocation72_spill] sm:$0xff] %v7933_v51  ;;  %v3204_v42 = vrot.slane %v9440_v53, %v7936_v62  ;;  %v7964_v30 = vrot.slane %v4159_v21, %v9441_v57  ;;  %v7982_v37 = vrot.slane %v4159_v21, %v9443_v55  ;;  %v7997_v43 = vrot.slane %v4159_v21, %v7991_v6 }
 0x393   :  { %9444 = vst [vmem:[#allocation11_spill] sm:$0xff] %v7982_v37  ;;  %9448 = vst [vmem:[#allocation74_spill] sm:$0xff] %v7997_v43  ;;  %v8000_v37 = vrot.slane %v4309_v4, %v7991_v6 }
 0x395   :  { %9449 = vst [vmem:[#allocation75_spill] sm:$0xff] %v8000_v37 }
 0x39e   :  { %v2239_v25 = vpop.f32.mrb[4].mxu1 }
 0x39f   :  { %v2241_v60 = vpop.f32.mrb[5].mxu1 }
 0x3a0   :  { %v3255_v7 = vcombine.low %v2239_v25, %v2241_v60  ;;  %v3256_v39 = vcombine.high %v2239_v25, %v2241_v60  ;;  %v2243_v3 = vpop.f32.mrb[6].mxu1  ;;  %v9437_v60 = vcombine.low %v7701_v49, %v7703_v12 }
 0x3a1   :  { %v2245_v16 = vpop.f32.mrb[7].mxu1 }
 0x3a2   :  { %v3323_v50 = vcombine.low %v2243_v3, %v2245_v16  ;;  %v3324_v45 = vcombine.high %v2243_v3, %v2245_v16  ;;  %v3129_v25 = vrot.slane %v9437_v60, %v7936_v62  ;;  %v9438_v16 = vcombine.high %v7701_v49, %v7703_v12  ;;  %v9442_v12 = vld [vmem:[#allocation13_spill] sm:$0xff] }
 0x3a3   :  { %v9439_v3 = vcombine.low %v7709_v48, %v7713_v38  ;;  %v7967_v60 = vrot.slane %v4309_v4, %v9441_v57  ;;  %v7970_v49 = vrot.slane %v4159_v21, %v9442_v12  ;;  %v7976_v38 = vrot.slane %v4459_v32, %v9441_v57  ;;  %9446 = vst [vmem:[#allocation13_spill] sm:$0xff] %v7988_v23 }
 0x3a4   :  { %v3136_v46 = vrot.slane %v9438_v16, %v7936_v62  ;;  %v7973_v16 = vrot.slane %v4309_v4, %v9442_v12  ;;  %v7979_v48 = vrot.slane %v4459_v32, %v9442_v12  ;;  %v3265_v35 = vrot.slane %v3255_v7, %v7936_v62 }
 0x3a5   :  { %v3197_v51 = vrot.slane %v9439_v3, %v7936_v62 }
 0x3a6   :  { %v2282_v47 = vpop.f32.mrb[8].mxu1 }
 0x3a7   :  { %v2284_v63 = vpop.f32.mrb[9].mxu1 }
 0x3a8   :  { %v3121_v3 = vcombine.low %v2282_v47, %v2284_v63  ;;  %v3122_v19 = vcombine.high %v2282_v47, %v2284_v63  ;;  %v2286_v28 = vpop.f32.mrb[10].mxu1 }
 0x3a9   :  { %v2288_v53 = vpop.f32.mrb[11].mxu1 }
 0x3aa   :  { %v3143_v63 = vrot.slane %v3121_v3, %v7936_v62  ;;  %v3150_v47 = vrot.slane %v3122_v19, %v7936_v62  ;;  %v3189_v36 = vcombine.low %v2286_v28, %v2288_v53  ;;  %v3190_v41 = vcombine.high %v2286_v28, %v2288_v53 }
 0x3ab   :  { %v3272_v3 = vrot.slane %v3256_v39, %v7936_v62  ;;  %v3333_v19 = vrot.slane %v3323_v50, %v7936_v62 }
 0x3ac   :  { %v3151_v23 = vcombine.low %v3129_v25, %v3143_v63  ;;  %v3152_v17 = vcombine.high %v3129_v25, %v3143_v63  ;;  %v3153_v29 = vcombine.low %v3136_v46, %v3150_v47  ;;  %v3154_v55 = vcombine.high %v3136_v46, %v3150_v47 }
 0x3ad   :  { %v3211_v28 = vrot.slane %v3189_v36, %v7936_v62  ;;  %v3218_v7 = vrot.slane %v3190_v41, %v7936_v62  ;;  %v3340_v41 = vrot.slane %v3324_v45, %v7936_v62 }
 0x3ae   :  { %v8010_v21 = vrot.slane %v3151_v23, %v7936_v62  ;;  %v8013_v4 = vrot.slane %v3153_v29, %v7936_v62  ;;  %v8016_v32 = vrot.slane %v3152_v17, %v7936_v62  ;;  %v8019_v25 = vrot.slane %v3154_v55, %v7936_v62  ;;  %v2292_v46 = vpop.f32.mrb[12].mxu1 }
 0x3af   :  { %v3219_v39 = vcombine.low %v3197_v51, %v3211_v28  ;;  %v3220_v53 = vcombine.high %v3197_v51, %v3211_v28  ;;  %v3221_v50 = vcombine.low %v3204_v42, %v3218_v7  ;;  %v3222_v63 = vcombine.high %v3204_v42, %v3218_v7  ;;  %v2294_v36 = vpop.f32.mrb[13].mxu1 }
 0x3b0   :  { %9451 = vst [vmem:[#allocation77_spill] sm:$0xff] %v8010_v21  ;;  %v8024_v23 = vcombine.high %v8010_v21, %v8010_v21  ;;  %v8028_v29 = vcombine.high %v8013_v4, %v8013_v4  ;;  %v8032_v55 = vcombine.high %v8016_v32, %v8016_v32  ;;  %v2296_v47 = vpop.f32.mrb[14].mxu1  ;;  %v8036_v51 = vcombine.high %v8019_v25, %v8019_v25 }
 0x3b1   :  { %v3394_v42 = vrot.slane %v8010_v21, %v9442_v12  ;;  %v8041_v45 = vrot.slane %v3219_v39, %v7936_v62  ;;  %v8044_v17 = vrot.slane %v3221_v50, %v7936_v62  ;;  %v2298_v28 = vpop.f32.mrb[15].mxu1  ;;  %v3410_v7 = vrot.slane %v8016_v32, %v9442_v12 }
 0x3b2   :  { %v8049_v44 = vrot.slane %v3220_v53, %v7936_v62  ;;  %v3257_v37 = vcombine.low %v2292_v46, %v2294_v36  ;;  %v3258_v43 = vcombine.high %v2292_v46, %v2294_v36  ;;  %v8052_v6 = vrot.slane %v3222_v63, %v7936_v62 }
 0x3b3   :  { %9452 = vst [vmem:[#allocation78_spill] sm:$0xff] %v8044_v17  ;;  %v8056_v2 = vcombine.high %v8041_v45, %v8041_v45  ;;  %v3325_v39 = vcombine.low %v2296_v47, %v2298_v28  ;;  %v3326_v59 = vcombine.high %v2296_v47, %v2298_v28  ;;  %v8060_v50 = vcombine.high %v8044_v17, %v8044_v17 }
 0x3b4   :  { %v8064_v22 = vcombine.high %v8049_v44, %v8049_v44  ;;  %v3279_v53 = vrot.slane %v3257_v37, %v7936_v62  ;;  %v3286_v46 = vrot.slane %v3258_v43, %v7936_v62  ;;  %v3398_v8 = vrot.slane %v8010_v21, %v9441_v57 }
 0x3b5   :  { %9453 = vst [vmem:[#allocation79_spill] sm:$0xff] %v8056_v2  ;;  %9454 = vst [vmem:[#allocation80_spill] sm:$0xff] %v8060_v50  ;;  %v3347_v63 = vrot.slane %v3325_v39, %v7936_v62  ;;  %v3354_v36 = vrot.slane %v3326_v59, %v7936_v62  ;;  %v3414_v47 = vrot.slane %v8016_v32, %v9441_v57 }
 0x3b6   :  { %9455 = vst [vmem:[#allocation81_spill] sm:$0xff] %v8064_v22  ;;  %v3287_v28 = vcombine.low %v3265_v35, %v3279_v53  ;;  %v3288_v50 = vcombine.high %v3265_v35, %v3279_v53  ;;  %v3289_v17 = vcombine.low %v3272_v3, %v3286_v46  ;;  %v3290_v2 = vcombine.high %v3272_v3, %v3286_v46 }
 0x3b7   :  { %v3355_v31 = vcombine.low %v3333_v19, %v3347_v63  ;;  %v3356_v22 = vcombine.high %v3333_v19, %v3347_v63  ;;  %v3357_v18 = vcombine.low %v3340_v41, %v3354_v36  ;;  %v3358_v37 = vcombine.high %v3340_v41, %v3354_v36  ;;  %v9465_v36 = vld [vmem:[#allocation15_spill] sm:$0xff] }
 0x3b8   :  { %v8075_v43 = vrot.slane %v3287_v28, %v7936_v62  ;;  %v8078_v39 = vrot.slane %v3289_v17, %v7936_v62  ;;  %v8081_v59 = vrot.slane %v3288_v50, %v7936_v62  ;;  %v8084_v21 = vrot.slane %v3290_v2, %v7936_v62 }
 0x3b9   :  { %v8088_v35 = vcombine.high %v8052_v6, %v8052_v6  ;;  %v8091_v3 = vrot.slane %v3355_v31, %v7936_v62  ;;  %v8094_v19 = vrot.slane %v3357_v18, %v7936_v62  ;;  %v8097_v41 = vrot.slane %v3356_v22, %v7936_v62 }
 0x3ba   :  { %v8101_v17 = vcombine.high %v8075_v43, %v8075_v43  ;;  %v8105_v2 = vcombine.high %v8078_v39, %v8078_v39  ;;  %v8109_v50 = vcombine.high %v8081_v59, %v8081_v59  ;;  %v8112_v31 = vrot.slane %v3358_v37, %v7936_v62  ;;  %v9466_v37 = vld [vmem:[#allocation16_spill] sm:$0xff] }
 0x3bb   :  { %9456 = vst [vmem:[#allocation82_spill] sm:$0xff] %v8091_v3  ;;  %9457 = vst [vmem:[#allocation83_spill] sm:$0xff] %v8094_v19  ;;  %v8116_v18 = vcombine.high %v8084_v21, %v8084_v21  ;;  %v8120_v22 = vcombine.high %v8091_v3, %v8091_v3  ;;  %v8124_v53 = vcombine.high %v8094_v19, %v8094_v19 }
 0x3bc   :  { %9458 = vst [vmem:[#allocation84_spill] sm:$0xff] %v8097_v41  ;;  %9459 = vst [vmem:[#allocation85_spill] sm:$0xff] %v8105_v2  ;;  %v8128_v46 = vcombine.high %v8097_v41, %v8097_v41  ;;  %v4032_v63 = vadd.f32 %v3398_v8, %v7611_v14  ;;  %v4036_v62 = vadd.f32 %v3414_v47, %v7616_v1 }
 0x3bd   :  { %9460 = vst [vmem:[#allocation86_spill] sm:$0xff] %v8112_v31  ;;  %9461 = vst [vmem:[#allocation87_spill] sm:$0xff] %v8116_v18  ;;  %v4031_v28 = vadd.f32 %v3394_v42, %v9465_v36  ;;  %v4035_v18 = vadd.f32 %v3410_v7, %v9466_v37  ;;  %v3430_v3 = vrot.slane %v8024_v23, %v9441_v57 }
 0x3be   :  { %9462 = vst [vmem:[#allocation88_spill] sm:$0xff] %v8120_v22  ;;  %9463 = vst [vmem:[#allocation89_spill] sm:$0xff] %v8124_v53  ;;  %v3446_v22 = vrot.slane %v8032_v55, %v9441_v57  ;;  %v3426_v53 = vrot.slane %v8024_v23, %v9442_v12  ;;  %v3442_v19 = vrot.slane %v8032_v55, %v9442_v12 }
 0x3bf   :  { %9464 = vst [vmem:[#allocation90_spill] sm:$0xff] %v8128_v46  ;;  %v4182_v14 = vadd.f32 %v7964_v30, %v4032_v63  ;;  %v4186_v1 = vadd.f32 %v7964_v30, %v4036_v62  ;;  %v4181_v8 = vadd.f32 %v7970_v49, %v4031_v28  ;;  %v4185_v42 = vadd.f32 %v7970_v49, %v4035_v18 }
 0x3c0   :  { %v4040_v7 = vadd.f32 %v3430_v3, %v7620_v54  ;;  %v4044_v47 = vadd.f32 %v3446_v22, %v7624_v26  ;;  %v4039_v36 = vadd.f32 %v3426_v53, %v7618_v15  ;;  %v4043_v37 = vadd.f32 %v3442_v19, %v7622_v11 }
 0x3c1   :  { %v4332_v46 = vmul.f32 %v7967_v60, %v4182_v14  ;;  %v4336_v41 = vmul.f32 %v7967_v60, %v4186_v1  ;;  %v4331_v63 = vmul.f32 %v7973_v16, %v4181_v8  ;;  %v4335_v62 = vmul.f32 %v7973_v16, %v4185_v42 }
 0x3c2   :  { %v4190_v28 = vadd.f32 %v7964_v30, %v4040_v7  ;;  %v4194_v18 = vadd.f32 %v7964_v30, %v4044_v47  ;;  %v4189_v54 = vadd.f32 %v7970_v49, %v4039_v36  ;;  %v4193_v26 = vadd.f32 %v7970_v49, %v4043_v37 }
 0x3c3   :  { %v4482_v15 = vadd.f32 %v7976_v38, %v4332_v46  ;;  %v4486_v11 = vadd.f32 %v7976_v38, %v4336_v41  ;;  %v4481_v3 = vadd.f32 %v7979_v48, %v4331_v63  ;;  %v4485_v19 = vadd.f32 %v7979_v48, %v4335_v62 }
 0x3c4   :  { %v4340_v22 = vmul.f32 %v7967_v60, %v4190_v28  ;;  %v4344_v53 = vmul.f32 %v7967_v60, %v4194_v18  ;;  %v4339_v14 = vmul.f32 %v7973_v16, %v4189_v54  ;;  %v4343_v1 = vmul.f32 %v7973_v16, %v4193_v26 }
 0x3c5   :  { %v4610_v8 = vmax.f32 %v4482_v15, 0.0  ;;  %v4614_v42 = vmax.f32 %v4486_v11, 0.0  ;;  %v4609_v7 = vmax.f32 %v4481_v3, 0.0  ;;  %v4613_v47 = vmax.f32 %v4485_v19, 0.0 }
 0x3c6   :  { %v4490_v46 = vadd.f32 %v7976_v38, %v4340_v22  ;;  %v4494_v41 = vadd.f32 %v7976_v38, %v4344_v53  ;;  %v4489_v36 = vadd.f32 %v7979_v48, %v4339_v14  ;;  %v4493_v37 = vadd.f32 %v7979_v48, %v4343_v1 }
 0x3c7   :  { %v4738_v63 = vpack.c.bf16 %v4614_v42, %v4610_v8  ;;  %v4737_v62 = vpack.c.bf16 %v4613_v47, %v4609_v7  ;;  %v3462_v28 = vrot.slane %v8013_v4, %v9441_v57  ;;  %v3478_v18 = vrot.slane %v8019_v25, %v9441_v57 }
 0x3c8   :  { %v4618_v54 = vmax.f32 %v4490_v46, 0.0  ;;  %v4622_v26 = vmax.f32 %v4494_v41, 0.0  ;;  %v4617_v15 = vmax.f32 %v4489_v36, 0.0  ;;  %v4621_v11 = vmax.f32 %v4493_v37, 0.0 }
 0x3c9   :  { %5096 = vmatprep.mubr.bf16.mxu0 %v4738_v63  ;;  %v4048_v3 = vadd.f32 %v3462_v28, %v7634_v5  ;;  %v4052_v19 = vadd.f32 %v3478_v18, %v7639_v10  ;;  %v3458_v22 = vrot.slane %v8013_v4, %v9442_v12  ;;  %v3474_v53 = vrot.slane %v8019_v25, %v9442_v12 }
 0x3ca   :  { %5097 = vmatmul.mubr.bf16.vlgmr.msra.gmra.mrb[128].mxu0 %v4737_v62  ;;  %v4742_v14 = vpack.c.bf16 %v4622_v26, %v4618_v54  ;;  %v4741_v1 = vpack.c.bf16 %v4621_v11, %v4617_v15  ;;  %v3494_v8 = vrot.slane %v8028_v29, %v9441_v57  ;;  %v3510_v42 = vrot.slane %v8036_v51, %v9441_v57 }
 0x3cb   :  { %v4198_v7 = vadd.f32 %v7964_v30, %v4048_v3  ;;  %v4202_v5 = vadd.f32 %v7964_v30, %v4052_v19  ;;  %v4047_v10 = vadd.f32 %v3458_v22, %v7632_v13  ;;  %v4051_v47 = vadd.f32 %v3474_v53, %v7636_v9  ;;  %5990 = vmatpush3.bf16.msra.mxu0 %v7731_v52 }
 0x3cc   :  { %5104 = vmatprep.mubr.bf16.mxu0 %v4742_v14  ;;  %v4056_v46 = vadd.f32 %v3494_v8, %v7643_v61  ;;  %v4060_v41 = vadd.f32 %v3510_v42, %v7648_v40  ;;  %v3490_v36 = vrot.slane %v8028_v29, %v9442_v12  ;;  %v3506_v37 = vrot.slane %v8036_v51, %v9442_v12 }
 0x3cd   :  { %v4348_v63 = vmul.f32 %v7967_v60, %v4198_v7  ;;  %v4352_v62 = vmul.f32 %v7967_v60, %v4202_v5  ;;  %v4197_v13 = vadd.f32 %v7970_v49, %v4047_v10  ;;  %v4201_v9 = vadd.f32 %v7970_v49, %v4051_v47  ;;  %5991 = vmatprep.subr.bf16.mxu0 %v7742_v34 }
 0x3ce   :  { %v4206_v61 = vadd.f32 %v7964_v30, %v4056_v46  ;;  %v4210_v40 = vadd.f32 %v7964_v30, %v4060_v41  ;;  %v4055_v52 = vadd.f32 %v3490_v36, %v7641_v20  ;;  %v4059_v28 = vadd.f32 %v3506_v37, %v7646_v24 }
 0x3cf   :  { %v4498_v18 = vadd.f32 %v7976_v38, %v4348_v63  ;;  %v4502_v54 = vadd.f32 %v7976_v38, %v4352_v62  ;;  %v4347_v26 = vmul.f32 %v7973_v16, %v4197_v13  ;;  %v4351_v15 = vmul.f32 %v7973_v16, %v4201_v9  ;;  %5992 = vmatpush3.bf16.msra.mxu0 %v7750_v58 }
 0x3d0   :  { %v4356_v34 = vmul.f32 %v7967_v60, %v4206_v61  ;;  %v4360_v11 = vmul.f32 %v7967_v60, %v4210_v40  ;;  %v4205_v3 = vadd.f32 %v7970_v49, %v4055_v52  ;;  %v4209_v20 = vadd.f32 %v7970_v49, %v4059_v28  ;;  %5993 = vmatprep.subr.bf16.mxu0 %v7775_v56  ;;  %v9467_v40 = vld [vmem:[#allocation19_spill] sm:$0xff]  ;;  %v9468_v28 = vld [vmem:[#allocation17_spill] sm:$0xff] }
 0x3d1   :  { %v4626_v24 = vmax.f32 %v4498_v18, 0.0  ;;  %v4630_v19 = vmax.f32 %v4502_v54, 0.0  ;;  %v4497_v22 = vadd.f32 %v7979_v48, %v4347_v26  ;;  %v4501_v53 = vadd.f32 %v7979_v48, %v4351_v15  ;;  %v9469_v54 = vld [vmem:[#allocation79_spill] sm:$0xff]  ;;  %v9470_v15 = vld [vmem:[#allocation44_spill] sm:$0xff] }
 0x3d2   :  { %5105 = vmatmul.mubr.bf16.gmra.mrb[132].mxu0 %v4741_v1  ;;  %v4506_v14 = vadd.f32 %v7976_v38, %v4356_v34  ;;  %v4510_v58 = vadd.f32 %v7976_v38, %v4360_v11  ;;  %v4355_v8 = vmul.f32 %v7973_v16, %v4205_v3  ;;  %v4359_v42 = vmul.f32 %v7973_v16, %v4209_v20  ;;  %v9472_v11 = vld [vmem:[#allocation18_spill] sm:$0xff]  ;;  %v9473_v20 = vld [vmem:[#allocation81_spill] sm:$0xff] }
 0x3d3   :  { %v4746_v7 = vpack.c.bf16 %v4630_v19, %v4626_v24  ;;  %v4625_v5 = vmax.f32 %v4497_v22, 0.0  ;;  %v4629_v10 = vmax.f32 %v4501_v53, 0.0  ;;  %v3526_v56 = vrot.slane %v8041_v45, %v9441_v57  ;;  %5994 = vmatpush3.bf16.msra.mxu0 %v7781_v0  ;;  %v9474_v19 = vld [vmem:[#allocation49_spill] sm:$0xff] }
 0x3d4   :  { %v4634_v47 = vmax.f32 %v4506_v14, 0.0  ;;  %v4638_v46 = vmax.f32 %v4510_v58, 0.0  ;;  %v4505_v1 = vadd.f32 %v7979_v48, %v4355_v8  ;;  %v4509_v41 = vadd.f32 %v7979_v48, %v4359_v42  ;;  %5995 = vmatprep.subr.bf16.mxu0 %v7806_v33  ;;  %v9475_v58 = vld [vmem:[#allocation21_spill] sm:$0xff] }
 0x3d5   :  { %5112 = vmatprep.mubr.bf16.mxu0 %v4746_v7  ;;  %v4745_v36 = vpack.c.bf16 %v4629_v10, %v4625_v5  ;;  %v3542_v37 = vrot.slane %v8049_v44, %v9441_v57  ;;  %v4064_v63 = vadd.f32 %v3526_v56, %v7652_v27  ;;  %v3522_v62 = vrot.slane %v8041_v45, %v9442_v12  ;;  %v9476_v7 = vld [vmem:[#allocation23_spill] sm:$0xff]  ;;  %v9477_v10 = vld [vmem:[#allocation14_spill] sm:$0xff]  ;;  %v9478_v56 = vld [vmem:[#allocation77_spill] sm:$0xff] }
 0x3d6   :  { %v4750_v13 = vpack.c.bf16 %v4638_v46, %v4634_v47  ;;  %v4633_v0 = vmax.f32 %v4505_v1, 0.0  ;;  %v4637_v9 = vmax.f32 %v4509_v41, 0.0  ;;  %v3538_v61 = vrot.slane %v8049_v44, %v9442_v12  ;;  %v9479_v46 = vld [vmem:[#allocation73_spill] sm:$0xff] }
 0x3d7   :  { %v4068_v52 = vadd.f32 %v3542_v37, %v9467_v40  ;;  %v4214_v33 = vadd.f32 %v7964_v30, %v4064_v63  ;;  %v4063_v18 = vadd.f32 %v3522_v62, %v9468_v28  ;;  %v3558_v26 = vrot.slane %v9469_v54, %v9441_v57  ;;  %5996 = vmatpush3.bf16.msra.mxu0 %v9470_v15  ;;  %v9480_v40 = vld [vmem:[#allocation50_spill] sm:$0xff] }
 0x3d8   :  { %v8241_v27 = vcombine.high %v8112_v31, %v8112_v31  ;;  %v4749_v34 = vpack.c.bf16 %v4637_v9, %v4633_v0  ;;  %v4067_v3 = vadd.f32 %v3538_v61, %v9472_v11  ;;  %v3574_v24 = vrot.slane %v9473_v20, %v9441_v57  ;;  %5997 = vmatprep.subr.bf16.mxu0 %v9474_v19  ;;  %v9482_v11 = vld [vmem:[#allocation20_spill] sm:$0xff] }
 0x3d9   :  { %v4218_v22 = vadd.f32 %v7964_v30, %v4068_v52  ;;  %v4364_v53 = vmul.f32 %v7967_v60, %v4214_v33  ;;  %v4213_v14 = vadd.f32 %v7970_v49, %v4063_v18  ;;  %v4072_v8 = vadd.f32 %v3558_v26, %v9475_v58  ;;  %v9481_v18 = vld [vmem:[#allocation55_spill] sm:$0xff] }
 0x3da   :  { %9471 = vst [vmem:[#allocation15_spill] sm:$0xff] %v8241_v27  ;;  %5113 = vmatmul.mubr.bf16.gmra.mrb[136].mxu0 %v4745_v36  ;;  %v4217_v42 = vadd.f32 %v7970_v49, %v4067_v3  ;;  %v4076_v5 = vadd.f32 %v3574_v24, %v9476_v7  ;;  %v3402_v47 = vrot.slane %v9478_v56, %v9477_v10  ;;  %v9483_v24 = vld [vmem:[#allocation22_spill] sm:$0xff] }
 0x3db   :  { %v3406_v1 = vrot.slane %v9478_v56, %v9479_v46  ;;  %5120 = vmatprep.mubr.bf16.mxu0 %v4750_v13  ;;  %v4368_v41 = vmul.f32 %v7967_v60, %v4218_v22  ;;  %v4514_v37 = vadd.f32 %v7976_v38, %v4364_v53  ;;  %v4363_v63 = vmul.f32 %v7973_v16, %v4213_v14 }
 0x3dc   :  { %v4222_v62 = vadd.f32 %v7964_v30, %v4072_v8  ;;  %v4367_v36 = vmul.f32 %v7973_v16, %v4217_v42  ;;  %v4226_v0 = vadd.f32 %v7964_v30, %v4076_v5  ;;  %v3554_v9 = vrot.slane %v9469_v54, %v9442_v12  ;;  %5998 = vmatpush3.bf16.msra.mxu0 %v9480_v40 }
 0x3dd   :  { %v3570_v61 = vrot.slane %v9473_v20, %v9442_v12  ;;  %v4518_v13 = vadd.f32 %v7976_v38, %v4368_v41  ;;  %v4642_v52 = vmax.f32 %v4514_v37, 0.0  ;;  %v4513_v33 = vadd.f32 %v7979_v48, %v4363_v63  ;;  %5999 = vmatprep.subr.bf16.mxu0 %v9481_v18  ;;  %v9484_v41 = vld [vmem:[#allocation56_spill] sm:$0xff] }
 0x3de   :  { %v4372_v28 = vmul.f32 %v7967_v60, %v4222_v62  ;;  %v4517_v26 = vadd.f32 %v7979_v48, %v4367_v36  ;;  %v4376_v15 = vmul.f32 %v7967_v60, %v4226_v0  ;;  %v4071_v3 = vadd.f32 %v3554_v9, %v9482_v11  ;;  %v9485_v62 = vld [vmem:[#allocation78_spill] sm:$0xff]  ;;  %v9486_v9 = vld [vmem:[#allocation61_spill] sm:$0xff] }
 0x3df   :  { %v4075_v19 = vadd.f32 %v3570_v61, %v9483_v24  ;;  %v4646_v22 = vmax.f32 %v4518_v13, 0.0  ;;  %v4641_v53 = vmax.f32 %v4513_v33, 0.0  ;;  %v3418_v58 = vrot.slane %v8016_v32, %v9477_v10 }
 0x3e0   :  { %v4522_v14 = vadd.f32 %v7976_v38, %v4372_v28  ;;  %v4645_v8 = vmax.f32 %v4517_v26, 0.0  ;;  %v4526_v42 = vadd.f32 %v7976_v38, %v4376_v15  ;;  %v4221_v7 = vadd.f32 %v7970_v49, %v4071_v3  ;;  %6000 = vmatpush3.bf16.msra.mxu0 %v9484_v41  ;;  %v9487_v28 = vld [vmem:[#allocation25_spill] sm:$0xff]  ;;  %v9488_v26 = vld [vmem:[#allocation27_spill] sm:$0xff] }
 0x3e1   :  { %v4225_v5 = vadd.f32 %v7970_v49, %v4075_v19  ;;  %v4754_v37 = vpack.c.bf16 %v4646_v22, %v4642_v52  ;;  %v3590_v36 = vrot.slane %v9485_v62, %v9441_v57  ;;  %v3606_v0 = vrot.slane %v8052_v6, %v9441_v57  ;;  %6001 = vmatprep.subr.bf16.mxu0 %v9486_v9  ;;  %v9489_v22 = vld [vmem:[#allocation62_spill] sm:$0xff]  ;;  %v9492_v9 = vld [vmem:[#allocation24_spill] sm:$0xff] }
 0x3e2   :  { %v4650_v63 = vmax.f32 %v4522_v14, 0.0  ;;  %5121 = vmatmul.mubr.bf16.gmra.mrb[140].mxu0 %v4749_v34  ;;  %v4753_v61 = vpack.c.bf16 %v4645_v8, %v4641_v53  ;;  %v4654_v40 = vmax.f32 %v4526_v42, 0.0  ;;  %v4371_v13 = vmul.f32 %v7973_v16, %v4221_v7  ;;  %v9490_v42 = vld [vmem:[#allocation67_spill] sm:$0xff] }
 0x3e3   :  { %v4375_v33 = vmul.f32 %v7973_v16, %v4225_v5  ;;  %5128 = vmatprep.mubr.bf16.mxu0 %v4754_v37  ;;  %v3422_v52 = vrot.slane %v8016_v32, %v9479_v46  ;;  %v4080_v18 = vadd.f32 %v3590_v36, %v9487_v28  ;;  %v4084_v15 = vadd.f32 %v3606_v0, %v9488_v26 }
 0x3e4   :  { %v3434_v11 = vrot.slane %v8024_v23, %v9477_v10  ;;  %v4758_v3 = vpack.c.bf16 %v4654_v40, %v4650_v63  ;;  %v4521_v34 = vadd.f32 %v7979_v48, %v4371_v13  ;;  %v3438_v19 = vrot.slane %v8024_v23, %v9479_v46  ;;  %6002 = vmatpush3.bf16.msra.mxu0 %v9489_v22  ;;  %v9491_v23 = vld [vmem:[#allocation80_spill] sm:$0xff]  ;;  %v9493_v13 = vld [vmem:[#allocation26_spill] sm:$0xff] }
 0x3e5   :  { %v4525_v24 = vadd.f32 %v7979_v48, %v4375_v33  ;;  %v4230_v53 = vadd.f32 %v7964_v30, %v4080_v18  ;;  %v4234_v32 = vadd.f32 %v7964_v30, %v4084_v15  ;;  %v3586_v14 = vrot.slane %v9485_v62, %v9442_v12  ;;  %6003 = vmatprep.subr.bf16.mxu0 %v9490_v42  ;;  %v9495_v22 = vld [vmem:[#allocation68_spill] sm:$0xff]  ;;  %v9496_v42 = vld [vmem:[#allocation11_spill] sm:$0xff] }
 0x3e6   :  { %v3602_v8 = vrot.slane %v8052_v6, %v9442_v12  ;;  %v4649_v7 = vmax.f32 %v4521_v34, 0.0  ;;  %v3450_v41 = vrot.slane %v8032_v55, %v9477_v10  ;;  %v3622_v37 = vrot.slane %v9491_v23, %v9441_v57  ;;  %v2944_v63 = vpop.f32.mrb[16].mxu1  ;;  %v9494_v34 = vld [vmem:[#allocation29_spill] sm:$0xff] }
 0x3e7   :  { %v4653_v5 = vmax.f32 %v4525_v24, 0.0  ;;  %v4380_v36 = vmul.f32 %v7967_v60, %v4230_v53  ;;  %v4384_v0 = vmul.f32 %v7967_v60, %v4234_v32  ;;  %v4079_v40 = vadd.f32 %v3586_v14, %v9492_v9  ;;  %v2946_v18 = vpop.f32.mrb[17].mxu1  ;;  %v9497_v9 = vld [vmem:[#allocation31_spill] sm:$0xff] }
 0x3e8   :  { %v4083_v33 = vadd.f32 %v3602_v8, %v9493_v13  ;;  %v4033_v28 = vadd.f32 %v3402_v47, %v2944_v63  ;;  %v3638_v15 = vrot.slane %v8088_v35, %v9441_v57  ;;  %v4088_v24 = vadd.f32 %v3622_v37, %v9494_v34  ;;  %6004 = vmatpush3.bf16.msra.mxu0 %v9495_v22  ;;  %v2948_v32 = vpop.f32.mrb[18].mxu1  ;;  %v9498_v34 = vld [vmem:[#allocation74_spill] sm:$0xff] }
 0x3e9   :  { %v4757_v26 = vpack.c.bf16 %v4653_v5, %v4649_v7  ;;  %v4034_v53 = vadd.f32 %v3406_v1, %v2946_v18  ;;  %v4530_v14 = vadd.f32 %v7976_v38, %v4380_v36  ;;  %v4534_v8 = vadd.f32 %v7976_v38, %v4384_v0  ;;  %v2950_v63 = vpop.f32.mrb[19].mxu1  ;;  %v9499_v36 = vld [vmem:[#allocation12_spill] sm:$0xff] }
 0x3ea   :  { %v4229_v47 = vadd.f32 %v7970_v49, %v4079_v40  ;;  %5129 = vmatmul.mubr.bf16.gmra.mrb[144].mxu0 %v4753_v61  ;;  %v4183_v7 = vadd.f32 %v9496_v42, %v4033_v28  ;;  %v4037_v5 = vadd.f32 %v3418_v58, %v2948_v32  ;;  %v4233_v37 = vadd.f32 %v7970_v49, %v4083_v33 }
 0x3eb   :  { %v4092_v13 = vadd.f32 %v3638_v15, %v9497_v9  ;;  %5136 = vmatprep.mubr.bf16.mxu0 %v4758_v3  ;;  %v4184_v56 = vadd.f32 %v9498_v34, %v4034_v53  ;;  %v4038_v1 = vadd.f32 %v3422_v52, %v2950_v63  ;;  %v4658_v18 = vmax.f32 %v4530_v14, 0.0  ;;  %v9500_v15 = vld [vmem:[#allocation13_spill] sm:$0xff] }
 0x3ec   :  { %v4662_v22 = vmax.f32 %v4534_v8, 0.0  ;;  %v4333_v27 = vmul.f32 %v9499_v36, %v4183_v7  ;;  %v4187_v0 = vadd.f32 %v9496_v42, %v4037_v5  ;;  %v4379_v61 = vmul.f32 %v7973_v16, %v4229_v47  ;;  %v9501_v8 = vld [vmem:[#allocation75_spill] sm:$0xff] }
 0x3ed   :  { %v4383_v40 = vmul.f32 %v7973_v16, %v4233_v37  ;;  %v4188_v58 = vadd.f32 %v9498_v34, %v4038_v1  ;;  %v3454_v33 = vrot.slane %v8032_v55, %v9479_v46  ;;  %v4238_v3 = vadd.f32 %v7964_v30, %v4088_v24 }
 0x3ee   :  { %v4762_v28 = vpack.c.bf16 %v4662_v22, %v4658_v18  ;;  %v4483_v52 = vadd.f32 %v9500_v15, %v4333_v27  ;;  %v4337_v53 = vmul.f32 %v9499_v36, %v4187_v0  ;;  %v4529_v32 = vadd.f32 %v7979_v48, %v4379_v61  ;;  %v2954_v5 = vpop.f32.mrb[20].mxu1 }
 0x3ef   :  { %v4533_v14 = vadd.f32 %v7979_v48, %v4383_v40  ;;  %v8346_v47 = vmul.f32 %v9501_v8, %v4184_v56  ;;  %v8349_v7 = vmul.f32 %v9501_v8, %v4188_v58  ;;  %v4242_v63 = vadd.f32 %v7964_v30, %v4092_v13  ;;  %v2956_v37 = vpop.f32.mrb[21].mxu1 }
 0x3f0   :  { %v4388_v55 = vmul.f32 %v7967_v60, %v4238_v3  ;;  %v4487_v24 = vadd.f32 %v9500_v15, %v4337_v53  ;;  %v4041_v27 = vadd.f32 %v3434_v11, %v2954_v5  ;;  %v4657_v9 = vmax.f32 %v4529_v32, 0.0  ;;  %v2958_v22 = vpop.f32.mrb[22].mxu1 }
 0x3f1   :  { %v3466_v1 = vrot.slane %v8013_v4, %v9477_v10  ;;  %v4042_v18 = vadd.f32 %v3438_v19, %v2956_v37  ;;  %v4661_v56 = vmax.f32 %v4533_v14, 0.0  ;;  %v4392_v0 = vmul.f32 %v7967_v60, %v4242_v63  ;;  %v2960_v53 = vpop.f32.mrb[23].mxu1 }
 0x3f2   :  { %v4538_v61 = vadd.f32 %v7976_v38, %v4388_v55  ;;  %v4611_v40 = vmax.f32 %v4483_v52, 0.0  ;;  %v4615_v58 = vmax.f32 %v4487_v24, 0.0  ;;  %5137 = vmatmul.mubr.bf16.gmra.mrb[148].mxu0 %v4757_v26  ;;  %v4191_v13 = vadd.f32 %v9496_v42, %v4041_v27 }
 0x3f3   :  { %v4045_v3 = vadd.f32 %v3450_v41, %v2958_v22  ;;  %5144 = vmatprep.mubr.bf16.mxu0 %v4762_v28  ;;  %v4192_v11 = vadd.f32 %v9498_v34, %v4042_v18  ;;  %v4761_v32 = vpack.c.bf16 %v4661_v56, %v4657_v9  ;;  %v4046_v5 = vadd.f32 %v3454_v33, %v2960_v53 }
 0x3f4   :  { %v4542_v19 = vadd.f32 %v7976_v38, %v4392_v0  ;;  %v8361_v37 = vpack.c.bf16 %v4615_v58, %v4611_v40  ;;  %v4666_v63 = vmax.f32 %v4538_v61, 0.0  ;;  %v3470_v52 = vrot.slane %v8013_v4, %v9479_v46  ;;  %v9506_v58 = vld [vmem:[#allocation28_spill] sm:$0xff] }
 0x3f5   :  { %v4195_v14 = vadd.f32 %v9496_v42, %v4045_v3  ;;  %v8367_v26 = vmul.f32 %v9499_v36, %v4191_v13  ;;  %v8370_v41 = vmul.f32 %v9501_v8, %v4192_v11  ;;  %v8373_v28 = vadd.f32 %v9498_v34, %v4046_v5  ;;  %v9507_v3 = vld [vmem:[#allocation30_spill] sm:$0xff] }
 0x3f6   :  { %9502 = vst [vmem:[#allocation16_spill] sm:$0xff] %v8361_v37  ;;  %v4670_v33 = vmax.f32 %v4542_v19, 0.0  ;;  %v3482_v24 = vrot.slane %v8019_v25, %v9477_v10  ;;  %v3618_v27 = vrot.slane %v9491_v23, %v9442_v12  ;;  %v3634_v4 = vrot.slane %v8088_v35, %v9442_v12  ;;  %v2964_v18 = vpop.f32.mrb[24].mxu1 }
 0x3f7   :  { %9503 = vst [vmem:[#allocation19_spill] sm:$0xff] %v8367_v26  ;;  %9504 = vst [vmem:[#allocation17_spill] sm:$0xff] %v8370_v41  ;;  %v8376_v55 = vmul.f32 %v9499_v36, %v4195_v14  ;;  %v3486_v22 = vrot.slane %v8019_v25, %v9479_v46  ;;  %v3654_v56 = vrot.slane %v8075_v43, %v9441_v57  ;;  %v2966_v40 = vpop.f32.mrb[25].mxu1  ;;  %v9508_v14 = vld [vmem:[#allocation33_spill] sm:$0xff]  ;;  %v9509_v25 = vld [vmem:[#allocation35_spill] sm:$0xff] }
 0x3f8   :  { %v4766_v9 = vpack.c.bf16 %v4670_v33, %v4666_v63  ;;  %v3670_v0 = vrot.slane %v8081_v59, %v9441_v57  ;;  %v4049_v61 = vadd.f32 %v3466_v1, %v2964_v18  ;;  %v4087_v13 = vadd.f32 %v3618_v27, %v9506_v58  ;;  %v2968_v19 = vpop.f32.mrb[26].mxu1 }
 0x3f9   :  { %9505 = vst [vmem:[#allocation79_spill] sm:$0xff] %v8376_v55  ;;  %v4091_v53 = vadd.f32 %v3634_v4, %v9507_v3  ;;  %v3498_v11 = vrot.slane %v8028_v29, %v9477_v10  ;;  %v4050_v5 = vadd.f32 %v3470_v52, %v2966_v40  ;;  %v4096_v63 = vadd.f32 %v3654_v56, %v9508_v14  ;;  %v2970_v58 = vpop.f32.mrb[27].mxu1 }
 0x3fa   :  { %v4100_v33 = vadd.f32 %v3670_v0, %v9509_v25  ;;  %v3502_v37 = vrot.slane %v8028_v29, %v9479_v46  ;;  %5145 = vmatmul.mubr.bf16.gmra.mrb[152].mxu0 %v4761_v32  ;;  %v4199_v1 = vadd.f32 %v9496_v42, %v4049_v61  ;;  %v4053_v18 = vadd.f32 %v3482_v24, %v2968_v19 }
 0x3fb   :  { %v4237_v27 = vadd.f32 %v7970_v49, %v4087_v13  ;;  %v4241_v4 = vadd.f32 %v7970_v49, %v4091_v53  ;;  %5152 = vmatprep.mubr.bf16.mxu0 %v4766_v9  ;;  %v4200_v52 = vadd.f32 %v9498_v34, %v4050_v5  ;;  %v4054_v40 = vadd.f32 %v3486_v22, %v2970_v58 }
 0x3fc   :  { %v4246_v56 = vadd.f32 %v7964_v30, %v4096_v63  ;;  %v4250_v0 = vadd.f32 %v7964_v30, %v4100_v33  ;;  %v4349_v3 = vmul.f32 %v9499_v36, %v4199_v1  ;;  %v4203_v29 = vadd.f32 %v9496_v42, %v4053_v18 }
 0x3fd   :  { %v4387_v32 = vmul.f32 %v7973_v16, %v4237_v27  ;;  %v4391_v24 = vmul.f32 %v7973_v16, %v4241_v4  ;;  %v4350_v61 = vmul.f32 %v9501_v8, %v4200_v52  ;;  %v4204_v13 = vadd.f32 %v9498_v34, %v4054_v40 }
 0x3fe   :  { %v4396_v9 = vmul.f32 %v7967_v60, %v4246_v56  ;;  %v4400_v22 = vmul.f32 %v7967_v60, %v4250_v0  ;;  %v4499_v53 = vadd.f32 %v9500_v15, %v4349_v3  ;;  %v4353_v5 = vmul.f32 %v9499_v36, %v4203_v29  ;;  %v2974_v1 = vpop.f32.mrb[28].mxu1 }
 0x3ff   :  { %v4537_v19 = vadd.f32 %v7979_v48, %v4387_v32  ;;  %v4541_v14 = vadd.f32 %v7979_v48, %v4391_v24  ;;  %v4354_v63 = vmul.f32 %v9501_v8, %v4204_v13  ;;  %v3514_v18 = vrot.slane %v8036_v51, %v9477_v10  ;;  %v2976_v40 = vpop.f32.mrb[29].mxu1 }
 0x400   :  { %v4546_v25 = vadd.f32 %v7976_v38, %v4396_v9  ;;  %v4550_v33 = vadd.f32 %v7976_v38, %v4400_v22  ;;  %v4627_v27 = vmax.f32 %v4499_v53, 0.0  ;;  %v4503_v4 = vadd.f32 %v9500_v15, %v4353_v5  ;;  %v2978_v32 = vpop.f32.mrb[30].mxu1 }
 0x401   :  { %v4665_v58 = vmax.f32 %v4537_v19, 0.0  ;;  %v4669_v52 = vmax.f32 %v4541_v14, 0.0  ;;  %v4057_v3 = vadd.f32 %v3498_v11, %v2974_v1  ;;  %v4058_v29 = vadd.f32 %v3502_v37, %v2976_v40  ;;  %v2980_v55 = vpop.f32.mrb[31].mxu1  ;;  %v9510_v11 = vld [vmem:[#allocation32_spill] sm:$0xff] }
 0x402   :  { %v4674_v56 = vmax.f32 %v4546_v25, 0.0  ;;  %v4678_v0 = vmax.f32 %v4550_v33, 0.0  ;;  %v4631_v24 = vmax.f32 %v4503_v4, 0.0  ;;  %v4061_v9 = vadd.f32 %v3514_v18, %v2978_v32  ;;  %v9512_v4 = vld [vmem:[#allocation34_spill] sm:$0xff]  ;;  %v9514_v32 = vld [vmem:[#allocation76_spill] sm:$0xff] }
 0x403   :  { %v4765_v13 = vpack.c.bf16 %v4669_v52, %v4665_v58  ;;  %v3650_v22 = vrot.slane %v8075_v43, %v9442_v12  ;;  %v4207_v53 = vadd.f32 %v9496_v42, %v4057_v3  ;;  %v4208_v5 = vadd.f32 %v9498_v34, %v4058_v29 }
 0x404   :  { %v4770_v26 = vpack.c.bf16 %v4678_v0, %v4674_v56  ;;  %v3666_v19 = vrot.slane %v8081_v59, %v9442_v12  ;;  %v4747_v14 = vpack.c.bf16 %v4631_v24, %v4627_v27  ;;  %v4211_v37 = vadd.f32 %v9496_v42, %v4061_v9 }
 0x405   :  { %5153 = vmatmul.mubr.bf16.gmra.mrb[156].mxu0 %v4765_v13  ;;  %v4095_v25 = vadd.f32 %v3650_v22, %v9510_v11  ;;  %v3518_v33 = vrot.slane %v8036_v51, %v9479_v46  ;;  %v8434_v1 = vmul.f32 %v9501_v8, %v8373_v28  ;;  %v8437_v18 = vmul.f32 %v9499_v36, %v4207_v53  ;;  %v9515_v22 = vld [vmem:[#allocation39_spill] sm:$0xff] }
 0x406   :  { %5160 = vmatprep.mubr.bf16.mxu0 %v4770_v26  ;;  %v4099_v58 = vadd.f32 %v3666_v19, %v9512_v4  ;;  %v3686_v27 = vrot.slane %v8101_v17, %v9441_v57  ;;  %v8443_v52 = vmul.f32 %v9501_v8, %v4208_v5  ;;  %v3702_v51 = vrot.slane %v8109_v50, %v9441_v57  ;;  %v9513_v26 = vld [vmem:[#allocation37_spill] sm:$0xff]  ;;  %v2984_v3 = vpop.f32.mrb[32].mxu1 }
 0x407   :  { %9511 = vst [vmem:[#allocation44_spill] sm:$0xff] %v8434_v1  ;;  %v4245_v40 = vadd.f32 %v7970_v49, %v4095_v25  ;;  %v4062_v56 = vadd.f32 %v3518_v33, %v2980_v55  ;;  %v3530_v29 = vrot.slane %v8041_v45, %v9477_v10  ;;  %v4500_v24 = vadd.f32 %v9514_v32, %v4350_v61  ;;  %v2986_v5 = vpop.f32.mrb[33].mxu1 }
 0x408   :  { %v4249_v28 = vadd.f32 %v7970_v49, %v4099_v58  ;;  %v4104_v0 = vadd.f32 %v3686_v27, %v9513_v26  ;;  %v8454_v13 = vmul.f32 %v9499_v36, %v4211_v37  ;;  %v4108_v55 = vadd.f32 %v3702_v51, %v9515_v22  ;;  %v2988_v4 = vpop.f32.mrb[34].mxu1 }
 0x409   :  { %v4395_v9 = vmul.f32 %v7973_v16, %v4245_v40  ;;  %v4504_v53 = vadd.f32 %v9514_v32, %v4354_v63  ;;  %v4212_v11 = vadd.f32 %v9498_v34, %v4062_v56  ;;  %v4065_v33 = vadd.f32 %v3530_v29, %v2984_v3  ;;  %v2990_v40 = vpop.f32.mrb[35].mxu1 }
 0x40a   :  { %v4399_v19 = vmul.f32 %v7973_v16, %v4249_v28  ;;  %v4254_v25 = vadd.f32 %v7964_v30, %v4104_v0  ;;  %v4258_v37 = vadd.f32 %v7964_v30, %v4108_v55  ;;  %v4628_v58 = vmax.f32 %v4500_v24, 0.0 }
 0x40b   :  { %v4545_v61 = vadd.f32 %v7979_v48, %v4395_v9  ;;  %v4632_v27 = vmax.f32 %v4504_v53, 0.0  ;;  %v4215_v26 = vadd.f32 %v9496_v42, %v4065_v33  ;;  %v3534_v56 = vrot.slane %v8041_v45, %v9479_v46 }
 0x40c   :  { %v4549_v51 = vadd.f32 %v7979_v48, %v4399_v19  ;;  %v4404_v63 = vmul.f32 %v7967_v60, %v4254_v25  ;;  %v4408_v0 = vmul.f32 %v7967_v60, %v4258_v37  ;;  %v3546_v29 = vrot.slane %v8049_v44, %v9477_v10 }
 0x40d   :  { %v4673_v28 = vmax.f32 %v4545_v61, 0.0  ;;  %v4748_v3 = vpack.c.bf16 %v4632_v27, %v4628_v58  ;;  %v4362_v24 = vmul.f32 %v9501_v8, %v4212_v11  ;;  %v4066_v55 = vadd.f32 %v3534_v56, %v2986_v5 }
 0x40e   :  { %v4677_v9 = vmax.f32 %v4549_v51, 0.0  ;;  %v4554_v22 = vadd.f32 %v7976_v38, %v4404_v63  ;;  %v4558_v53 = vadd.f32 %v7976_v38, %v4408_v0  ;;  %v4069_v19 = vadd.f32 %v3546_v29, %v2988_v4  ;;  %v2994_v58 = vpop.f32.mrb[36].mxu1  ;;  %v9516_v4 = vld [vmem:[#allocation36_spill] sm:$0xff]  ;;  %v9517_v63 = vld [vmem:[#allocation38_spill] sm:$0xff] }
 0x40f   :  { %5273 = vmatprep.mubr.bf16.mxu1 %v4748_v3  ;;  %v3682_v45 = vrot.slane %v8101_v17, %v9442_v12  ;;  %v3698_v25 = vrot.slane %v8109_v50, %v9442_v12  ;;  %v4216_v37 = vadd.f32 %v9498_v34, %v4066_v55  ;;  %v3550_v11 = vrot.slane %v8049_v44, %v9479_v46  ;;  %v2996_v0 = vpop.f32.mrb[37].mxu1 }
 0x410   :  { %v4769_v33 = vpack.c.bf16 %v4677_v9, %v4673_v28  ;;  %v4682_v61 = vmax.f32 %v4554_v22, 0.0  ;;  %5274 = vmatmul.mubr.bf16.vlgmr.msra.gmra.mrb[80].mxu1 %v4747_v14  ;;  %v4686_v5 = vmax.f32 %v4558_v53, 0.0  ;;  %v8483_v27 = vmul.f32 %v9499_v36, %v4215_v26  ;;  %v2998_v29 = vpop.f32.mrb[38].mxu1 }
 0x411   :  { %v4103_v51 = vadd.f32 %v3682_v45, %v9516_v4  ;;  %v4107_v56 = vadd.f32 %v3698_v25, %v9517_v63  ;;  %v4219_v28 = vadd.f32 %v9496_v42, %v4069_v19  ;;  %v4070_v3 = vadd.f32 %v3550_v11, %v2990_v40  ;;  %v3000_v53 = vpop.f32.mrb[39].mxu1  ;;  %v9518_v19 = vld [vmem:[#allocation41_spill] sm:$0xff]  ;;  %v9519_v25 = vld [vmem:[#allocation43_spill] sm:$0xff] }
 0x412   :  { %5161 = vmatmul.mubr.bf16.gmra.mrb[160].mxu0 %v4769_v33  ;;  %v3718_v14 = vrot.slane %v8078_v39, %v9441_v57  ;;  %v3734_v44 = vrot.slane %v8084_v21, %v9441_v57  ;;  %v4774_v9 = vpack.c.bf16 %v4686_v5, %v4682_v61  ;;  %v8493_v26 = vmul.f32 %v9501_v8, %v4216_v37 }
 0x413   :  { %v4253_v22 = vadd.f32 %v7970_v49, %v4103_v51  ;;  %v4257_v55 = vadd.f32 %v7970_v49, %v4107_v56  ;;  %v4220_v45 = vadd.f32 %v9498_v34, %v4070_v3  ;;  %v3562_v11 = vrot.slane %v9469_v54, %v9477_v10 }
 0x414   :  { %v4112_v40 = vadd.f32 %v3718_v14, %v9518_v19  ;;  %v4116_v33 = vadd.f32 %v3734_v44, %v9519_v25  ;;  %5168 = vmatprep.mubr.bf16.mxu0 %v4774_v9  ;;  %v4508_v5 = vadd.f32 %v9514_v32, %v8443_v52  ;;  %v4512_v4 = vadd.f32 %v9514_v32, %v4362_v24 }
 0x415   :  { %v4403_v61 = vmul.f32 %v7973_v16, %v4253_v22  ;;  %v4407_v37 = vmul.f32 %v7973_v16, %v4257_v55  ;;  %v8508_v51 = vmul.f32 %v9499_v36, %v4219_v28  ;;  %v4073_v3 = vadd.f32 %v3562_v11, %v2994_v58 }
 0x416   :  { %v4262_v63 = vadd.f32 %v7964_v30, %v4112_v40  ;;  %v4266_v56 = vadd.f32 %v7964_v30, %v4116_v33  ;;  %v4636_v9 = vmax.f32 %v4508_v5, 0.0  ;;  %v4640_v22 = vmax.f32 %v4512_v4, 0.0  ;;  %v3004_v19 = vpop.f32.mrb[40].mxu1 }
 0x417   :  { %v4553_v14 = vadd.f32 %v7979_v48, %v4403_v61  ;;  %v4557_v44 = vadd.f32 %v7979_v48, %v4407_v37  ;;  %v4370_v55 = vmul.f32 %v9501_v8, %v4220_v45  ;;  %v3566_v28 = vrot.slane %v9469_v54, %v9479_v46  ;;  %v8521_v11 = vpop.f32.mrb[41].mxu1 }
 0x418   :  { %v4412_v52 = vmul.f32 %v7967_v60, %v4262_v63  ;;  %v4416_v24 = vmul.f32 %v7967_v60, %v4266_v56  ;;  %v4752_v33 = vpack.c.bf16 %v4640_v22, %v4636_v9  ;;  %v4507_v58 = vadd.f32 %v9500_v15, %v8437_v18  ;;  %v8526_v4 = vpop.f32.mrb[42].mxu1 }
 0x419   :  { %v4681_v40 = vmax.f32 %v4553_v14, 0.0  ;;  %v4685_v25 = vmax.f32 %v4557_v44, 0.0  ;;  %v4223_v37 = vadd.f32 %v9496_v42, %v4073_v3  ;;  %v4074_v5 = vadd.f32 %v3566_v28, %v2996_v0  ;;  %v8532_v14 = vpop.f32.mrb[43].mxu1 }
 0x41a   :  { %v4562_v61 = vadd.f32 %v7976_v38, %v4412_v52  ;;  %v4566_v45 = vadd.f32 %v7976_v38, %v4416_v24  ;;  %5281 = vmatprep.mubr.bf16.mxu1 %v4752_v33  ;;  %v4511_v54 = vadd.f32 %v9500_v15, %v8454_v13  ;;  %v4635_v56 = vmax.f32 %v4507_v58, 0.0 }
 0x41b   :  { %v4773_v63 = vpack.c.bf16 %v4685_v25, %v4681_v40  ;;  %v3578_v18 = vrot.slane %v9473_v20, %v9477_v10  ;;  %v4224_v22 = vadd.f32 %v9498_v34, %v4074_v5  ;;  %v3714_v0 = vrot.slane %v8078_v39, %v9442_v12  ;;  %v9520_v25 = vld [vmem:[#allocation40_spill] sm:$0xff]  ;;  %v9521_v5 = vld [vmem:[#allocation42_spill] sm:$0xff] }
 0x41c   :  { %v4690_v44 = vmax.f32 %v4562_v61, 0.0  ;;  %v4694_v9 = vmax.f32 %v4566_v45, 0.0  ;;  %v4639_v3 = vmax.f32 %v4511_v54, 0.0  ;;  %v3730_v24 = vrot.slane %v8084_v21, %v9442_v12 }
 0x41d   :  { %5169 = vmatmul.mubr.bf16.gmra.mrb[164].mxu0 %v4773_v63  ;;  %v4077_v52 = vadd.f32 %v3578_v18, %v2998_v29  ;;  %v3582_v13 = vrot.slane %v9473_v20, %v9479_v46  ;;  %v8542_v40 = vmul.f32 %v9499_v36, %v4223_v37  ;;  %v4111_v33 = vadd.f32 %v3714_v0, %v9520_v25  ;;  %v9522_v20 = vld [vmem:[#allocation87_spill] sm:$0xff] }
 0x41e   :  { %v4778_v28 = vpack.c.bf16 %v4694_v9, %v4690_v44  ;;  %v3750_v58 = vrot.slane %v8105_v2, %v9441_v57  ;;  %v4751_v61 = vpack.c.bf16 %v4639_v3, %v4635_v56  ;;  %v4115_v29 = vadd.f32 %v3730_v24, %v9521_v5  ;;  %v9523_v44 = vld [vmem:[#allocation46_spill] sm:$0xff]  ;;  %v8555_v0 = vpop.f32.mrb[44].mxu1 }
 0x41f   :  { %v4227_v45 = vadd.f32 %v9496_v42, %v4077_v52  ;;  %v4078_v63 = vadd.f32 %v3582_v13, %v3000_v53  ;;  %v4261_v54 = vadd.f32 %v7970_v49, %v4111_v33  ;;  %v3766_v18 = vrot.slane %v9522_v20, %v9441_v57  ;;  %v8564_v24 = vpop.f32.mrb[45].mxu1 }
 0x420   :  { %5176 = vmatprep.mubr.bf16.mxu0 %v4778_v28  ;;  %v4120_v37 = vadd.f32 %v3750_v58, %v9523_v44  ;;  %v3594_v9 = vrot.slane %v9485_v62, %v9477_v10  ;;  %v8558_v56 = vmul.f32 %v9501_v8, %v4224_v22  ;;  %5282 = vmatmul.mubr.bf16.gmra.mrb[84].mxu1 %v4751_v61  ;;  %v9524_v28 = vld [vmem:[#allocation48_spill] sm:$0xff]  ;;  %v8569_v5 = vpop.f32.mrb[46].mxu1 }
 0x421   :  { %v4265_v3 = vadd.f32 %v7970_v49, %v4115_v29  ;;  %v4228_v53 = vadd.f32 %v9498_v34, %v4078_v63  ;;  %v4516_v52 = vadd.f32 %v9514_v32, %v8493_v26  ;;  %v4411_v13 = vmul.f32 %v7973_v16, %v4261_v54  ;;  %v8577_v63 = vpop.f32.mrb[47].mxu1 }
 0x422   :  { %v4124_v25 = vadd.f32 %v3766_v18, %v9524_v28  ;;  %v4270_v33 = vadd.f32 %v7964_v30, %v4120_v37  ;;  %v4081_v58 = vadd.f32 %v3594_v9, %v3004_v19  ;;  %v8572_v22 = vmul.f32 %v9499_v36, %v4227_v45 }
 0x423   :  { %v4415_v61 = vmul.f32 %v7973_v16, %v4265_v3  ;;  %v4378_v29 = vmul.f32 %v9501_v8, %v4228_v53  ;;  %v4520_v26 = vadd.f32 %v9514_v32, %v4370_v55  ;;  %v4561_v54 = vadd.f32 %v7979_v48, %v4411_v13 }
 0x424   :  { %v4274_v18 = vadd.f32 %v7964_v30, %v4124_v25  ;;  %v4420_v44 = vmul.f32 %v7967_v60, %v4270_v33  ;;  %v4644_v19 = vmax.f32 %v4516_v52, 0.0  ;;  %v3598_v45 = vrot.slane %v9485_v62, %v9479_v46 }
 0x425   :  { %v4565_v37 = vadd.f32 %v7979_v48, %v4415_v61  ;;  %v4648_v9 = vmax.f32 %v4520_v26, 0.0  ;;  %v4515_v3 = vadd.f32 %v9500_v15, %v8483_v27  ;;  %v4689_v53 = vmax.f32 %v4561_v54, 0.0 }
 0x426   :  { %v4424_v55 = vmul.f32 %v7967_v60, %v4274_v18  ;;  %v4570_v28 = vadd.f32 %v7976_v38, %v4420_v44  ;;  %v4231_v13 = vadd.f32 %v9496_v42, %v4081_v58  ;;  %v4082_v52 = vadd.f32 %v3598_v45, %v8521_v11  ;;  %v8596_v54 = vpop.f32.mrb[48].mxu1 }
 0x427   :  { %v4693_v25 = vmax.f32 %v4565_v37, 0.0  ;;  %v4756_v1 = vpack.c.bf16 %v4648_v9, %v4644_v19  ;;  %v4519_v33 = vadd.f32 %v9500_v15, %v8508_v51  ;;  %v4643_v26 = vmax.f32 %v4515_v3, 0.0  ;;  %v8601_v19 = vpop.f32.mrb[49].mxu1 }
 0x428   :  { %v4574_v61 = vadd.f32 %v7976_v38, %v4424_v55  ;;  %v4698_v62 = vmax.f32 %v4570_v28, 0.0  ;;  %v3610_v27 = vrot.slane %v8052_v6, %v9477_v10  ;;  %v4232_v58 = vadd.f32 %v9498_v34, %v4082_v52  ;;  %v8608_v3 = vpop.f32.mrb[50].mxu1  ;;  %v9525_v55 = vld [vmem:[#allocation45_spill] sm:$0xff] }
 0x429   :  { %v4777_v18 = vpack.c.bf16 %v4693_v25, %v4689_v53  ;;  %5289 = vmatprep.mubr.bf16.mxu1 %v4756_v1  ;;  %v4647_v44 = vmax.f32 %v4519_v33, 0.0  ;;  %v3746_v11 = vrot.slane %v8105_v2, %v9442_v12  ;;  %v3762_v9 = vrot.slane %v9522_v20, %v9442_v12  ;;  %v9526_v25 = vld [vmem:[#allocation82_spill] sm:$0xff]  ;;  %v8616_v33 = vpop.f32.mrb[51].mxu1 }
 0x42a   :  { %v4702_v51 = vmax.f32 %v4574_v61, 0.0  ;;  %v4085_v37 = vadd.f32 %v3610_v27, %v8526_v4  ;;  %v3614_v45 = vrot.slane %v8052_v6, %v9479_v46  ;;  %v8611_v1 = vmul.f32 %v9499_v36, %v4231_v13  ;;  %v9527_v27 = vld [vmem:[#allocation47_spill] sm:$0xff]  ;;  %v9528_v13 = vld [vmem:[#allocation84_spill] sm:$0xff] }
 0x42b   :  { %5177 = vmatmul.mubr.bf16.gmra.mrb[168].mxu0 %v4777_v18  ;;  %v4755_v53 = vpack.c.bf16 %v4647_v44, %v4643_v26  ;;  %v4119_v28 = vadd.f32 %v3746_v11, %v9525_v55  ;;  %v3782_v52 = vrot.slane %v9526_v25, %v9441_v57  ;;  %v4123_v41 = vadd.f32 %v3762_v9, %v9527_v27  ;;  %v9529_v44 = vld [vmem:[#allocation52_spill] sm:$0xff] }
 0x42c   :  { %v4782_v4 = vpack.c.bf16 %v4702_v51, %v4698_v62  ;;  %v4235_v61 = vadd.f32 %v9496_v42, %v4085_v37  ;;  %v4086_v6 = vadd.f32 %v3614_v45, %v8532_v14  ;;  %v3798_v26 = vrot.slane %v9528_v13, %v9441_v57  ;;  %v9530_v45 = vld [vmem:[#allocation54_spill] sm:$0xff] }
 0x42d   :  { %5290 = vmatmul.mubr.bf16.gmra.mrb[88].mxu1 %v4755_v53  ;;  %v4269_v18 = vadd.f32 %v7970_v49, %v4119_v28  ;;  %v4128_v11 = vadd.f32 %v3782_v52, %v9529_v44  ;;  %v3626_v55 = vrot.slane %v9491_v23, %v9477_v10  ;;  %v8628_v62 = vmul.f32 %v9501_v8, %v4232_v58 }
 0x42e   :  { %5184 = vmatprep.mubr.bf16.mxu0 %v4782_v4  ;;  %v4273_v51 = vadd.f32 %v7970_v49, %v4123_v41  ;;  %v4236_v37 = vadd.f32 %v9498_v34, %v4086_v6  ;;  %v4524_v14 = vadd.f32 %v9514_v32, %v8558_v56  ;;  %v4132_v53 = vadd.f32 %v3798_v26, %v9530_v45  ;;  %v8646_v6 = vpop.f32.mrb[52].mxu1 }
 0x42f   :  { %v4419_v9 = vmul.f32 %v7973_v16, %v4269_v18  ;;  %v4278_v28 = vadd.f32 %v7964_v30, %v4128_v11  ;;  %v4089_v52 = vadd.f32 %v3626_v55, %v8555_v0  ;;  %v8639_v4 = vmul.f32 %v9499_v36, %v4235_v61  ;;  %v8651_v0 = vpop.f32.mrb[53].mxu1 }
 0x430   :  { %v4423_v58 = vmul.f32 %v7973_v16, %v4273_v51  ;;  %v8643_v41 = vmul.f32 %v9501_v8, %v4236_v37  ;;  %v4528_v27 = vadd.f32 %v9514_v32, %v4378_v29  ;;  %v4282_v18 = vadd.f32 %v7964_v30, %v4132_v53  ;;  %v8658_v51 = vpop.f32.mrb[54].mxu1 }
 0x431   :  { %v4569_v56 = vadd.f32 %v7979_v48, %v4419_v9  ;;  %v4428_v26 = vmul.f32 %v7967_v60, %v4278_v28  ;;  %v4652_v44 = vmax.f32 %v4524_v14, 0.0  ;;  %v3630_v55 = vrot.slane %v9491_v23, %v9479_v46  ;;  %v8663_v53 = vpop.f32.mrb[55].mxu1 }
 0x432   :  { %v4573_v61 = vadd.f32 %v7979_v48, %v4423_v58  ;;  %v4656_v11 = vmax.f32 %v4528_v27, 0.0  ;;  %v4523_v29 = vadd.f32 %v9500_v15, %v8542_v40  ;;  %v4432_v9 = vmul.f32 %v7967_v60, %v4282_v18 }
 0x433   :  { %v4697_v37 = vmax.f32 %v4569_v56, 0.0  ;;  %v4578_v45 = vadd.f32 %v7976_v38, %v4428_v26  ;;  %v4239_v14 = vadd.f32 %v9496_v42, %v4089_v52  ;;  %v4090_v27 = vadd.f32 %v3630_v55, %v8564_v24 }
 0x434   :  { %v4701_v28 = vmax.f32 %v4573_v61, 0.0  ;;  %v4760_v58 = vpack.c.bf16 %v4656_v11, %v4652_v44  ;;  %v4527_v23 = vadd.f32 %v9500_v15, %v8572_v22  ;;  %v4582_v40 = vadd.f32 %v7976_v38, %v4432_v9 }
 0x435   :  { %v4706_v20 = vmax.f32 %v4578_v45, 0.0  ;;  %v4651_v2 = vmax.f32 %v4523_v29, 0.0  ;;  %v3642_v56 = vrot.slane %v8088_v35, %v9477_v10  ;;  %v4240_v52 = vadd.f32 %v9498_v34, %v4090_v27  ;;  %v9532_v45 = vld [vmem:[#allocation88_spill] sm:$0xff] }
 0x436   :  { %v4781_v18 = vpack.c.bf16 %v4701_v28, %v4697_v37  ;;  %5297 = vmatprep.mubr.bf16.mxu1 %v4760_v58  ;;  %v4655_v26 = vmax.f32 %v4527_v23, 0.0  ;;  %v3778_v44 = vrot.slane %v9526_v25, %v9442_v12  ;;  %v4710_v61 = vmax.f32 %v4582_v40, 0.0  ;;  %v9531_v37 = vld [vmem:[#allocation51_spill] sm:$0xff]  ;;  %v8685_v58 = vpop.f32.mrb[56].mxu1  ;;  %v9533_v23 = vld [vmem:[#allocation53_spill] sm:$0xff] }
 0x437   :  { %v4093_v24 = vadd.f32 %v3642_v56, %v8569_v5  ;;  %v3794_v22 = vrot.slane %v9528_v13, %v9442_v12  ;;  %v3646_v11 = vrot.slane %v8088_v35, %v9479_v46  ;;  %v8680_v55 = vmul.f32 %v9499_v36, %v4239_v14  ;;  %v8690_v35 = vpop.f32.mrb[57].mxu1 }
 0x438   :  { %5185 = vmatmul.mubr.bf16.gmra.mrb[172].mxu0 %v4781_v18  ;;  %v4759_v29 = vpack.c.bf16 %v4655_v26, %v4651_v2  ;;  %v4127_v9 = vadd.f32 %v3778_v44, %v9531_v37  ;;  %v3814_v28 = vrot.slane %v9532_v45, %v9441_v57  ;;  %v4786_v27 = vpack.c.bf16 %v4710_v61, %v4706_v20  ;;  %v9534_v2 = vld [vmem:[#allocation90_spill] sm:$0xff]  ;;  %v8698_v20 = vpop.f32.mrb[58].mxu1 }
 0x439   :  { %v4243_v5 = vadd.f32 %v9496_v42, %v4093_v24  ;;  %v4131_v40 = vadd.f32 %v3794_v22, %v9533_v23  ;;  %v4094_v56 = vadd.f32 %v3646_v11, %v8577_v63  ;;  %v3830_v18 = vrot.slane %v9534_v2, %v9441_v57  ;;  %v9535_v26 = vld [vmem:[#allocation58_spill] sm:$0xff]  ;;  %v8707_v11 = vpop.f32.mrb[59].mxu1 }
 0x43a   :  { %5298 = vmatmul.mubr.bf16.gmra.mrb[92].mxu1 %v4759_v29  ;;  %v4277_v14 = vadd.f32 %v7970_v49, %v4127_v9  ;;  %v4136_v44 = vadd.f32 %v3814_v28, %v9535_v26  ;;  %v3658_v37 = vrot.slane %v8075_v43, %v9477_v10  ;;  %5192 = vmatprep.mubr.bf16.mxu0 %v4786_v27  ;;  %v9536_v9 = vld [vmem:[#allocation60_spill] sm:$0xff] }
 0x43b   :  { %v8701_v61 = vmul.f32 %v9501_v8, %v4240_v52  ;;  %v4281_v63 = vadd.f32 %v7970_v49, %v4131_v40  ;;  %v4244_v24 = vadd.f32 %v9498_v34, %v4094_v56  ;;  %v4532_v22 = vadd.f32 %v9514_v32, %v8628_v62 }
 0x43c   :  { %v4427_v29 = vmul.f32 %v7973_v16, %v4277_v14  ;;  %v4140_v28 = vadd.f32 %v3830_v18, %v9536_v9  ;;  %v4286_v23 = vadd.f32 %v7964_v30, %v4136_v44  ;;  %v4097_v27 = vadd.f32 %v3658_v37, %v8596_v54 }
 0x43d   :  { %v8714_v52 = vmul.f32 %v9499_v36, %v4243_v5  ;;  %v4431_v40 = vmul.f32 %v7973_v16, %v4281_v63  ;;  %v8718_v56 = vmul.f32 %v9501_v8, %v4244_v24  ;;  %v4536_v62 = vadd.f32 %v9514_v32, %v8643_v41 }
 0x43e   :  { %v4577_v26 = vadd.f32 %v7979_v48, %v4427_v29  ;;  %v4290_v14 = vadd.f32 %v7964_v30, %v4140_v28  ;;  %v4436_v18 = vmul.f32 %v7967_v60, %v4286_v23  ;;  %v4660_v44 = vmax.f32 %v4532_v22, 0.0  ;;  %v8733_v28 = vpop.f32.mrb[60].mxu1 }
 0x43f   :  { %v4581_v54 = vadd.f32 %v7979_v48, %v4431_v40  ;;  %v4664_v37 = vmax.f32 %v4536_v62, 0.0  ;;  %v3662_v5 = vrot.slane %v8075_v43, %v9479_v46  ;;  %v4531_v63 = vadd.f32 %v9500_v15, %v8611_v1  ;;  %v8738_v43 = vpop.f32.mrb[61].mxu1 }
 0x440   :  { %v4705_v24 = vmax.f32 %v4577_v26, 0.0  ;;  %v4440_v9 = vmul.f32 %v7967_v60, %v4290_v14  ;;  %v4586_v41 = vadd.f32 %v7976_v38, %v4436_v18  ;;  %v4247_v29 = vadd.f32 %v9496_v42, %v4097_v27  ;;  %v8743_v18 = vpop.f32.mrb[62].mxu1 }
 0x441   :  { %v4709_v23 = vmax.f32 %v4581_v54, 0.0  ;;  %v4764_v22 = vpack.c.bf16 %v4664_v37, %v4660_v44  ;;  %v4098_v40 = vadd.f32 %v3662_v5, %v8601_v19  ;;  %v4535_v62 = vadd.f32 %v9500_v15, %v8639_v4  ;;  %v8748_v4 = vpop.f32.mrb[63].mxu1 }
 0x442   :  { %v4590_v1 = vadd.f32 %v7976_v38, %v4440_v9  ;;  %v4714_v26 = vmax.f32 %v4586_v41, 0.0  ;;  %v4659_v13 = vmax.f32 %v4531_v63, 0.0  ;;  %v3674_v14 = vrot.slane %v8081_v59, %v9477_v10 }
 0x443   :  { %v4785_v27 = vpack.c.bf16 %v4709_v23, %v4705_v24  ;;  %5305 = vmatprep.mubr.bf16.mxu1 %v4764_v22  ;;  %v4248_v44 = vadd.f32 %v9498_v34, %v4098_v40  ;;  %v4663_v54 = vmax.f32 %v4535_v62, 0.0  ;;  %v3810_v19 = vrot.slane %v9532_v45, %v9442_v12  ;;  %v9537_v23 = vld [vmem:[#allocation57_spill] sm:$0xff]  ;;  %v9538_v40 = vld [vmem:[#allocation83_spill] sm:$0xff] }
 0x444   :  { %v4718_v37 = vmax.f32 %v4590_v1, 0.0  ;;  %v4101_v5 = vadd.f32 %v3674_v14, %v8608_v3  ;;  %v3826_v63 = vrot.slane %v9534_v2, %v9442_v12  ;;  %v3678_v9 = vrot.slane %v8081_v59, %v9479_v46  ;;  %v9539_v3 = vld [vmem:[#allocation59_spill] sm:$0xff] }
 0x445   :  { %5193 = vmatmul.mubr.bf16.gmra.mrb[176].mxu0 %v4785_v27  ;;  %v8756_v24 = vmul.f32 %v9499_v36, %v4247_v29  ;;  %v4763_v41 = vpack.c.bf16 %v4663_v54, %v4659_v13  ;;  %v4135_v22 = vadd.f32 %v3810_v19, %v9537_v23  ;;  %v3846_v62 = vrot.slane %v9538_v40, %v9441_v57  ;;  %v9540_v27 = vld [vmem:[#allocation64_spill] sm:$0xff] }
 0x446   :  { %v4790_v45 = vpack.c.bf16 %v4718_v37, %v4714_v26  ;;  %v4251_v1 = vadd.f32 %v9496_v42, %v4101_v5  ;;  %v4139_v14 = vadd.f32 %v3826_v63, %v9539_v3  ;;  %v4102_v2 = vadd.f32 %v3678_v9, %v8616_v33  ;;  %v8777_v5 = vpop.f32.mrb[64].mxu1  ;;  %v9541_v9 = vld [vmem:[#allocation66_spill] sm:$0xff] }
 0x447   :  { %5306 = vmatmul.mubr.bf16.gmra.mrb[96].mxu1 %v4763_v41  ;;  %v4285_v59 = vadd.f32 %v7970_v49, %v4135_v22  ;;  %v3862_v29 = vrot.slane %v8112_v31, %v9441_v57  ;;  %v4144_v13 = vadd.f32 %v3846_v62, %v9540_v27  ;;  %v3690_v54 = vrot.slane %v8101_v17, %v9477_v10  ;;  %v8783_v22 = vpop.f32.mrb[65].mxu1 }
 0x448   :  { %5200 = vmatprep.mubr.bf16.mxu0 %v4790_v45  ;;  %v8771_v26 = vmul.f32 %v9501_v8, %v4248_v44  ;;  %v4289_v19 = vadd.f32 %v7970_v49, %v4139_v14  ;;  %v4252_v37 = vadd.f32 %v9498_v34, %v4102_v2  ;;  %v4540_v33 = vadd.f32 %v9514_v32, %v8701_v61  ;;  %v8794_v3 = vpop.f32.mrb[66].mxu1 }
 0x449   :  { %v4435_v63 = vmul.f32 %v7973_v16, %v4285_v59  ;;  %v4148_v41 = vadd.f32 %v3862_v29, %v9541_v9  ;;  %v4294_v23 = vadd.f32 %v7964_v30, %v4144_v13  ;;  %v4105_v45 = vadd.f32 %v3690_v54, %v8646_v6  ;;  %v8799_v27 = vpop.f32.mrb[67].mxu1 }
 0x44a   :  { %v8786_v44 = vmul.f32 %v9499_v36, %v4251_v1  ;;  %v4439_v2 = vmul.f32 %v7973_v16, %v4289_v19  ;;  %v8790_v62 = vmul.f32 %v9501_v8, %v4252_v37  ;;  %v4544_v61 = vadd.f32 %v9514_v32, %v8718_v56  ;;  %9542 = vst [vmem:[#allocation18_spill] sm:$0xff] %v8799_v27 }
 0x44b   :  { %v4585_v14 = vadd.f32 %v7979_v48, %v4435_v63  ;;  %v4298_v59 = vadd.f32 %v7964_v30, %v4148_v41  ;;  %v4444_v6 = vmul.f32 %v7967_v60, %v4294_v23  ;;  %v4668_v29 = vmax.f32 %v4540_v33, 0.0 }
 0x44c   :  { %v4589_v1 = vadd.f32 %v7979_v48, %v4439_v2  ;;  %v4672_v13 = vmax.f32 %v4544_v61, 0.0  ;;  %v3694_v54 = vrot.slane %v8101_v17, %v9479_v46  ;;  %v4539_v56 = vadd.f32 %v9500_v15, %v8680_v55 }
 0x44d   :  { %v4713_v19 = vmax.f32 %v4585_v14, 0.0  ;;  %v4448_v37 = vmul.f32 %v7967_v60, %v4298_v59  ;;  %v4594_v63 = vadd.f32 %v7976_v38, %v4444_v6  ;;  %v4255_v9 = vadd.f32 %v9496_v42, %v4105_v45 }
 0x44e   :  { %v4717_v41 = vmax.f32 %v4589_v1, 0.0  ;;  %v4768_v33 = vpack.c.bf16 %v4672_v13, %v4668_v29  ;;  %v4106_v23 = vadd.f32 %v3694_v54, %v8651_v0  ;;  %v4543_v2 = vadd.f32 %v9500_v15, %v8714_v52  ;;  %v8818_v29 = vpop.f32.mrb[68].mxu1 }
 0x44f   :  { %v4598_v61 = vadd.f32 %v7976_v38, %v4448_v37  ;;  %v4722_v17 = vmax.f32 %v4594_v63, 0.0  ;;  %v4667_v27 = vmax.f32 %v4539_v56, 0.0  ;;  %v3706_v55 = vrot.slane %v8109_v50, %v9477_v10  ;;  %v8825_v54 = vpop.f32.mrb[69].mxu1  ;;  %v9543_v37 = vld [vmem:[#allocation63_spill] sm:$0xff] }
 0x450   :  { %v4789_v14 = vpack.c.bf16 %v4717_v41, %v4713_v19  ;;  %5313 = vmatprep.mubr.bf16.mxu1 %v4768_v33  ;;  %v4256_v59 = vadd.f32 %v9498_v34, %v4106_v23  ;;  %v4671_v6 = vmax.f32 %v4543_v2, 0.0  ;;  %v3842_v45 = vrot.slane %v9538_v40, %v9442_v12  ;;  %v9544_v41 = vld [vmem:[#allocation89_spill] sm:$0xff]  ;;  %v8833_v23 = vpop.f32.mrb[70].mxu1 }
 0x451   :  { %v4726_v0 = vmax.f32 %v4598_v61, 0.0  ;;  %v4109_v52 = vadd.f32 %v3706_v55, %v8658_v51  ;;  %v3858_v1 = vrot.slane %v8112_v31, %v9442_v12  ;;  %v3710_v13 = vrot.slane %v8109_v50, %v9479_v46  ;;  %v9545_v61 = vld [vmem:[#allocation65_spill] sm:$0xff]  ;;  %v8838_v31 = vpop.f32.mrb[71].mxu1 }
 0x452   :  { %5201 = vmatmul.mubr.bf16.gmra.mrb[180].mxu0 %v4789_v14  ;;  %v8828_v56 = vmul.f32 %v9499_v36, %v4255_v9  ;;  %v4767_v19 = vpack.c.bf16 %v4671_v6, %v4667_v27  ;;  %v4143_v63 = vadd.f32 %v3842_v45, %v9543_v37  ;;  %v3878_v33 = vrot.slane %v9544_v41, %v9441_v57  ;;  %v9546_v27 = vld [vmem:[#allocation15_spill] sm:$0xff]  ;;  %v9547_v6 = vld [vmem:[#allocation70_spill] sm:$0xff] }
 0x453   :  { %v4794_v51 = vpack.c.bf16 %v4726_v0, %v4722_v17  ;;  %v4259_v2 = vadd.f32 %v9496_v42, %v4109_v52  ;;  %v4147_v55 = vadd.f32 %v3858_v1, %v9545_v61  ;;  %v4110_v50 = vadd.f32 %v3710_v13, %v8663_v53  ;;  %v9548_v13 = vld [vmem:[#allocation72_spill] sm:$0xff] }
 0x454   :  { %5314 = vmatmul.mubr.bf16.gmra.mrb[100].mxu1 %v4767_v19  ;;  %v4293_v9 = vadd.f32 %v7970_v49, %v4143_v63  ;;  %v3894_v14 = vrot.slane %v9546_v27, %v9441_v57  ;;  %v4152_v45 = vadd.f32 %v3878_v33, %v9547_v6  ;;  %v3722_v37 = vrot.slane %v8078_v39, %v9477_v10 }
 0x455   :  { %5208 = vmatprep.mubr.bf16.mxu0 %v4794_v51  ;;  %v8847_v17 = vmul.f32 %v9501_v8, %v4256_v59  ;;  %v4297_v0 = vadd.f32 %v7970_v49, %v4147_v55  ;;  %v4260_v53 = vadd.f32 %v9498_v34, %v4110_v50  ;;  %v4548_v52 = vadd.f32 %v9514_v32, %v8771_v26 }
 0x456   :  { %v4443_v1 = vmul.f32 %v7973_v16, %v4293_v9  ;;  %v4156_v57 = vadd.f32 %v3894_v14, %v9548_v13  ;;  %v4302_v19 = vadd.f32 %v7964_v30, %v4152_v45  ;;  %v4113_v63 = vadd.f32 %v3722_v37, %v8685_v58  ;;  %v8867_v14 = vpop.f32.mrb[72].mxu1 }
 0x457   :  { %v8858_v33 = vmul.f32 %v9499_v36, %v4259_v2  ;;  %v4447_v59 = vmul.f32 %v7973_v16, %v4297_v0  ;;  %v4410_v51 = vmul.f32 %v9501_v8, %v4260_v53  ;;  %v4552_v61 = vadd.f32 %v9514_v32, %v8790_v62  ;;  %v8874_v37 = vpop.f32.mrb[73].mxu1 }
 0x458   :  { %v4593_v26 = vadd.f32 %v7979_v48, %v4443_v1  ;;  %v4306_v55 = vadd.f32 %v7964_v30, %v4156_v57  ;;  %v4452_v50 = vmul.f32 %v7967_v60, %v4302_v19  ;;  %v4676_v9 = vmax.f32 %v4548_v52, 0.0  ;;  %v8879_v52 = vpop.f32.mrb[74].mxu1 }
 0x459   :  { %v4597_v58 = vadd.f32 %v7979_v48, %v4447_v59  ;;  %v4680_v2 = vmax.f32 %v4552_v61, 0.0  ;;  %v3726_v6 = vrot.slane %v8078_v39, %v9479_v46  ;;  %v4547_v45 = vadd.f32 %v9500_v15, %v8756_v24  ;;  %v8884_v19 = vpop.f32.mrb[75].mxu1 }
 0x45a   :  { %v4721_v62 = vmax.f32 %v4593_v26, 0.0  ;;  %v4456_v0 = vmul.f32 %v7967_v60, %v4306_v55  ;;  %v4602_v30 = vadd.f32 %v7976_v38, %v4452_v50  ;;  %v4263_v53 = vadd.f32 %v9496_v42, %v4113_v63 }
 0x45b   :  { %v4725_v1 = vmax.f32 %v4597_v58, 0.0  ;;  %v4772_v13 = vpack.c.bf16 %v4680_v2, %v4676_v9  ;;  %v4114_v57 = vadd.f32 %v3726_v6, %v8690_v35  ;;  %v4551_v39 = vadd.f32 %v9500_v15, %v8786_v44  ;;  %v9549_v6 = vld [vmem:[#allocation69_spill] sm:$0xff] }
 0x45c   :  { %v4606_v24 = vadd.f32 %v7976_v38, %v4456_v0  ;;  %v4730_v59 = vmax.f32 %v4602_v30, 0.0  ;;  %v4675_v61 = vmax.f32 %v4547_v45, 0.0  ;;  %v3738_v60 = vrot.slane %v8084_v21, %v9477_v10 }
 0x45d   :  { %v4793_v26 = vpack.c.bf16 %v4725_v1, %v4721_v62  ;;  %5321 = vmatprep.mubr.bf16.mxu1 %v4772_v13  ;;  %v4264_v63 = vadd.f32 %v9498_v34, %v4114_v57  ;;  %v4679_v55 = vmax.f32 %v4551_v39, 0.0  ;;  %v3874_v35 = vrot.slane %v9544_v41, %v9442_v12  ;;  %v9551_v39 = vld [vmem:[#allocation85_spill] sm:$0xff] }
 0x45e   :  { %v4734_v50 = vmax.f32 %v4606_v24, 0.0  ;;  %v4117_v44 = vadd.f32 %v3738_v60, %v8698_v20  ;;  %v3890_v9 = vrot.slane %v9546_v27, %v9442_v12  ;;  %v3742_v38 = vrot.slane %v8084_v21, %v9479_v46  ;;  %v9550_v20 = vld [vmem:[#allocation71_spill] sm:$0xff]  ;;  %v8906_v13 = vpop.f32.mrb[76].mxu1 }
 0x45f   :  { %5209 = vmatmul.mubr.bf16.gmra.mrb[184].mxu0 %v4793_v26  ;;  %v8898_v58 = vmul.f32 %v9499_v36, %v4263_v53  ;;  %v4771_v2 = vpack.c.bf16 %v4679_v55, %v4675_v61  ;;  %v4151_v45 = vadd.f32 %v3874_v35, %v9549_v6  ;;  %v4484_v62 = vadd.f32 %v9514_v32, %v8346_v47  ;;  %v8914_v24 = vpop.f32.mrb[77].mxu1 }
 0x460   :  { %v4798_v0 = vpack.c.bf16 %v4734_v50, %v4730_v59  ;;  %v4267_v30 = vadd.f32 %v9496_v42, %v4117_v44  ;;  %v4155_v1 = vadd.f32 %v3890_v9, %v9550_v20  ;;  %v4118_v12 = vadd.f32 %v3742_v38, %v8707_v11  ;;  %v8920_v26 = vpop.f32.mrb[78].mxu1 }
 0x461   :  { %v4414_v21 = vmul.f32 %v9501_v8, %v4264_v63  ;;  %5322 = vmatmul.mubr.bf16.gmra.mrb[104].mxu1 %v4771_v2  ;;  %v4301_v53 = vadd.f32 %v7970_v49, %v4151_v45  ;;  %v4488_v57 = vadd.f32 %v9514_v32, %v8349_v7  ;;  %v3754_v47 = vrot.slane %v9551_v39, %v9477_v10  ;;  %v8925_v50 = vpop.f32.mrb[79].mxu1 }
 0x462   :  { %5216 = vmatprep.mubr.bf16.mxu0 %v4798_v0  ;;  %v4305_v59 = vadd.f32 %v7970_v49, %v4155_v1  ;;  %v4268_v11 = vadd.f32 %v9498_v34, %v4118_v12  ;;  %v4612_v61 = vmax.f32 %v4484_v62, 0.0  ;;  %v4556_v60 = vadd.f32 %v9514_v32, %v8847_v17  ;;  %v9552_v1 = vld [vmem:[#allocation87_spill] sm:$0xff] }
 0x463   :  { %v4451_v63 = vmul.f32 %v7973_v16, %v4301_v53  ;;  %v4616_v55 = vmax.f32 %v4488_v57, 0.0  ;;  %v4121_v7 = vadd.f32 %v3754_v47, %v8733_v28  ;;  %v4560_v35 = vadd.f32 %v9514_v32, %v4410_v51  ;;  %v9553_v47 = vld [vmem:[#allocation17_spill] sm:$0xff] }
 0x464   :  { %v4417_v44 = vmul.f32 %v9499_v36, %v4267_v30  ;;  %v4455_v49 = vmul.f32 %v7973_v16, %v4305_v59  ;;  %v4684_v9 = vmax.f32 %v4556_v60, 0.0  ;;  %v3758_v38 = vrot.slane %v9551_v39, %v9479_v46  ;;  %v9554_v59 = vld [vmem:[#allocation44_spill] sm:$0xff] }
 0x465   :  { %v4601_v17 = vadd.f32 %v7979_v48, %v4451_v63  ;;  %v4740_v2 = vpack.c.bf16 %v4616_v55, %v4612_v61  ;;  %v4271_v6 = vadd.f32 %v9496_v42, %v4121_v7  ;;  %v4688_v45 = vmax.f32 %v4560_v35, 0.0 }
 0x466   :  { %v4605_v28 = vadd.f32 %v7979_v48, %v4455_v49  ;;  %v4122_v51 = vadd.f32 %v3758_v38, %v8738_v43  ;;  %v4555_v62 = vadd.f32 %v9500_v15, %v8828_v56  ;;  %v4559_v16 = vadd.f32 %v9500_v15, %v8858_v33 }
 0x467   :  { %v4729_v0 = vmax.f32 %v4601_v17, 0.0  ;;  %v4418_v30 = vmul.f32 %v9501_v8, %v4268_v11  ;;  %v4776_v20 = vpack.c.bf16 %v4688_v45, %v4684_v9  ;;  %v3770_v12 = vrot.slane %v9552_v1, %v9477_v10 }
 0x468   :  { %v4733_v53 = vmax.f32 %v4605_v28, 0.0  ;;  %v4272_v57 = vadd.f32 %v9498_v34, %v4122_v51  ;;  %v4683_v39 = vmax.f32 %v4555_v62, 0.0  ;;  %v4687_v48 = vmax.f32 %v4559_v16, 0.0 }
 0x469   :  { %5329 = vmatprep.mubr.bf16.mxu1 %v4776_v20  ;;  %v4125_v43 = vadd.f32 %v3770_v12, %v8743_v18  ;;  %v3774_v56 = vrot.slane %v9552_v1, %v9479_v46  ;;  %v4492_v33 = vadd.f32 %v9514_v32, %v9553_v47  ;;  %v4496_v11 = vadd.f32 %v9514_v32, %v9554_v59  ;;  %v9558_v47 = vld [vmem:[#allocation88_spill] sm:$0xff] }
 0x46a   :  { %v4797_v61 = vpack.c.bf16 %v4733_v53, %v4729_v0  ;;  %v4421_v60 = vmul.f32 %v9499_v36, %v4271_v6  ;;  %v4775_v63 = vpack.c.bf16 %v4687_v48, %v4683_v39  ;;  %v3786_v55 = vrot.slane %v9526_v25, %v9477_v10  ;;  %v9556_v53 = vld [vmem:[#allocation19_spill] sm:$0xff] }
 0x46b   :  { %v4275_v7 = vadd.f32 %v9496_v42, %v4125_v43  ;;  %v4126_v18 = vadd.f32 %v3774_v56, %v8748_v4  ;;  %v4620_v35 = vmax.f32 %v4492_v33, 0.0  ;;  %v4624_v49 = vmax.f32 %v4496_v11, 0.0  ;;  %v9557_v43 = vld [vmem:[#allocation79_spill] sm:$0xff] }
 0x46c   :  { %5217 = vmatmul.mubr.bf16.gmra.mrb[188].mxu0 %v4797_v61  ;;  %5330 = vmatmul.mubr.bf16.gmra.mrb[108].mxu1 %v4775_v63  ;;  %v4129_v9 = vadd.f32 %v3786_v55, %v8777_v5  ;;  %v4564_v38 = vadd.f32 %v9514_v32, %v4414_v21  ;;  %v4568_v17 = vadd.f32 %v9514_v32, %v4418_v30  ;;  %v9555_v30 = vld [vmem:[#allocation84_spill] sm:$0xff] }
 0x46d   :  { %5257 = vmatprep.mubr.bf16.mxu0 %v4740_v2  ;;  %v4422_v6 = vmul.f32 %v9501_v8, %v4272_v57  ;;  %v4276_v45 = vadd.f32 %v9498_v34, %v4126_v18  ;;  %v4744_v28 = vpack.c.bf16 %v4624_v49, %v4620_v35  ;;  %v3790_v51 = vrot.slane %v9526_v25, %v9479_v46  ;;  %v9560_v18 = vld [vmem:[#allocation18_spill] sm:$0xff] }
 0x46e   :  { %v4279_v4 = vadd.f32 %v9496_v42, %v4129_v9  ;;  %v4692_v62 = vmax.f32 %v4564_v38, 0.0  ;;  %v4696_v16 = vmax.f32 %v4568_v17, 0.0  ;;  %v4563_v5 = vadd.f32 %v9500_v15, %v8898_v58 }
 0x46f   :  { %v4425_v21 = vmul.f32 %v9499_v36, %v4275_v7  ;;  %v4130_v0 = vadd.f32 %v3790_v51, %v8783_v22  ;;  %v4567_v2 = vadd.f32 %v9500_v15, %v4417_v44  ;;  %v3802_v20 = vrot.slane %v9555_v30, %v9477_v10 }
 0x470   :  { %v4426_v1 = vmul.f32 %v9501_v8, %v4276_v45  ;;  %v4780_v12 = vpack.c.bf16 %v4696_v16, %v4692_v62  ;;  %v4691_v25 = vmax.f32 %v4563_v5, 0.0  ;;  %v4491_v57 = vadd.f32 %v9500_v15, %v9556_v53 }
 0x471   :  { %v4280_v39 = vadd.f32 %v9498_v34, %v4130_v0  ;;  %v4695_v48 = vmax.f32 %v4567_v2, 0.0  ;;  %v4133_v58 = vadd.f32 %v3802_v20, %v8794_v3  ;;  %v4495_v22 = vadd.f32 %v9500_v15, %v9557_v43  ;;  %v9559_v3 = vld [vmem:[#allocation16_spill] sm:$0xff] }
 0x472   :  { %v4429_v44 = vmul.f32 %v9499_v36, %v4279_v4  ;;  %5337 = vmatprep.mubr.bf16.mxu1 %v4780_v12  ;;  %v3806_v56 = vrot.slane %v9555_v30, %v9479_v46  ;;  %v3818_v33 = vrot.slane %v9558_v47, %v9477_v10  ;;  %v4572_v59 = vadd.f32 %v9514_v32, %v4422_v6 }
 0x473   :  { %v4779_v11 = vpack.c.bf16 %v4695_v48, %v4691_v25  ;;  %v4283_v61 = vadd.f32 %v9496_v42, %v4133_v58  ;;  %v4619_v63 = vmax.f32 %v4491_v57, 0.0  ;;  %v4623_v55 = vmax.f32 %v4495_v22, 0.0 }
 0x474   :  { %5258 = vmatmul.mubr.bf16.vlgmr.msra.gmra.mrb[192].mxu0 %v9559_v3  ;;  %v4430_v7 = vmul.f32 %v9501_v8, %v4280_v39  ;;  %v4134_v35 = vadd.f32 %v3806_v56, %v9560_v18  ;;  %v4137_v49 = vadd.f32 %v3818_v33, %v8818_v29  ;;  %v4576_v9 = vadd.f32 %v9514_v32, %v4426_v1 }
 0x475   :  { %5265 = vmatprep.mubr.bf16.mxu0 %v4744_v28  ;;  %5338 = vmatmul.mubr.bf16.gmra.mrb[112].mxu1 %v4779_v11  ;;  %v4433_v38 = vmul.f32 %v9499_v36, %v4283_v61  ;;  %v4743_v17 = vpack.c.bf16 %v4623_v55, %v4619_v63  ;;  %v4700_v6 = vmax.f32 %v4572_v59, 0.0  ;;  %v3822_v45 = vrot.slane %v9558_v47, %v9479_v46  ;;  %v9561_v28 = vld [vmem:[#allocation90_spill] sm:$0xff] }
 0x476   :  { %v4284_v51 = vadd.f32 %v9498_v34, %v4134_v35  ;;  %v4287_v4 = vadd.f32 %v9496_v42, %v4137_v49  ;;  %v4704_v62 = vmax.f32 %v4576_v9, 0.0  ;;  %v4571_v16 = vadd.f32 %v9500_v15, %v4421_v60 }
 0x477   :  { %v4138_v29 = vadd.f32 %v3822_v45, %v8825_v54  ;;  %v4575_v5 = vadd.f32 %v9500_v15, %v4425_v21  ;;  %v3834_v0 = vrot.slane %v9561_v28, %v9477_v10  ;;  %v3838_v2 = vrot.slane %v9561_v28, %v9479_v46 }
 0x478   :  { %v4434_v30 = vmul.f32 %v9501_v8, %v4284_v51  ;;  %v4437_v20 = vmul.f32 %v9499_v36, %v4287_v4  ;;  %v4784_v1 = vpack.c.bf16 %v4704_v62, %v4700_v6  ;;  %v4699_v12 = vmax.f32 %v4571_v16, 0.0 }
 0x479   :  { %v4288_v25 = vadd.f32 %v9498_v34, %v4138_v29  ;;  %v4703_v53 = vmax.f32 %v4575_v5, 0.0  ;;  %v4141_v60 = vadd.f32 %v3834_v0, %v8833_v23  ;;  %v4142_v54 = vadd.f32 %v3838_v2, %v8838_v31 }
 0x47a   :  { %5345 = vmatprep.mubr.bf16.mxu1 %v4784_v1  ;;  %v3850_v21 = vrot.slane %v9538_v40, %v9477_v10  ;;  %v4580_v57 = vadd.f32 %v9514_v32, %v4430_v7  ;;  %v4584_v39 = vadd.f32 %v9514_v32, %v4434_v30  ;;  %v3854_v48 = vrot.slane %v9538_v40, %v9479_v46 }
 0x47b   :  { %v4438_v58 = vmul.f32 %v9501_v8, %v4288_v25  ;;  %v4783_v43 = vpack.c.bf16 %v4703_v53, %v4699_v12  ;;  %v4291_v22 = vadd.f32 %v9496_v42, %v4141_v60  ;;  %v4292_v23 = vadd.f32 %v9498_v34, %v4142_v54 }
 0x47c   :  { %5266 = vmatmul.mubr.bf16.gmra.mrb[196].mxu0 %v4743_v17  ;;  %v4145_v31 = vadd.f32 %v3850_v21, %v8867_v14  ;;  %v4708_v56 = vmax.f32 %v4580_v57, 0.0  ;;  %v4712_v47 = vmax.f32 %v4584_v39, 0.0  ;;  %v4146_v33 = vadd.f32 %v3854_v48, %v8874_v37  ;;  %v9562_v14 = vld [vmem:[#allocation86_spill] sm:$0xff] }
 0x47d   :  { %5346 = vmatmul.mubr.bf16.gmra.mrb[116].mxu1 %v4783_v43  ;;  %v4441_v59 = vmul.f32 %v9499_v36, %v4291_v22  ;;  %v4442_v11 = vmul.f32 %v9501_v8, %v4292_v23  ;;  %v4579_v40 = vadd.f32 %v9500_v15, %v4429_v44  ;;  %v4583_v61 = vadd.f32 %v9500_v15, %v4433_v38 }
 0x47e   :  { %v4295_v63 = vadd.f32 %v9496_v42, %v4145_v31  ;;  %v4788_v55 = vpack.c.bf16 %v4712_v47, %v4708_v56  ;;  %v4296_v3 = vadd.f32 %v9498_v34, %v4146_v33  ;;  %v3866_v7 = vrot.slane %v9562_v14, %v9477_v10 }
 0x47f   :  { %v4707_v18 = vmax.f32 %v4579_v40, 0.0  ;;  %v4711_v35 = vmax.f32 %v4583_v61, 0.0  ;;  %v3870_v37 = vrot.slane %v9562_v14, %v9479_v46  ;;  %v3882_v49 = vrot.slane %v9544_v41, %v9477_v10 }
 0x480   :  { %v4445_v44 = vmul.f32 %v9499_v36, %v4295_v63  ;;  %5353 = vmatprep.mubr.bf16.mxu1 %v4788_v55  ;;  %v4446_v9 = vmul.f32 %v9501_v8, %v4296_v3  ;;  %v4149_v38 = vadd.f32 %v3866_v7, %v8879_v52  ;;  %v4588_v17 = vadd.f32 %v9514_v32, %v4438_v58 }
 0x481   :  { %v4787_v6 = vpack.c.bf16 %v4711_v35, %v4707_v18  ;;  %v4150_v45 = vadd.f32 %v3870_v37, %v8884_v19  ;;  %v4153_v51 = vadd.f32 %v3882_v49, %v8906_v13  ;;  %v4592_v4 = vadd.f32 %v9514_v32, %v4442_v11 }
 0x482   :  { %v4299_v62 = vadd.f32 %v9496_v42, %v4149_v38  ;;  %v4716_v16 = vmax.f32 %v4588_v17, 0.0  ;;  %v3886_v29 = vrot.slane %v9544_v41, %v9479_v46  ;;  %v4587_v5 = vadd.f32 %v9500_v15, %v4437_v20 }
 0x483   :  { %v4300_v28 = vadd.f32 %v9498_v34, %v4150_v45  ;;  %v4303_v52 = vadd.f32 %v9496_v42, %v4153_v51  ;;  %v4720_v0 = vmax.f32 %v4592_v4, 0.0  ;;  %v4591_v2 = vadd.f32 %v9500_v15, %v4441_v59 }
 0x484   :  { %v4449_v19 = vmul.f32 %v9499_v36, %v4299_v62  ;;  %v4154_v13 = vadd.f32 %v3886_v29, %v8914_v24  ;;  %v4715_v30 = vmax.f32 %v4587_v5, 0.0  ;;  %v3898_v1 = vrot.slane %v9546_v27, %v9477_v10 }
 0x485   :  { %5354 = vmatmul.mubr.bf16.gmra.mrb[120].mxu1 %v4787_v6  ;;  %v4450_v41 = vmul.f32 %v9501_v8, %v4300_v28  ;;  %v4453_v20 = vmul.f32 %v9499_v36, %v4303_v52  ;;  %v4792_v12 = vpack.c.bf16 %v4720_v0, %v4716_v16  ;;  %v4719_v25 = vmax.f32 %v4591_v2, 0.0 }
 0x486   :  { %v4304_v53 = vadd.f32 %v9498_v34, %v4154_v13  ;;  %v4157_v60 = vadd.f32 %v3898_v1, %v8920_v26  ;;  %v3902_v54 = vrot.slane %v9546_v27, %v9479_v46  ;;  %v4596_v24 = vadd.f32 %v9514_v32, %v4446_v9 }
 0x487   :  { %5361 = vmatprep.mubr.bf16.mxu1 %v4792_v12  ;;  %v4791_v21 = vpack.c.bf16 %v4719_v25, %v4715_v30  ;;  %v4600_v10 = vadd.f32 %v9514_v32, %v4450_v41  ;;  %v4595_v57 = vadd.f32 %v9500_v15, %v4445_v44  ;;  %v4599_v39 = vadd.f32 %v9500_v15, %v4449_v19 }
 0x488   :  { %v4454_v48 = vmul.f32 %v9501_v8, %v4304_v53  ;;  %v4307_v58 = vadd.f32 %v9496_v42, %v4157_v60  ;;  %v4158_v43 = vadd.f32 %v3902_v54, %v8925_v50  ;;  %v4724_v26 = vmax.f32 %v4596_v24, 0.0 }
 0x489   :  { %v4728_v22 = vmax.f32 %v4600_v10, 0.0  ;;  %v4723_v23 = vmax.f32 %v4595_v57, 0.0  ;;  %v4727_v46 = vmax.f32 %v4599_v39, 0.0  ;;  %v4603_v56 = vadd.f32 %v9500_v15, %v4453_v20 }
 0x48a   :  { %v4457_v27 = vmul.f32 %v9499_v36, %v4307_v58  ;;  %v4308_v31 = vadd.f32 %v9498_v34, %v4158_v43  ;;  %v4604_v11 = vadd.f32 %v9514_v32, %v4454_v48 }
 0x48b   :  { %v4796_v47 = vpack.c.bf16 %v4728_v22, %v4724_v26  ;;  %v4795_v33 = vpack.c.bf16 %v4727_v46, %v4723_v23  ;;  %v4731_v40 = vmax.f32 %v4603_v56, 0.0 }
 0x48c   :  { %v4458_v59 = vmul.f32 %v9501_v8, %v4308_v31  ;;  %v4607_v42 = vadd.f32 %v9500_v15, %v4457_v27  ;;  %v4732_v63 = vmax.f32 %v4604_v11, 0.0  ;;  %v9092_v27 = vld [vmem:[%s9320_s13] ss:$0 sm:$0xff]  ;;  %s5684_s13 = sshll.u32 %s6515_s11, 4  ;;  %s5685_s13 = int_to_ptr.vmem [resolvable:$true] %s5684_s13 }
 0x48d   :  { %5362 = vmatmul.mubr.bf16.gmra.mrb[124].mxu1 %v4791_v21  ;;  %s6477_s7 = scalar_lea.vmem %s5685_s13, 512  ;;  %p6482_p3 = scmp.lt.s32.totalorder %s5685_s13, %s5685_s13 }
 0x48e   :  { %5369 = vmatprep.mubr.bf16.mxu1 %v4796_v47  ;;  %v4608_v50 = vadd.f32 %v9514_v32, %v4458_v59  ;;  %v4735_v61 = vmax.f32 %v4607_v42, 0.0  ;;  %p6478_p2 = scmp.ne.s32.totalorder %s5685_s13, %s6477_s7  ;;  %p6483_p4 = scmp.lt.s32.totalorder %s6477_s7, %s6477_s7 }
 0x490   :  { %v4736_v36 = vmax.f32 %v4608_v50, 0.0  ;;  %v4799_v55 = vpack.c.bf16 %v4735_v61, %v4731_v40  ;;  %p6484_p5 = por %p6483_p4, %p6482_p3 }
 0x492   :  { %v4800_v34 = vpack.c.bf16 %v4736_v36, %v4732_v63  ;;  %p6485_p6 = pnand %p6484_p5, %p6478_p2 }
 0x495   :  { %5370 = vmatmul.mubr.bf16.gmra.mrb[128].mxu1 %v4795_v33 }
 0x496   :  { %5377 = vmatprep.mubr.bf16.mxu1 %v4800_v34 }
 0x49d   :  { %5378 = vmatmul.mubr.bf16.gmra.mrb[132].mxu1 %v4799_v55  ;;  %v5893_v3 = vpop.f32.mrb[128].mxu0 }
 0x49e   :  { %v5894_v14 = vpop.f32.mrb[129].mxu0 }
 0x49f   :  { %v9067_v8 = vadd.f32 %v5894_v14, %v5893_v3  ;;  %v5896_v7 = vpop.f32.mrb[130].mxu0 }
 0x4a0   :  { %v5897_v18 = vpop.f32.mrb[131].mxu0 }
 0x4a1   :  { %v9069_v15 = vadd.f32 %v5897_v18, %v5896_v7 }
 0x4a5   :  { %v5899_v35 = vpop.f32.mrb[132].mxu0 }
 0x4a6   :  { %v5900_v37 = vpop.f32.mrb[133].mxu0 }
 0x4a7   :  { %v9071_v32 = vadd.f32 %v5900_v37, %v5899_v35  ;;  %v5902_v49 = vpop.f32.mrb[134].mxu0 }
 0x4a8   :  { %v5903_v44 = vpop.f32.mrb[135].mxu0 }
 0x4a9   :  { %v9073_v9 = vadd.f32 %v5903_v44, %v5902_v49 }
 0x4ad   :  { %v5905_v38 = vpop.f32.mrb[136].mxu0 }
 0x4ae   :  { %v5906_v17 = vpop.f32.mrb[137].mxu0 }
 0x4af   :  { %v5907_v6 = vadd.f32 %v5906_v17, %v5905_v38  ;;  %v5908_v45 = vpop.f32.mrb[138].mxu0 }
 0x4b0   :  { %v5909_v51 = vpop.f32.mrb[139].mxu0 }
 0x4b1   :  { %v5910_v4 = vadd.f32 %v5909_v51, %v5908_v45  ;;  %v5115_v56 = vadd.f32 %v5907_v6, %v9092_v27 }
 0x4b3   :  { %v5118_v50 = vadd.f32 %v5910_v4, %v9092_v27 }
 0x4b5   :  { %v5911_v62 = vpop.f32.mrb[140].mxu0 }
 0x4b6   :  { %v5912_v16 = vpop.f32.mrb[141].mxu0 }
 0x4b7   :  { %v5913_v29 = vadd.f32 %v5912_v16, %v5911_v62  ;;  %v5914_v5 = vpop.f32.mrb[142].mxu0 }
 0x4b8   :  { %v5915_v28 = vpop.f32.mrb[143].mxu0 }
 0x4b9   :  { %v5916_v52 = vadd.f32 %v5915_v28, %v5914_v5  ;;  %v5123_v17 = vadd.f32 %v5913_v29, %v9092_v27 }
 0x4bb   :  { %v5126_v4 = vadd.f32 %v5916_v52, %v9092_v27 }
 0x4bd   :  { %v5917_v0 = vpop.f32.mrb[144].mxu0 }
 0x4be   :  { %v5918_v2 = vpop.f32.mrb[145].mxu0 }
 0x4bf   :  { %v5919_v19 = vadd.f32 %v5918_v2, %v5917_v0  ;;  %v5920_v13 = vpop.f32.mrb[146].mxu0 }
 0x4c0   :  { %v5921_v30 = vpop.f32.mrb[147].mxu0 }
 0x4c1   :  { %v9075_v1 = vadd.f32 %v5921_v30, %v5920_v13  ;;  %v5131_v29 = vadd.f32 %v5919_v19, %v9092_v27 }
 0x4c5   :  { %v5923_v41 = vpop.f32.mrb[148].mxu0 }
 0x4c6   :  { %v5924_v20 = vpop.f32.mrb[149].mxu0 }
 0x4c7   :  { %v9077_v12 = vadd.f32 %v5924_v20, %v5923_v41  ;;  %v5926_v25 = vpop.f32.mrb[150].mxu0 }
 0x4c8   :  { %v5927_v53 = vpop.f32.mrb[151].mxu0 }
 0x4c9   :  { %v9079_v60 = vadd.f32 %v5927_v53, %v5926_v25 }
 0x4cd   :  { %v5929_v54 = vpop.f32.mrb[152].mxu0 }
 0x4ce   :  { %v5930_v24 = vpop.f32.mrb[153].mxu0 }
 0x4cf   :  { %v9081_v21 = vadd.f32 %v5930_v24, %v5929_v54  ;;  %v5932_v10 = vpop.f32.mrb[154].mxu0  ;;  %v5134_v24 = vadd.f32 %v9075_v1, %v9092_v27 }
 0x4d0   :  { %v5933_v57 = vpop.f32.mrb[155].mxu0 }
 0x4d1   :  { %v9083_v39 = vadd.f32 %v5933_v57, %v5932_v10 }
 0x4d8   :  { %v5935_v48 = vpop.f32.mrb[156].mxu0 }
 0x4d9   :  { %v5936_v58 = vpop.f32.mrb[157].mxu0 }
 0x4da   :  { %v9085_v43 = vadd.f32 %v5936_v58, %v5935_v48  ;;  %v5938_v26 = vpop.f32.mrb[158].mxu0 }
 0x4db   :  { %v5939_v22 = vpop.f32.mrb[159].mxu0 }
 0x4dc   :  { %v9087_v23 = vadd.f32 %v5939_v22, %v5938_v26 }
 0x4e3   :  { %v6017_v46 = vpop.f32.mrb[80].mxu1 }
 0x4e4   :  { %v6018_v31 = vpop.f32.mrb[81].mxu1 }
 0x4e5   :  { %v5941_v47 = vpop.f32.mrb[160].mxu0  ;;  %v6019_v33 = vadd.f32 %v6018_v31, %v6017_v46  ;;  %v6020_v59 = vpop.f32.mrb[82].mxu1 }
 0x4e6   :  { %v5942_v11 = vpop.f32.mrb[161].mxu0  ;;  %v6021_v42 = vpop.f32.mrb[83].mxu1 }
 0x4e7   :  { %v9096_v40 = vadd.f32 %v5942_v11, %v5941_v47  ;;  %v5944_v61 = vpop.f32.mrb[162].mxu0  ;;  %v9098_v63 = vadd.f32 %v6019_v33, %v5115_v56  ;;  %v6022_v36 = vadd.f32 %v6021_v42, %v6020_v59 }
 0x4e8   :  { %v5945_v55 = vpop.f32.mrb[163].mxu0 }
 0x4e9   :  { %v9100_v34 = vadd.f32 %v5945_v55, %v5944_v61  ;;  %v9102_v3 = vadd.f32 %v6022_v36, %v5118_v50 }
 0x4f0   :  { %v5947_v14 = vpop.f32.mrb[164].mxu0 }
 0x4f1   :  { %v5948_v7 = vpop.f32.mrb[165].mxu0 }
 0x4f2   :  { %v9104_v18 = vadd.f32 %v5948_v7, %v5947_v14  ;;  %v5950_v35 = vpop.f32.mrb[166].mxu0 }
 0x4f3   :  { %v5951_v37 = vpop.f32.mrb[167].mxu0  ;;  %v6023_v44 = vpop.f32.mrb[84].mxu1 }
 0x4f4   :  { %v9106_v49 = vadd.f32 %v5951_v37, %v5950_v35  ;;  %v6024_v38 = vpop.f32.mrb[85].mxu1  ;;  %v5139_v37 = vadd.f32 %v9077_v12, %v9092_v27 }
 0x4f5   :  { %v6025_v6 = vadd.f32 %v6024_v38, %v6023_v44  ;;  %v6026_v45 = vpop.f32.mrb[86].mxu1 }
 0x4f6   :  { %v6027_v51 = vpop.f32.mrb[87].mxu1 }
 0x4f7   :  { %v9110_v62 = vadd.f32 %v6025_v6, %v5123_v17  ;;  %v6028_v16 = vadd.f32 %v6027_v51, %v6026_v45  ;;  %v5142_v17 = vadd.f32 %v9079_v60, %v9092_v27 }
 0x4f9   :  { %v9112_v5 = vadd.f32 %v6028_v16, %v5126_v4 }
 0x4fe   :  { %v5953_v28 = vpop.f32.mrb[168].mxu0 }
 0x4ff   :  { %v5954_v0 = vpop.f32.mrb[169].mxu0 }
 0x500   :  { %v9114_v2 = vadd.f32 %v5954_v0, %v5953_v28  ;;  %v5956_v13 = vpop.f32.mrb[170].mxu0  ;;  %v6029_v30 = vpop.f32.mrb[88].mxu1 }
 0x501   :  { %v5957_v41 = vpop.f32.mrb[171].mxu0  ;;  %v6030_v20 = vpop.f32.mrb[89].mxu1 }
 0x502   :  { %v9117_v25 = vadd.f32 %v5957_v41, %v5956_v13  ;;  %v6031_v53 = vadd.f32 %v6030_v20, %v6029_v30  ;;  %v6032_v54 = vpop.f32.mrb[90].mxu1 }
 0x503   :  { %v6033_v52 = vpop.f32.mrb[91].mxu1 }
 0x504   :  { %v5292_v10 = vadd.f32 %v6031_v53, %v5131_v29  ;;  %v6034_v57 = vadd.f32 %v6033_v52, %v6032_v54 }
 0x506   :  { %v5443_v48 = vsel %vm5386_vm7, %v5292_v10, -inf  ;;  %v5295_v58 = vadd.f32 %v6034_v57, %v5134_v24 }
 0x507   :  { %v5444_v26 = vrot.slane %v5443_v48, 4 }
 0x508   :  { %v5450_v22 = vsel %vm5386_vm7, %v5295_v58, -inf }
 0x509   :  { %v5445_v46 = vmax.f32 %v5443_v48, %v5444_v26  ;;  %v5451_v31 = vrot.slane %v5450_v22, 4 }
 0x50b   :  { %v5959_v19 = vpop.f32.mrb[172].mxu0  ;;  %v5446_v56 = vrot.slane %v5445_v46, 2  ;;  %v5452_v47 = vmax.f32 %v5450_v22, %v5451_v31  ;;  %v5147_v22 = vadd.f32 %v9081_v21, %v9092_v27 }
 0x50c   :  { %v5960_v33 = vpop.f32.mrb[173].mxu0 }
 0x50d   :  { %v5447_v59 = vmax.f32 %v5445_v46, %v5446_v56  ;;  %v9123_v11 = vadd.f32 %v5960_v33, %v5959_v19  ;;  %v5962_v42 = vpop.f32.mrb[174].mxu0  ;;  %v5453_v1 = vrot.slane %v5452_v47, 2  ;;  %v6035_v50 = vpop.f32.mrb[92].mxu1 }
 0x50e   :  { %v5963_v61 = vpop.f32.mrb[175].mxu0  ;;  %v6036_v36 = vpop.f32.mrb[93].mxu1 }
 0x50f   :  { %v5448_v55 = vrot.slane %v5447_v59, 1  ;;  %v5454_v14 = vmax.f32 %v5452_v47, %v5453_v1  ;;  %v9125_v7 = vadd.f32 %v5963_v61, %v5962_v42  ;;  %v6038_v35 = vpop.f32.mrb[94].mxu1  ;;  %v6037_v44 = vadd.f32 %v6036_v36, %v6035_v50 }
 0x510   :  { %v6039_v38 = vpop.f32.mrb[95].mxu1 }
 0x511   :  { %v5455_v6 = vrot.slane %v5454_v14, 1  ;;  %v6040_v45 = vadd.f32 %v6039_v38, %v6038_v35  ;;  %v5300_v51 = vadd.f32 %v6037_v44, %v5139_v37  ;;  %v5449_v4 = vmax.f32 %v5447_v59, %v5448_v55 }
 0x512   :  { %v5150_v59 = vadd.f32 %v9083_v39, %v9092_v27 }
 0x513   :  { %v5456_v16 = vmax.f32 %v5454_v14, %v5455_v6  ;;  %v5303_v28 = vadd.f32 %v6040_v45, %v5142_v17  ;;  %v5457_v0 = vsel %vm5386_vm7, %v5300_v51, -inf }
 0x514   :  { %v5458_v30 = vrot.slane %v5457_v0, 4 }
 0x515   :  { %v5650_v13 = vsel %vm1804_vm0, %v5456_v16, %v5449_v4  ;;  %v5464_v41 = vsel %vm5386_vm7, %v5303_v28, -inf }
 0x516   :  { %v5465_v20 = vrot.slane %v5464_v41, 4  ;;  %v5459_v12 = vmax.f32 %v5457_v0, %v5458_v30 }
 0x518   :  { %v5965_v29 = vpop.f32.mrb[176].mxu0  ;;  %v5466_v53 = vmax.f32 %v5464_v41, %v5465_v20  ;;  %v5460_v54 = vrot.slane %v5459_v12, 2 }
 0x519   :  { %v5966_v52 = vpop.f32.mrb[177].mxu0 }
 0x51a   :  { %v9134_v60 = vadd.f32 %v5966_v52, %v5965_v29  ;;  %v5968_v24 = vpop.f32.mrb[178].mxu0  ;;  %v5467_v10 = vrot.slane %v5466_v53, 2  ;;  %v6041_v57 = vpop.f32.mrb[96].mxu1  ;;  %v5461_v48 = vmax.f32 %v5459_v12, %v5460_v54  ;;  %v5155_v54 = vadd.f32 %v9085_v43, %v9092_v27 }
 0x51b   :  { %v5969_v58 = vpop.f32.mrb[179].mxu0  ;;  %v6042_v26 = vpop.f32.mrb[97].mxu1 }
 0x51c   :  { %v5468_v46 = vmax.f32 %v5466_v53, %v5467_v10  ;;  %v9138_v31 = vadd.f32 %v5969_v58, %v5968_v24  ;;  %v6043_v19 = vadd.f32 %v6042_v26, %v6041_v57  ;;  %v6044_v56 = vpop.f32.mrb[98].mxu1  ;;  %v5462_v47 = vrot.slane %v5461_v48, 1 }
 0x51d   :  { %v6045_v33 = vpop.f32.mrb[99].mxu1  ;;  %v5158_v10 = vadd.f32 %v9087_v23, %v9092_v27  ;;  %v5422_v23 = vsel %vm5386_vm7, %v9102_v3, -inf }
 0x51e   :  { %v5469_v42 = vrot.slane %v5468_v46, 1  ;;  %v5308_v1 = vadd.f32 %v6043_v19, %v5147_v22  ;;  %v6046_v50 = vadd.f32 %v6045_v33, %v6044_v56  ;;  %v5463_v61 = vmax.f32 %v5461_v48, %v5462_v47 }
 0x51f   :  { %v5415_v47 = vsel %vm5386_vm7, %v9098_v63, -inf }
 0x520   :  { %v5470_v36 = vmax.f32 %v5468_v46, %v5469_v42  ;;  %v5471_v55 = vsel %vm5386_vm7, %v5308_v1, -inf  ;;  %v5311_v14 = vadd.f32 %v6046_v50, %v5150_v59  ;;  %v5651_v21 = vsel %vm1806_vm1, %v5463_v61, %v5650_v13 }
 0x521   :  { %v5472_v35 = vrot.slane %v5471_v55, 4  ;;  %v5416_v50 = vrot.slane %v5415_v47, 4 }
 0x522   :  { %v5652_v37 = vsel %vm1808_vm2, %v5470_v36, %v5651_v21  ;;  %v5478_v44 = vsel %vm5386_vm7, %v5311_v14, -inf }
 0x523   :  { %v5473_v38 = vmax.f32 %v5471_v55, %v5472_v35  ;;  %v5479_v17 = vrot.slane %v5478_v44, 4  ;;  %v5423_v55 = vrot.slane %v5422_v23, 4  ;;  %v5417_v3 = vmax.f32 %v5415_v47, %v5416_v50 }
 0x525   :  { %v5971_v6 = vpop.f32.mrb[180].mxu0  ;;  %v5474_v45 = vrot.slane %v5473_v38, 2  ;;  %v5480_v39 = vmax.f32 %v5478_v44, %v5479_v17 }
 0x526   :  { %v5972_v51 = vpop.f32.mrb[181].mxu0 }
 0x527   :  { %v5475_v4 = vmax.f32 %v5473_v38, %v5474_v45  ;;  %v9146_v16 = vadd.f32 %v5972_v51, %v5971_v6  ;;  %v5974_v28 = vpop.f32.mrb[182].mxu0  ;;  %v5481_v0 = vrot.slane %v5480_v39, 2  ;;  %v6047_v30 = vpop.f32.mrb[100].mxu1  ;;  %v5163_v38 = vadd.f32 %v9096_v40, %v9092_v27 }
 0x528   :  { %v5975_v41 = vpop.f32.mrb[183].mxu0  ;;  %v6048_v20 = vpop.f32.mrb[101].mxu1  ;;  %v5429_v40 = vsel %vm5386_vm7, %v9110_v62, -inf }
 0x529   :  { %v5476_v13 = vrot.slane %v5475_v4, 1  ;;  %v5482_v12 = vmax.f32 %v5480_v39, %v5481_v0  ;;  %v9148_v29 = vadd.f32 %v5975_v41, %v5974_v28  ;;  %v6050_v53 = vpop.f32.mrb[102].mxu1  ;;  %v6049_v52 = vadd.f32 %v6048_v20, %v6047_v30 }
 0x52a   :  { %v6051_v24 = vpop.f32.mrb[103].mxu1  ;;  %v5424_v0 = vmax.f32 %v5422_v23, %v5423_v55  ;;  %v5166_v20 = vadd.f32 %v9100_v34, %v9092_v27 }
 0x52b   :  { %v5477_v57 = vmax.f32 %v5475_v4, %v5476_v13  ;;  %v5483_v48 = vrot.slane %v5482_v12, 1  ;;  %v6052_v58 = vadd.f32 %v6051_v24, %v6050_v53  ;;  %v5316_v26 = vadd.f32 %v6049_v52, %v5155_v54 }
 0x52c   :  { %v5418_v52 = vrot.slane %v5417_v3, 2 }
 0x52d   :  { %v5653_v22 = vsel %vm1810_vm3, %v5477_v57, %v5652_v37  ;;  %v5484_v46 = vmax.f32 %v5482_v12, %v5483_v48  ;;  %v5319_v19 = vadd.f32 %v6052_v58, %v5158_v10  ;;  %v5485_v56 = vsel %vm5386_vm7, %v5316_v26, -inf }
 0x52e   :  { %v5486_v33 = vrot.slane %v5485_v56, 4  ;;  %v5425_v48 = vrot.slane %v5424_v0, 2  ;;  %v5419_v62 = vmax.f32 %v5417_v3, %v5418_v52 }
 0x52f   :  { %v5654_v43 = vsel %vm1812_vm4, %v5484_v46, %v5653_v22  ;;  %v5492_v59 = vsel %vm5386_vm7, %v5319_v19, -inf  ;;  %v5430_v22 = vrot.slane %v5429_v40, 4 }
 0x530   :  { %v5493_v42 = vrot.slane %v5492_v59, 4  ;;  %v5487_v1 = vmax.f32 %v5485_v56, %v5486_v33  ;;  %v5426_v47 = vmax.f32 %v5424_v0, %v5425_v48  ;;  %v5436_v33 = vsel %vm5386_vm7, %v9112_v5, -inf }
 0x531   :  { %v5431_v50 = vmax.f32 %v5429_v40, %v5430_v22 }
 0x532   :  { %v5977_v61 = vpop.f32.mrb[184].mxu0  ;;  %v5494_v36 = vmax.f32 %v5492_v59, %v5493_v42  ;;  %v5488_v14 = vrot.slane %v5487_v1, 2 }
 0x533   :  { %v5978_v21 = vpop.f32.mrb[185].mxu0  ;;  %v5432_v0 = vrot.slane %v5431_v50, 2 }
 0x534   :  { %v9162_v35 = vadd.f32 %v5978_v21, %v5977_v61  ;;  %v5980_v37 = vpop.f32.mrb[186].mxu0  ;;  %v5495_v63 = vrot.slane %v5494_v36, 2  ;;  %v6053_v44 = vpop.f32.mrb[104].mxu1  ;;  %v5489_v17 = vmax.f32 %v5487_v1, %v5488_v14 }
 0x535   :  { %v5981_v6 = vpop.f32.mrb[187].mxu0  ;;  %v6054_v45 = vpop.f32.mrb[105].mxu1  ;;  %v9206_v48 = vmax.f32 %v5431_v50, %v5432_v0  ;;  %v9230_v0 = vadd.f32 %v9138_v31, %v9092_v27 }
 0x536   :  { %v5496_v39 = vmax.f32 %v5494_v36, %v5495_v63  ;;  %v9166_v51 = vadd.f32 %v5981_v6, %v5980_v37  ;;  %v6055_v4 = vadd.f32 %v6054_v45, %v6053_v44  ;;  %v6056_v28 = vpop.f32.mrb[106].mxu1  ;;  %v5490_v30 = vrot.slane %v5489_v17, 1 }
 0x537   :  { %v6057_v41 = vpop.f32.mrb[107].mxu1  ;;  %v5420_v44 = vrot.slane %v5419_v62, 1  ;;  %v5427_v45 = vrot.slane %v5426_v47, 1 }
 0x538   :  { %v5497_v13 = vrot.slane %v5496_v39, 1  ;;  %v5324_v12 = vadd.f32 %v6055_v4, %v5163_v38  ;;  %v6058_v53 = vadd.f32 %v6057_v41, %v6056_v28  ;;  %v5491_v54 = vmax.f32 %v5489_v17, %v5490_v30 }
 0x539   :  { %v5171_v38 = vadd.f32 %v9104_v18, %v9092_v27  ;;  %v5437_v17 = vrot.slane %v5436_v33, 4  ;;  %v5174_v28 = vadd.f32 %v9106_v49, %v9092_v27  ;;  %v5102_v18 = vadd.f32 %v9069_v15, %v9092_v27 }
 0x53a   :  { %v5498_v24 = vmax.f32 %v5496_v39, %v5497_v13  ;;  %v5499_v10 = vsel %vm5386_vm7, %v5324_v12, -inf  ;;  %v5327_v57 = vadd.f32 %v6058_v53, %v5166_v20  ;;  %v5655_v26 = vsel %vm1814_vm5, %v5491_v54, %v5654_v43 }
 0x53b   :  { %v5500_v58 = vrot.slane %v5499_v10, 4  ;;  %v5099_v20 = vadd.f32 %v9067_v8, %v9092_v27  ;;  %v9193_v12 = vadd.f32 %v9071_v32, %v9092_v27  ;;  %v9195_v53 = vmax.f32 %v5436_v33, %v5437_v17 }
 0x53c   :  { %v5506_v46 = vsel %vm5386_vm7, %v5327_v57, -inf  ;;  %v5656_v34 = vsel %vm1816_vm6, %v5498_v24, %v5655_v26  ;;  %v9200_v49 = vadd.f32 %v9073_v9, %v9092_v27  ;;  %v9202_v57 = vmax.f32 %v5419_v62, %v5420_v44 }
 0x53d   :  { %v5501_v19 = vmax.f32 %v5499_v10, %v5500_v58  ;;  %v5507_v56 = vrot.slane %v5506_v46, 4  ;;  %5676 = vst.msk [vmem:[#allocation7 + $0x8] sm:$0xff] %vm5386_vm7, %v5656_v34  ;;  %v9204_v15 = vmax.f32 %v5426_v47, %v5427_v45  ;;  %v5179_v33 = vadd.f32 %v9114_v2, %v9092_v27 }
 0x53e   :  { %v5439_v62 = vrot.slane %v9195_v53, 2  ;;  %v5182_v47 = vadd.f32 %v9117_v25, %v9092_v27  ;;  %v9224_v17 = vadd.f32 %v9134_v60, %v9092_v27 }
 0x53f   :  { %v5983_v59 = vpop.f32.mrb[188].mxu0  ;;  %v5502_v23 = vrot.slane %v5501_v19, 2  ;;  %v5508_v42 = vmax.f32 %v5506_v46, %v5507_v56  ;;  %v6059_v1 = vpop.f32.mrb[108].mxu1 }
 0x540   :  { %v5984_v43 = vpop.f32.mrb[189].mxu0  ;;  %v6060_v61 = vpop.f32.mrb[109].mxu1 }
 0x541   :  { %v5503_v36 = vmax.f32 %v5501_v19, %v5502_v23  ;;  %v9179_v55 = vadd.f32 %v5984_v43, %v5983_v59  ;;  %v5986_v14 = vpop.f32.mrb[190].mxu0  ;;  %v5509_v21 = vrot.slane %v5508_v42, 2  ;;  %v6061_v37 = vadd.f32 %v6060_v61, %v6059_v1  ;;  %v6062_v63 = vpop.f32.mrb[110].mxu1 }
 0x542   :  { %v5987_v5 = vpop.f32.mrb[191].mxu0  ;;  %v6063_v6 = vpop.f32.mrb[111].mxu1 }
 0x543   :  { %v5504_v3 = vrot.slane %v5503_v36, 1  ;;  %v5510_v39 = vmax.f32 %v5508_v42, %v5509_v21  ;;  %v9183_v4 = vadd.f32 %v5987_v5, %v5986_v14  ;;  %v5332_v30 = vadd.f32 %v6061_v37, %v5171_v38 }
 0x544   :  { %v6064_v41 = vadd.f32 %v6063_v6, %v6062_v63  ;;  %v5187_v14 = vadd.f32 %v9123_v11, %v9092_v27  ;;  %v9219_v21 = vadd.f32 %v9125_v7, %v9092_v27 }
 0x545   :  { %v5511_v13 = vrot.slane %v5510_v39, 1  ;;  %v5513_v40 = vsel %vm5386_vm7, %v5332_v30, -inf  ;;  %v5505_v52 = vmax.f32 %v5503_v36, %v5504_v3 }
 0x546   :  { %v5335_v54 = vadd.f32 %v6064_v41, %v5174_v28  ;;  %v5514_v10 = vrot.slane %v5513_v40, 4 }
 0x547   :  { %v5512_v24 = vmax.f32 %v5510_v39, %v5511_v13  ;;  %v6005_v8 = vpop.f32.mrb[192].mxu0 }
 0x548   :  { %v6006_v32 = vpop.f32.mrb[193].mxu0  ;;  %v5520_v58 = vsel %vm5386_vm7, %v5335_v54, -inf  ;;  %v6065_v26 = vpop.f32.mrb[112].mxu1  ;;  %v5515_v46 = vmax.f32 %v5513_v40, %v5514_v10 }
 0x549   :  { %v5657_v22 = vsel %vm1804_vm0, %v5512_v24, %v5505_v52  ;;  %v6007_v34 = vadd.f32 %v6006_v32, %v6005_v8  ;;  %v6008_v9 = vpop.f32.mrb[194].mxu0  ;;  %v5521_v19 = vrot.slane %v5520_v58, 4  ;;  %v6066_v56 = vpop.f32.mrb[113].mxu1 }
 0x54a   :  { %v6009_v59 = vpop.f32.mrb[195].mxu0  ;;  %v6067_v23 = vadd.f32 %v6066_v56, %v6065_v26  ;;  %v6068_v42 = vpop.f32.mrb[114].mxu1  ;;  %v5516_v1 = vrot.slane %v5515_v46, 2 }
 0x54b   :  { %v5260_v50 = vadd.f32 %v6007_v34, %v5099_v20  ;;  %v5522_v43 = vmax.f32 %v5520_v58, %v5521_v19  ;;  %v6010_v61 = vadd.f32 %v6009_v59, %v6008_v9  ;;  %v6069_v36 = vpop.f32.mrb[115].mxu1 }
 0x54c   :  { %v5340_v2 = vadd.f32 %v6067_v23, %v5179_v33  ;;  %v6070_v37 = vadd.f32 %v6069_v36, %v6068_v42  ;;  %v5517_v63 = vmax.f32 %v5515_v46, %v5516_v1 }
 0x54d   :  { %v5387_v25 = vsel %vm5386_vm7, %v5260_v50, -inf  ;;  %v5523_v44 = vrot.slane %v5522_v43, 2  ;;  %v5263_v38 = vadd.f32 %v6010_v61, %v5102_v18 }
 0x54e   :  { %v5388_v5 = vrot.slane %v5387_v25, 4  ;;  %v5527_v6 = vsel %vm5386_vm7, %v5340_v2, -inf  ;;  %v5343_v45 = vadd.f32 %v6070_v37, %v5182_v47  ;;  %v5518_v11 = vrot.slane %v5517_v63, 1 }
 0x54f   :  { %v5524_v3 = vmax.f32 %v5522_v43, %v5523_v44  ;;  %v5394_v7 = vsel %vm5386_vm7, %v5263_v38, -inf  ;;  %v6011_v39 = vpop.f32.mrb[196].mxu0  ;;  %v5528_v28 = vrot.slane %v5527_v6, 4 }
 0x550   :  { %v5389_v30 = vmax.f32 %v5387_v25, %v5388_v5  ;;  %v5395_v41 = vrot.slane %v5394_v7, 4  ;;  %v6012_v20 = vpop.f32.mrb[197].mxu0  ;;  %v5534_v60 = vsel %vm5386_vm7, %v5343_v45, -inf  ;;  %v6071_v18 = vpop.f32.mrb[116].mxu1  ;;  %v5519_v13 = vmax.f32 %v5517_v63, %v5518_v11 }
 0x551   :  { %v5525_v40 = vrot.slane %v5524_v3, 1  ;;  %v5529_v54 = vmax.f32 %v5527_v6, %v5528_v28  ;;  %v6013_v52 = vadd.f32 %v6012_v20, %v6011_v39  ;;  %v6014_v24 = vpop.f32.mrb[198].mxu0  ;;  %v6072_v8 = vpop.f32.mrb[117].mxu1  ;;  %v5535_v58 = vrot.slane %v5534_v60, 4 }
 0x552   :  { %v5390_v10 = vrot.slane %v5389_v30, 2  ;;  %v5396_v32 = vmax.f32 %v5394_v7, %v5395_v41  ;;  %v6015_v26 = vpop.f32.mrb[199].mxu0  ;;  %v6073_v46 = vadd.f32 %v6072_v8, %v6071_v18  ;;  %v6074_v34 = vpop.f32.mrb[118].mxu1  ;;  %v5658_v31 = vsel %vm1806_vm1, %v5519_v13, %v5657_v22 }
 0x553   :  { %v5526_v9 = vmax.f32 %v5524_v3, %v5525_v40  ;;  %v5530_v19 = vrot.slane %v5529_v54, 2  ;;  %v5268_v56 = vadd.f32 %v6013_v52, %v9193_v12  ;;  %v6075_v33 = vpop.f32.mrb[119].mxu1  ;;  %v5536_v23 = vmax.f32 %v5534_v60, %v5535_v58 }
 0x554   :  { %v5391_v47 = vmax.f32 %v5389_v30, %v5390_v10  ;;  %v5397_v59 = vrot.slane %v5396_v32, 2  ;;  %v6016_v42 = vadd.f32 %v6015_v26, %v6014_v24  ;;  %v5348_v61 = vadd.f32 %v6073_v46, %v5187_v14 }
 0x555   :  { %v5659_v1 = vsel %vm1808_vm2, %v5526_v9, %v5658_v31  ;;  %v5531_v50 = vmax.f32 %v5529_v54, %v5530_v19  ;;  %v5401_v43 = vsel %vm5386_vm7, %v5268_v56, -inf  ;;  %v5537_v63 = vrot.slane %v5536_v23, 2 }
 0x556   :  { %v5392_v36 = vrot.slane %v5391_v47, 1  ;;  %v5398_v2 = vmax.f32 %v5396_v32, %v5397_v59  ;;  %v5402_v37 = vrot.slane %v5401_v43, 4  ;;  %v5271_v25 = vadd.f32 %v6016_v42, %v9200_v49 }
 0x557   :  { %v5532_v22 = vrot.slane %v5531_v50, 1  ;;  %v5541_v12 = vsel %vm5386_vm7, %v5348_v61, -inf  ;;  %v6076_v44 = vadd.f32 %v6075_v33, %v6074_v34  ;;  %v5538_v45 = vmax.f32 %v5536_v23, %v5537_v63 }
 0x558   :  { %v5393_v38 = vmax.f32 %v5391_v47, %v5392_v36  ;;  %v5399_v5 = vrot.slane %v5398_v2, 1  ;;  %v5403_v6 = vmax.f32 %v5401_v43, %v5402_v37  ;;  %v6077_v11 = vpop.f32.mrb[120].mxu1  ;;  %v5408_v7 = vsel %vm5386_vm7, %v5271_v25, -inf }
 0x559   :  { %v5533_v3 = vmax.f32 %v5531_v50, %v5532_v22  ;;  %v5542_v39 = vrot.slane %v5541_v12, 4  ;;  %v5351_v14 = vadd.f32 %v6076_v44, %v9219_v21  ;;  %v6078_v28 = vpop.f32.mrb[121].mxu1  ;;  %v5539_v20 = vrot.slane %v5538_v45, 1 }
 0x55a   :  { %v5400_v30 = vmax.f32 %v5398_v2, %v5399_v5  ;;  %v5404_v41 = vrot.slane %v5403_v6, 2  ;;  %v5409_v60 = vrot.slane %v5408_v7, 4  ;;  %v6080_v49 = vpop.f32.mrb[122].mxu1  ;;  %v6079_v54 = vadd.f32 %v6078_v28, %v6077_v11 }
 0x55b   :  { %v5660_v18 = vsel %vm1810_vm3, %v5533_v3, %v5659_v1  ;;  %v5543_v13 = vmax.f32 %v5541_v12, %v5542_v39  ;;  %v5548_v40 = vsel %vm5386_vm7, %v5351_v14, -inf  ;;  %v6081_v52 = vpop.f32.mrb[123].mxu1  ;;  %v5540_v10 = vmax.f32 %v5538_v45, %v5539_v20 }
 0x55c   :  { %v5643_v24 = vsel %vm1804_vm0, %v5400_v30, %v5393_v38  ;;  %v5405_v8 = vmax.f32 %v5403_v6, %v5404_v41  ;;  %v5410_v32 = vmax.f32 %v5408_v7, %v5409_v60  ;;  %v5549_v21 = vrot.slane %v5548_v40, 4 }
 0x55d   :  { %v5544_v58 = vrot.slane %v5543_v13, 2  ;;  %v5356_v26 = vadd.f32 %v6079_v54, %v9224_v17  ;;  %v6082_v46 = vadd.f32 %v6081_v52, %v6080_v49  ;;  %v5434_v34 = vrot.slane %v9206_v48, 1 }
 0x55e   :  { %v5406_v31 = vrot.slane %v5405_v8, 1  ;;  %v5661_v9 = vsel %vm1812_vm4, %v5540_v10, %v5660_v18  ;;  %v5411_v19 = vrot.slane %v5410_v32, 2  ;;  %v5550_v33 = vmax.f32 %v5548_v40, %v5549_v21 }
 0x55f   :  { %v5545_v56 = vmax.f32 %v5543_v13, %v5544_v58  ;;  %v5555_v47 = vsel %vm5386_vm7, %v5356_v26, -inf  ;;  %v5359_v59 = vadd.f32 %v6082_v46, %v9230_v0  ;;  %v5440_v23 = vmax.f32 %v9195_v53, %v5439_v62 }
 0x560   :  { %v5407_v42 = vmax.f32 %v5405_v8, %v5406_v31  ;;  %v5412_v1 = vmax.f32 %v5410_v32, %v5411_v19  ;;  %v5556_v17 = vrot.slane %v5555_v47, 4  ;;  %v6083_v50 = vpop.f32.mrb[124].mxu1  ;;  %v5203_v43 = vadd.f32 %v9146_v16, %v9092_v27 }
 0x561   :  { %v5546_v61 = vrot.slane %v5545_v56, 1  ;;  %v5551_v36 = vrot.slane %v5550_v33, 2  ;;  %v5562_v2 = vsel %vm5386_vm7, %v5359_v59, -inf  ;;  %v6084_v37 = vpop.f32.mrb[125].mxu1  ;;  %v5206_v53 = vadd.f32 %v9148_v29, %v9092_v27 }
 0x562   :  { %v5644_v63 = vsel %vm1806_vm1, %v5407_v42, %v5643_v24  ;;  %v5413_v22 = vrot.slane %v5412_v1, 1  ;;  %v5557_v0 = vmax.f32 %v5555_v47, %v5556_v17  ;;  %v5563_v25 = vrot.slane %v5562_v2, 4  ;;  %v6086_v12 = vpop.f32.mrb[126].mxu1 }
 0x563   :  { %v5547_v62 = vmax.f32 %v5545_v56, %v5546_v61  ;;  %v5552_v44 = vmax.f32 %v5550_v33, %v5551_v36  ;;  %v6085_v38 = vadd.f32 %v6084_v37, %v6083_v50  ;;  %v6087_v5 = vpop.f32.mrb[127].mxu1  ;;  %v5441_v3 = vrot.slane %v5440_v23, 1 }
 0x564   :  { %v5414_v6 = vmax.f32 %v5412_v1, %v5413_v22  ;;  %v5558_v16 = vrot.slane %v5557_v0, 2  ;;  %v5564_v45 = vmax.f32 %v5562_v2, %v5563_v25  ;;  %v6088_v11 = vadd.f32 %v6087_v5, %v6086_v12 }
 0x565   :  { %v5553_v7 = vrot.slane %v5552_v44, 1  ;;  %v5364_v39 = vadd.f32 %v6085_v38, %v5203_v43  ;;  %v5662_v14 = vsel %vm1814_vm5, %v5547_v62, %v5661_v9  ;;  %v5435_v29 = vmax.f32 %v9206_v48, %v5434_v34 }
 0x566   :  { %v5645_v28 = vsel %vm1808_vm2, %v5414_v6, %v5644_v63  ;;  %v5559_v30 = vmax.f32 %v5557_v0, %v5558_v16  ;;  %v5565_v41 = vrot.slane %v5564_v45, 2  ;;  %v5367_v20 = vadd.f32 %v6088_v11, %v5206_v53 }
 0x567   :  { %v5646_v60 = vsel %vm1810_vm3, %v9202_v57, %v5645_v28  ;;  %v5554_v49 = vmax.f32 %v5552_v44, %v5553_v7  ;;  %v5569_v18 = vsel %vm5386_vm7, %v5364_v39, -inf  ;;  %v5442_v8 = vmax.f32 %v5440_v23, %v5441_v3 }
 0x568   :  { %v5560_v13 = vrot.slane %v5559_v30, 1  ;;  %v5566_v40 = vmax.f32 %v5564_v45, %v5565_v41  ;;  %v5570_v54 = vrot.slane %v5569_v18, 4  ;;  %v5576_v52 = vsel %vm5386_vm7, %v5367_v20, -inf  ;;  %v6089_v24 = vpop.f32.mrb[128].mxu1 }
 0x569   :  { %v5577_v10 = vrot.slane %v5576_v52, 4  ;;  %v6090_v32 = vpop.f32.mrb[129].mxu1  ;;  %v5647_v58 = vsel %vm1812_vm4, %v9204_v15, %v5646_v60  ;;  %v5663_v48 = vsel %vm1816_vm6, %v5554_v49, %v5662_v14  ;;  %v5211_v57 = vadd.f32 %v9162_v35, %v9092_v27 }
 0x56a   :  { %v5567_v21 = vrot.slane %v5566_v40, 1  ;;  %v5571_v26 = vmax.f32 %v5569_v18, %v5570_v54  ;;  %v6091_v46 = vadd.f32 %v6090_v32, %v6089_v24  ;;  %v6092_v34 = vpop.f32.mrb[130].mxu1  ;;  %5677 = vst.msk [vmem:[#allocation7 + $0x10] sm:$0xff] %vm5386_vm7, %v5663_v48  ;;  %v5214_v31 = vadd.f32 %v9166_v51, %v9092_v27 }
 0x56b   :  { %v5561_v9 = vmax.f32 %v5559_v30, %v5560_v13  ;;  %v5578_v19 = vmax.f32 %v5576_v52, %v5577_v10  ;;  %v6093_v56 = vpop.f32.mrb[131].mxu1  ;;  %v5648_v33 = vsel %vm1814_vm5, %v5435_v29, %v5647_v58  ;;  %v5219_v12 = vadd.f32 %v9179_v55, %v9092_v27 }
 0x56c   :  { %v5568_v15 = vmax.f32 %v5566_v40, %v5567_v21  ;;  %v5572_v47 = vrot.slane %v5571_v26, 2  ;;  %v5372_v59 = vadd.f32 %v6091_v46, %v5211_v57  ;;  %v6094_v23 = vadd.f32 %v6093_v56, %v6092_v34 }
 0x56d   :  { %v5579_v42 = vrot.slane %v5578_v19, 2  ;;  %v5649_v35 = vsel %vm1816_vm6, %v5442_v8, %v5648_v33  ;;  %v5222_v45 = vadd.f32 %v9183_v4, %v9092_v27 }
 0x56e   :  { %v5664_v1 = vsel %vm1804_vm0, %v5568_v15, %v5561_v9  ;;  %v5573_v17 = vmax.f32 %v5571_v26, %v5572_v47  ;;  %v5583_v50 = vsel %vm5386_vm7, %v5372_v59, -inf  ;;  %v5375_v43 = vadd.f32 %v6094_v23, %v5214_v31  ;;  %5675 = vst.msk [vmem:[#allocation7] sm:$0xff] %vm5386_vm7, %v5649_v35 }
 0x56f   :  { %v5580_v51 = vmax.f32 %v5578_v19, %v5579_v42  ;;  %v5584_v61 = vrot.slane %v5583_v50, 4 }
 0x570   :  { %v5574_v36 = vrot.slane %v5573_v17, 1  ;;  %v5590_v2 = vsel %vm5386_vm7, %v5375_v43, -inf  ;;  %v6095_v37 = vpop.f32.mrb[132].mxu1 }
 0x571   :  { %v5581_v63 = vrot.slane %v5580_v51, 1  ;;  %v5585_v22 = vmax.f32 %v5583_v50, %v5584_v61  ;;  %v5591_v0 = vrot.slane %v5590_v2, 4  ;;  %v6096_v25 = vpop.f32.mrb[133].mxu1 }
 0x572   :  { %v5575_v53 = vmax.f32 %v5573_v17, %v5574_v36  ;;  %v6097_v62 = vadd.f32 %v6096_v25, %v6095_v37  ;;  %v6098_v44 = vpop.f32.mrb[134].mxu1 }
 0x573   :  { %v5582_v38 = vmax.f32 %v5580_v51, %v5581_v63  ;;  %v5586_v5 = vrot.slane %v5585_v22, 2  ;;  %v5592_v6 = vmax.f32 %v5590_v2, %v5591_v0  ;;  %v6099_v16 = vpop.f32.mrb[135].mxu1 }
 0x574   :  { %v5665_v11 = vsel %vm1806_vm1, %v5575_v53, %v5664_v1  ;;  %v5380_v3 = vadd.f32 %v6097_v62, %v5219_v12  ;;  %v6100_v7 = vadd.f32 %v6099_v16, %v6098_v44 }
 0x575   :  { %v5666_v39 = vsel %vm1808_vm2, %v5582_v38, %v5665_v11  ;;  %v5587_v14 = vmax.f32 %v5585_v22, %v5586_v5  ;;  %v5593_v28 = vrot.slane %v5592_v6, 2 }
 0x576   :  { %v5597_v55 = vsel %vm5386_vm7, %v5380_v3, -inf  ;;  %v5383_v30 = vadd.f32 %v6100_v7, %v5222_v45 }
 0x577   :  { %v5588_v41 = vrot.slane %v5587_v14, 1  ;;  %v5594_v20 = vmax.f32 %v5592_v6, %v5593_v28  ;;  %v5598_v29 = vrot.slane %v5597_v55, 4 }
 0x578   :  { %v5604_v60 = vsel %vm5386_vm7, %v5383_v30, -inf }
 0x579   :  { %v5589_v49 = vmax.f32 %v5587_v14, %v5588_v41  ;;  %v5595_v18 = vrot.slane %v5594_v20, 1  ;;  %v5599_v13 = vmax.f32 %v5597_v55, %v5598_v29  ;;  %v5605_v27 = vrot.slane %v5604_v60, 4 }
 0x57b   :  { %v5667_v4 = vsel %vm1810_vm3, %v5589_v49, %v5666_v39  ;;  %v5596_v40 = vmax.f32 %v5594_v20, %v5595_v18  ;;  %v5600_v54 = vrot.slane %v5599_v13, 2  ;;  %v5606_v52 = vmax.f32 %v5604_v60, %v5605_v27 }
 0x57d   :  { %v5668_v24 = vsel %vm1812_vm4, %v5596_v40, %v5667_v4  ;;  %v5601_v8 = vmax.f32 %v5599_v13, %v5600_v54  ;;  %v5607_v10 = vrot.slane %v5606_v52, 2 }
 0x57f   :  { %v5602_v32 = vrot.slane %v5601_v8, 1  ;;  %v5608_v58 = vmax.f32 %v5606_v52, %v5607_v10 }
 0x581   :  { %v5603_v48 = vmax.f32 %v5601_v8, %v5602_v32  ;;  %v5609_v57 = vrot.slane %v5608_v58, 1 }
 0x583   :  { %v5610_v21 = vmax.f32 %v5608_v58, %v5609_v57  ;;  %v5669_v26 = vsel %vm1814_vm5, %v5603_v48, %v5668_v24 }
 0x585   :  { %v5670_v46 = vsel %vm1816_vm6, %v5610_v21, %v5669_v26 }
 0x586   :  { %5678 = vst.msk [vmem:[#allocation7 + $0x18] sm:$0xff] %vm5386_vm7, %v5670_v46 }
 0x587   :  { %6488 = shalt.err (!%p6485_p6)
}
 0x588   :  { %s6489_s27 = scalar_lea.hbm %s9321_s14, 512 }
 0x589   :  { %p6490_p7 = scmp.ne.s32.totalorder %s9321_s14, %s6489_s27  ;;  %p6493_p8 = scmp.lt.u32.totalorder %s6489_s27, %s9321_s14 }
 0x58b   :  { %p6495_p9 = pnand %p6493_p8, %p6490_p7 }
 0x58d   :  { %6498 = shalt.err (!%p6495_p9)
}
 0x58e   :  { %5690 = dma.vmem_to_hbm [thread:$0]  %s5685_s13, 512, %s9321_s14, [#allocation4], %s6506_s23, %s6506_s23, %s6507_s24  }
 0x58f   :  { %6503 = dma.done.wait [#allocation4], 512  }
 0x590   :  { %6504 = vsyncadd [#allocation4], 4294966784 }
 0x591   :  { %5694 = vsyncpa [#allocation3], 1 }
 0x592   :  { %5695 = vsyncpa [#allocation6], 1 }
 0x593   :  { %5696 = vsyncpa [#allocation4], 1 }

</bundles_post_ra>
